<compile_context>
chip_gen: v7x
topology: tpu7x:2x2x1
jax: 0.10.0
libtpu: 0.0.40
codegen_flags: <defaults>
</compile_context>

<pallas_src>
import math
from collections import namedtuple

import jax
import jax.numpy as jnp
from jax.experimental import pallas as pl
from jax.experimental.pallas import tpu as pltpu

Conv = namedtuple('Conv', 'kernel_size stride padding_mode')
Upsample = namedtuple('Upsample', 'size scale_factor mode align_corners')

BN_EPS = 1e-5
LEAKY_SLOPE = 0.2
_PAD_MODES = {'reflect': 'reflect', 'zeros': 'constant',
              'replicate': 'edge', 'circular': 'wrap'}


def _round_up(n, m):
    return ((n + m - 1) // m) * m


# ----------------------------- in-kernel helpers ----------------------------

def _act(y, activation):
    if activation is None:
        return y
    if activation == 'relu':
        return jnp.maximum(y, 0.0)
    if activation == 'leakyrelu':
        return jnp.where(y >= 0.0, y, LEAKY_SLOPE * y)
    if activation == 'sigmoid':
        return 1.0 / (1.0 + jnp.exp(-y))
    raise ValueError(f"unknown activation {activation}")


def _bn(y, mask, count):
    # Training-mode BatchNorm2d: batch stats over the pixel/lane axis, biased variance,
    # gamma=1, beta=0.  `mask` (1, L) f32 selects lanes entering the statistics;
    # normalization is applied to every lane.  Kept two-pass for numerical safety.
    if mask is None:
        mean = jnp.sum(y, axis=1, keepdims=True) / count
        diff = y - mean
        var = jnp.sum(diff * diff, axis=1, keepdims=True) / count
    else:
        mean = jnp.sum(y * mask, axis=1, keepdims=True) / count
        diff = y - mean
        var = jnp.sum(diff * diff * mask, axis=1, keepdims=True) / count
    return diff * jax.lax.rsqrt(var + BN_EPS)


def _lane_pos(n):
    # f32 lane coordinates; exact for the pixel counts involved here.
    return jax.lax.broadcasted_iota(jnp.int32, (1, n), 1).astype(jnp.float32)


def _wide_mask(lw_pad, wp, wo, ho):
    # Valid columns of the 'wide' (ho, wp)-layout conv output, generated in-kernel
    # (no (1, L) mask array in HBM).  row/col via exact f32 arithmetic (+0.5 guard).
    p = _lane_pos(lw_pad)
    r = jnp.floor((p + 0.5) * (1.0 / wp))
    c = p - r * wp
    return jnp.where((c < wo) & (p < ho * wp), 1.0, 0.0)


def _interior_mask(lp, wp, pad, h, w):
    # Valid (un-padded) pixels of a reflect/zero-padded flattened slab, in-kernel.
    p = _lane_pos(lp)
    i = jnp.floor((p + 0.5) * (1.0 / wp))
    j = p - i * wp
    ok = (i >= pad) & (i < pad + h) & (j >= pad) & (j < pad + w)
    return jnp.where(ok, 1.0, 0.0)


def _tail_mask(n, n_valid):
    if n_valid >= n:
        return None
    return jnp.where(_lane_pos(n) < n_valid, 1.0, 0.0)


# ------------------------------ kernel factories -----------------------------

def _make_matmul_kernel(use_bn, activation, n_valid):
    """Single (Cout, K) @ (K, L) matmul with fused BN / bias / activation.
    Lanes >= n_valid are padding columns and excluded from BN statistics."""
    if use_bn:
        def kernel(w_ref, x_ref, o_ref):
            y = jnp.dot(w_ref[...], x_ref[...], preferred_element_type=jnp.float32)
            y = _bn(y, _tail_mask(y.shape[1], n_valid), float(n_valid))
            o_ref[...] = _act(y, activation).astype(o_ref.dtype)
        return kernel

    def kernel(w_ref, x_ref, b_ref, o_ref):
        y = jnp.dot(w_ref[...], x_ref[...], preferred_element_type=jnp.float32)
        o_ref[...] = _act(y + b_ref[...], activation).astype(o_ref.dtype)
    return kernel


def _make_shiftconv_kernel(k, wp, wo, ho, lw_pad, c_out, use_bn, activation):
    """Stride-1 kxk conv with IN-KERNEL im2col: k*k shifted matmuls over the flattened
    reflect-padded slab.  Input slab arrives in bf16 (no per-tap cast).  Output is the
    'wide' (Cout, ho*wp->lw_pad) slab; garbage columns are masked out of the BN stats
    and cropped by the caller."""
    # TODO(synk): merge the k taps of each row into one K=k*Cin dot (or explicit MXU
    # MRB accumulation on v7x) once channel counts are large enough to matter.
    def _conv(w_ref, xb):
        acc = jnp.zeros((c_out, lw_pad), jnp.float32)
        for di in range(k):
            for dj in range(k):
                s = di * wp + dj
                acc = acc + jnp.dot(w_ref[di * k + dj], xb[:, s:s + lw_pad],
                                    preferred_element_type=jnp.float32)
        return acc

    if use_bn:
        def kernel(w_ref, x_ref, o_ref):
            y = _bn(_conv(w_ref, x_ref[...]), _wide_mask(lw_pad, wp, wo, ho),
                    float(ho * wo))
            o_ref[...] = _act(y, activation).astype(o_ref.dtype)
        return kernel

    def kernel(w_ref, x_ref, b_ref, o_ref):
        o_ref[...] = _act(_conv(w_ref, x_ref[...]) + b_ref[...],
                          activation).astype(o_ref.dtype)
    return kernel


def _make_encoder_head_kernel(n_skip, use_bn, activation, n_valid_skip, n_valid_main):
    """Fused EncoderBlock head: skip branch (chain of 1x1 convblocks on the input slab)
    plus the first main conv (strided, from im2col columns), two outputs."""
    def kernel(*refs):
        refs = list(refs)
        main_o = refs.pop()
        skip_o = refs.pop()
        x_ref = refs.pop(0)
        cols_ref = refs.pop(0)

        # skip branch (all 1x1 / stride-1 convblocks)
        y = x_ref[...]
        for _ in range(n_skip):
            w = refs.pop(0)[...]
            yb = y if y.dtype == jnp.bfloat16 else y.astype(jnp.bfloat16)
            yf = jnp.dot(w, yb, preferred_element_type=jnp.float32)
            if use_bn:
                yf = _bn(yf, None, float(n_valid_skip))
            else:
                yf = yf + refs.pop(0)[...]
            y = _act(yf, activation)
        skip_o[...] = y.astype(skip_o.dtype)

        # first main conv (strided) from lane-dense im2col columns
        wm = refs.pop(0)[...]
        ym = jnp.dot(wm, cols_ref[...], preferred_element_type=jnp.float32)
        if use_bn:
            ym = _bn(ym, _tail_mask(ym.shape[1], n_valid_main), float(n_valid_main))
        else:
            ym = ym + refs.pop(0)[...]
        main_o[...] = _act(ym, activation).astype(main_o.dtype)
    return kernel


def _make_decoder_kernel(k, wp, wo, ho, lw_pad, lp, pad, h, w, c1,
                         has_skip, use_bn, activation, zero_pad):
    """Whole DecoderBlock main branch fused in one kernel:
         pre-BatchNorm2d (main + skip read as two refs == channel concat on read side)
         -> kxk stride-1 conv (in-kernel im2col) -> BN/bias -> act
         -> [1x1 conv -> BN/bias -> act] for every trailing conv."""
    n_in = float(h * w)
    n_out = float(ho * wo)

    def kernel(*refs):
        refs = list(refs)
        o_ref = refs.pop()
        xm_ref = refs.pop(0)
        xs_ref = refs.pop(0) if has_skip else None
        w1m_ref = refs.pop(0)
        w1s_ref = refs.pop(0) if has_skip else None

        # Pre-BN over the valid interior pixels only, so normalizing the padded slab
        # == padding the normalized tensor (reflect/replicate copy interior values).
        imask = _interior_mask(lp, wp, pad, h, w)
        nm = _bn(xm_ref[...].astype(jnp.float32), imask, n_in)
        if zero_pad:                      # zero padding must stay zero after BN
            nm = nm * imask
        nmb = nm.astype(jnp.bfloat16)     # bf16 cast hoisted OUT of the tap loop
        if has_skip:
            ns = _bn(xs_ref[...].astype(jnp.float32), imask, n_in)
            if zero_pad:
                ns = ns * imask
            nsb = ns.astype(jnp.bfloat16)

        acc = jnp.zeros((c1, lw_pad), jnp.float32)
        for di in range(k):
            for dj in range(k):
                s = di * wp + dj
                t = di * k + dj
                acc = acc + jnp.dot(w1m_ref[t], nmb[:, s:s + lw_pad],
                                    preferred_element_type=jnp.float32)
                if has_skip:
                    acc = acc + jnp.dot(w1s_ref[t], nsb[:, s:s + lw_pad],
                                        preferred_element_type=jnp.float32)

        omask = _wide_mask(lw_pad, wp, wo, ho)
        if use_bn:
            y = _act(_bn(acc, omask, n_out), activation)
            for w_ref in refs:            # remaining refs: trailing 1x1 conv weights
                y = jnp.dot(w_ref[...], y.astype(jnp.bfloat16),
                            preferred_element_type=jnp.float32)
                y = _act(_bn(y, omask, n_out), activation)
        else:
            y = _act(acc + refs.pop(0)[...], activation)
            for i in range(0, len(refs), 2):   # (weight, bias) pairs
                y = jnp.dot(refs[i][...], y.astype(jnp.bfloat16),
                            preferred_element_type=jnp.float32)
                y = _act(y + refs[i + 1][...], activation)
        o_ref[...] = y.astype(o_ref.dtype)
    return kernel


def _bn_only_kernel(x_ref, o_ref):
    o_ref[...] = _bn(x_ref[...].astype(jnp.float32), None,
                     float(x_ref.shape[1])).astype(o_ref.dtype)


# ------------------------------- host-side glue ------------------------------

def _full_spec(shape):
    return pl.BlockSpec(shape, lambda *_: (0,) * len(shape))


def _cparams(args, out_shapes):
    nbytes = sum(int(math.prod(a.shape)) * a.dtype.itemsize
                 for a in list(args) + list(out_shapes))
    limit = int(min(max(3 * nbytes + (4 << 20), 32 << 20), 56 << 20))
    # TODO(synk): at production DIP resolutions add a pixel(lane)-axis grid (tiles >=512,
    # multiple of 128) with cross-step BN accumulation (or fold the BN affine into the
    # next conv's weights), mark it "parallel" so v7x's two TensorCores split the tiles;
    # at 16x16 the whole slab set is a few hundred KiB so grid=(1,) is correct & fastest.
    return pltpu.CompilerParams(dimension_semantics=("arbitrary",),
                                vmem_limit_bytes=limit)


def _call(kernel, args, out_shapes):
    single = not isinstance(out_shapes, (tuple, list))
    outs = (out_shapes,) if single else tuple(out_shapes)
    return pl.pallas_call(
        kernel,
        out_shape=out_shapes,
        grid=(1,),
        in_specs=[_full_spec(a.shape) for a in args],
        out_specs=(_full_spec(outs[0].shape) if single
                   else tuple(_full_spec(o.shape) for o in outs)),
        compiler_params=_cparams(args, outs),
    )(*args)


def _taps(w):
    c_out, c_in, k, _ = w.shape
    return jnp.transpose(w, (2, 3, 0, 1)).reshape(k * k, c_out, c_in).astype(jnp.bfloat16)


def _pad_flatten(x, pad, pad_mode, k):
    """Reflect/zero-pad a bf16 (C,H,W) slab, flatten to (C, Lp) where Lp covers every
    tap slice of width lw_pad = round_up(ho*wp, 128) (lane-dense, unmasked stores)."""
    c, h, w = x.shape
    if pad > 0:
        x = jnp.pad(x, ((0, 0), (pad, pad), (pad, pad)),
                    mode=_PAD_MODES.get(pad_mode, 'constant'))
    hp, wp = h + 2 * pad, w + 2 * pad
    ho, wo = hp - k + 1, wp - k + 1
    lw = ho * wp
    lw_pad = _round_up(lw, 128)
    lp = (k - 1) * (wp + 1) + lw_pad
    flat = x.reshape(c, hp * wp)
    if lp > hp * wp:
        flat = jnp.pad(flat, ((0, 0), (0, lp - hp * wp)))
    return flat, dict(hp=hp, wp=wp, ho=ho, wo=wo, lw=lw, lw_pad=lw_pad, lp=lp)


def im2col_t(x, k, stride, pad, pad_mode):
    # Transposed (lane-dense) im2col for strided convs, bf16, lane width padded to 128.
    # TODO(synk): move this strided gather in-kernel (strided pl.ds loads) to avoid the
    # host-side k^2/stride^2-duplicated HBM tensor at production resolutions.
    c, h, w = x.shape
    if pad > 0:
        x = jnp.pad(x, ((0, 0), (pad, pad), (pad, pad)),
                    mode=_PAD_MODES.get(pad_mode, 'constant'))
    hp, wp = h + 2 * pad, w + 2 * pad
    ho = (hp - k) // stride + 1
    wo = (wp - k) // stride + 1
    patches = [x[:, di:di + stride * ho:stride, dj:dj + stride * wo:stride]
               for di in range(k) for dj in range(k)]
    cols = jnp.stack(patches, axis=1).reshape(c * k * k, ho * wo).astype(jnp.bfloat16)
    n = ho * wo
    n_pad = _round_up(n, 128)
    if n_pad > n:
        cols = jnp.pad(cols, ((0, 0), (0, n_pad - n)))
    return cols, ho, wo


def _center_crop_pair(a, b):
    ah, aw = a.shape[1], a.shape[2]
    bh, bw = b.shape[1], b.shape[2]
    if ah == bh and aw == bw:
        return a, b
    nh, nw = min(ah, bh), min(aw, bw)
    da, wa = (ah - nh) // 2, (aw - nw) // 2
    db, wb = (bh - nh) // 2, (bw - nw) // 2
    return (a[:, da:da + nh, wa:wa + nw], b[:, db:db + nh, wb:wb + nw])


def upsample_nearest(x, scale):
    # TODO(synk): only mode='nearest' nn.Upsample is implemented; at production sizes
    # fold this x2 repeat + the decoder reflect pad into the decoder kernel (index math).
    x = jnp.repeat(x, scale, axis=1)
    return jnp.repeat(x, scale, axis=2)


# --------------------------- fused pallas_call wrappers -----------------------

def matmul_block_pallas(w_bf16, x_flat, bias, use_bn, activation, n_valid, out_dtype):
    c_out = w_bf16.shape[0]
    L = x_flat.shape[1]
    kernel = _make_matmul_kernel(use_bn, activation, n_valid)
    if use_bn:
        args = (w_bf16, x_flat)
    else:
        args = (w_bf16, x_flat, bias.reshape(c_out, 1).astype(jnp.float32))
    return _call(kernel, args, jax.ShapeDtypeStruct((c_out, L), out_dtype))


def shiftconv_pallas(w_taps, x_flat, bias, g, k, c_out, use_bn, activation, out_dtype):
    kernel = _make_shiftconv_kernel(k, g['wp'], g['wo'], g['ho'], g['lw_pad'],
                                    c_out, use_bn, activation)
    if use_bn:
        args = (w_taps, x_flat)
    else:
        args = (w_taps, x_flat, bias.reshape(c_out, 1).astype(jnp.float32))
    return _call(kernel, args, jax.ShapeDtypeStruct((c_out, g['lw_pad']), out_dtype))


def encoder_head_pallas(x, skip_list, main1, use_bn, activation):
    """Skip branch (1x1 convblock chain) + strided main conv1 in ONE pallas_call."""
    c, h, w = x.shape
    L = h * w
    x_flat = x.reshape(c, L)
    w1, b1, conv1 = main1
    c1, _, k, _ = w1.shape
    pad = (k - 1) // 2
    cols, ho, wo = im2col_t(x, k, conv1.stride, pad, conv1.padding_mode)

    args = [x_flat, cols]
    for (ws, bs, _cv) in skip_list:
        args.append(ws.reshape(ws.shape[0], ws.shape[1]).astype(jnp.bfloat16))
        if not use_bn:
            args.append(bs.reshape(ws.shape[0], 1).astype(jnp.float32))
    args.append(w1.reshape(c1, -1).astype(jnp.bfloat16))
    if not use_bn:
        args.append(b1.reshape(c1, 1).astype(jnp.float32))

    cs_out = skip_list[-1][0].shape[0]
    kernel = _make_encoder_head_kernel(len(skip_list), use_bn, activation, L, ho * wo)
    out_shapes = (jax.ShapeDtypeStruct((cs_out, L), jnp.bfloat16),
                  jax.ShapeDtypeStruct((c1, cols.shape[1]), jnp.bfloat16))
    skip_o, main_o = _call(kernel, args, out_shapes)
    return (skip_o.reshape(cs_out, h, w),
            main_o[:, :ho * wo].reshape(c1, ho, wo))


def apply_convblock(x, w, b, conv, batchnorm, activation, out_dtype=jnp.bfloat16):
    """convblock = Conv2d -> [BatchNorm2d] -> [activation] as one pallas_call.
    x: (Cin, H, W) bf16.  Returns (Cout, Ho, Wo)."""
    use_bn = batchnorm is True
    c_out, c_in, k, _ = w.shape
    stride = conv.stride
    pad = (k - 1) // 2
    c, h, wd = x.shape
    if k == 1 and stride == 1:
        y = matmul_block_pallas(w.reshape(c_out, c_in).astype(jnp.bfloat16),
                                x.reshape(c, h * wd), b, use_bn, activation,
                                h * wd, out_dtype)
        return y.reshape(c_out, h, wd)
    if stride == 1:
        x_flat, g = _pad_flatten(x, pad, conv.padding_mode, k)
        y = shiftconv_pallas(_taps(w), x_flat, b, g, k, c_out, use_bn, activation,
                             out_dtype)
        return y[:, :g['lw']].reshape(c_out, g['ho'], g['wp'])[:, :, :g['wo']]
    # Strided conv: host-side lane-dense im2col + fused matmul/BN/act kernel.
    cols, ho, wo = im2col_t(x, k, stride, pad, conv.padding_mode)
    y = matmul_block_pallas(w.reshape(c_out, c_in * k * k).astype(jnp.bfloat16),
                            cols, b, use_bn, activation, ho * wo, out_dtype)
    return y[:, :ho * wo].reshape(c_out, ho, wo)


def apply_bn_chw(x):
    # Standalone training-mode BatchNorm2d (decoder fallback path only).
    c, h, w = x.shape
    out = _call(_bn_only_kernel, (x.reshape(c, h * w),),
                jax.ShapeDtypeStruct((c, h * w), jnp.bfloat16))
    return out.reshape(c, h, w)


def apply_encoder_block(x, blk, batchnorm, activation):
    use_bn = batchnorm is True
    skip_list, main_list = blk['skip'], blk['main']
    fused = (bool(skip_list)
             and all(cv.kernel_size == 1 and cv.stride == 1 for (_, _, cv) in skip_list)
             and main_list[0][2].stride > 1)
    sx = None
    if fused:
        sx, x = encoder_head_pallas(x, skip_list, main_list[0], use_bn, activation)
        rest = main_list[1:]
    else:
        if skip_list:
            sx = x
            for (w, b, cv) in skip_list:
                sx = apply_convblock(sx, w, b, cv, batchnorm, activation)
        rest = main_list
    for (w, b, cv) in rest:
        x = apply_convblock(x, w, b, cv, batchnorm, activation)
    return x, sx


def apply_decoder_block(xm, sx, conv_list, batchnorm, activation):
    """DecoderBlock main path: concat(main, skip) -> BatchNorm2d -> convblocks,
    fused into a single pallas_call."""
    use_bn = batchnorm is True
    if sx is not None:
        xm, sx = _center_crop_pair(xm, sx)

    w1, b1, conv1 = conv_list[0]
    rest = conv_list[1:]
    k = conv1.kernel_size
    fused_ok = (conv1.stride == 1
                and all(cv.kernel_size == 1 and cv.stride == 1 for (_, _, cv) in rest))
    if not fused_ok:
        # TODO(synk): decoder blocks whose first conv is strided or whose trailing convs
        # are not 1x1/stride-1 fall back to an unfused pre-BN kernel + per-conv kernels.
        x = xm if sx is None else jnp.concatenate([xm, sx], axis=0)
        x = apply_bn_chw(x)
        for (w, b, cv) in conv_list:
            x = apply_convblock(x, w, b, cv, batchnorm, activation)
        return x

    pad = (k - 1) // 2
    cm, h, wd = xm.shape
    c1 = w1.shape[0]
    xm_flat, g = _pad_flatten(xm, pad, conv1.padding_mode, k)
    args = [xm_flat]
    if sx is not None:
        xs_flat, _ = _pad_flatten(sx, pad, conv1.padding_mode, k)
        args.append(xs_flat)
    args.append(_taps(w1[:, :cm]))
    if sx is not None:
        args.append(_taps(w1[:, cm:]))
    if not use_bn:
        args.append(b1.reshape(c1, 1).astype(jnp.float32))
    c_last = c1
    for (w, b, _cv) in rest:
        args.append(w.reshape(w.shape[0], w.shape[1]).astype(jnp.bfloat16))
        if not use_bn:
            args.append(b.reshape(w.shape[0], 1).astype(jnp.float32))
        c_last = w.shape[0]

    zero_pad = (pad > 0 and conv1.padding_mode == 'zeros')
    kernel = _make_decoder_kernel(k, g['wp'], g['wo'], g['ho'], g['lw_pad'], g['lp'],
                                  pad, h, wd, c1, sx is not None, use_bn,
                                  activation, zero_pad)
    out = _call(kernel, args,
                jax.ShapeDtypeStruct((c_last, g['lw_pad']), jnp.bfloat16))
    return out[:, :g['lw']].reshape(c_last, g['ho'], g['wp'])[:, :, :g['wo']]


# --------------------------- parameters & forward ----------------------------

def conv_params(key, c_in, c_out, k):
    bound = 1.0 / math.sqrt(c_in * k * k)
    wkey, bkey = jax.random.split(key)
    w = jax.random.uniform(wkey, (c_out, c_in, k, k), jnp.float32, -bound, bound)
    b = jax.random.uniform(bkey, (c_out,), jnp.float32, -bound, bound)
    return w, b


def build_params(key, in_channels, out_channels, down_channels, skip_channels,
                 up_channels, down_convs, skip_convs, up_convs):
    n_keys = (len(down_channels) * (len(skip_convs) + len(down_convs))
              + len(up_channels) * len(up_convs) + 1)
    keys = iter(jax.random.split(key, n_keys))
    params = {'encoder': [], 'decoder': [], 'last': None}

    main_channels = [in_channels] + list(down_channels)
    for inc, outc, skipc in zip(main_channels, main_channels[1:], skip_channels):
        blk = {'skip': [], 'main': []}
        if skipc != 0:
            sc_in = inc
            for sc in skip_convs:
                w, b = conv_params(next(keys), sc_in, skipc, sc.kernel_size)
                blk['skip'].append((w, b, sc))
                sc_in = skipc
        mc_in = inc
        for dc in down_convs:
            w, b = conv_params(next(keys), mc_in, outc, dc.kernel_size)
            blk['main'].append((w, b, dc))
            mc_in = outc
        params['encoder'].append(blk)

    dec_in = down_channels[-1]
    main_channels = [dec_in] + list(up_channels[::-1])
    for inc, outc, skipc in zip(main_channels, main_channels[1:], skip_channels[::-1]):
        inc = inc + skipc
        blk = {'main': [], 'skip_channels': skipc}
        mc_in = inc
        for uc in up_convs:
            w, b = conv_params(next(keys), mc_in, outc, uc.kernel_size)
            blk['main'].append((w, b, uc))
            mc_in = outc
        params['decoder'].append(blk)

    w, b = conv_params(next(keys), up_channels[0], out_channels,
                       up_convs[-1].kernel_size)
    params['last'] = (w, b, up_convs[-1])
    return params


def dipnet_forward(x, params, batchnorm, activation, last_batchnorm,
                   last_activation, upsample_args):
    assert x.shape[0] == 1, "DIPNet operates on a single image (1, C, H, W)"
    # Channel-major, bf16 inter-kernel handoff (BN / accumulation stays f32 in-kernel).
    x = x[0].astype(jnp.bfloat16)
    skips = []
    for blk in params['encoder']:
        x, sx = apply_encoder_block(x, blk, batchnorm, activation)
        skips.append(sx)

    for sx, blk in zip(skips[::-1], params['decoder']):
        if upsample_args is not None:
            x = upsample_nearest(x, int(upsample_args.scale_factor))
        x = apply_decoder_block(x, sx if blk['skip_channels'] != 0 else None,
                                blk['main'], batchnorm, activation)

    w, b, conv = params['last']
    x = apply_convblock(x, w, b, conv, last_batchnorm, last_activation,
                        out_dtype=jnp.float32)
    return x[None].astype(jnp.float32)


if __name__ == "__main__":
    key = jax.random.PRNGKey(0)
    pkey, xkey = jax.random.split(key)

    # Small DIPNet configuration.
    in_channels, out_channels = 4, 3
    down_channels = [8, 16]
    skip_channels = [4, 4]
    up_channels = [8, 16]
    down_convs = [Conv(3, 2, 'reflect'), Conv(3, 1, 'reflect')]
    skip_convs = [Conv(1, 1, 'reflect')]
    up_convs = [Conv(3, 1, 'reflect'), Conv(1, 1, 'reflect')]
    upsample_args = Upsample(None, 2, 'nearest', None)

    params = build_params(pkey, in_channels, out_channels, down_channels,
                          skip_channels, up_channels, down_convs, skip_convs,
                          up_convs)

    x = jax.random.normal(xkey, (1, in_channels, 16, 16), jnp.float32)

    fwd = jax.jit(lambda inp: dipnet_forward(
        inp, params, batchnorm=True, activation='leakyrelu',
        last_batchnorm=False, last_activation='sigmoid',
        upsample_args=upsample_args))

    y = jax.block_until_ready(fwd(x))
    assert y.shape == (1, out_channels, 16, 16), y.shape
    assert bool(jnp.all(jnp.isfinite(y)))
    assert bool(jnp.all((y >= 0.0) & (y <= 1.0)))  # sigmoid output range
    print("KERNEL_OK")
</pallas_src>

<mosaic_0001>
module attributes {stable_mosaic.version = 11 : i64} {
  func.func @kernel(%arg0: i32, %arg1: memref<4x256xbf16, #tpu.memory_space<vmem>>, %arg2: memref<36x128xbf16, #tpu.memory_space<vmem>>, %arg3: memref<4x4xbf16, #tpu.memory_space<vmem>>, %arg4: memref<8x36xbf16, #tpu.memory_space<vmem>>, %arg5: memref<4x256xbf16, #tpu.memory_space<vmem>>, %arg6: memref<8x128xbf16, #tpu.memory_space<vmem>>) attributes {dimension_semantics = [#tpu.dimension_semantics<arbitrary>], iteration_bounds = array<i64: 1>, scalar_prefetch = 0 : i64, scratch_operands = 0 : i64, tpu.core_type = #tpu.core_type<tc>, window_params = [{pipeline_mode = #tpu.pipeline_mode<synchronous>, transform_indices = @transform_0, window_bounds = array<i64: 4, 256>}, {pipeline_mode = #tpu.pipeline_mode<synchronous>, transform_indices = @transform_1, window_bounds = array<i64: 36, 128>}, {pipeline_mode = #tpu.pipeline_mode<synchronous>, transform_indices = @transform_2, window_bounds = array<i64: 4, 4>}, {pipeline_mode = #tpu.pipeline_mode<synchronous>, transform_indices = @transform_3, window_bounds = array<i64: 8, 36>}, {pipeline_mode = #tpu.pipeline_mode<synchronous>, transform_indices = @transform_4, window_bounds = array<i64: 4, 256>}, {pipeline_mode = #tpu.pipeline_mode<synchronous>, transform_indices = @transform_5, window_bounds = array<i64: 8, 128>}]} {
    %c0 = arith.constant 0 : index
    %c0_0 = arith.constant 0 : index
    %0 = vector.load %arg1[%c0, %c0_0] : memref<4x256xbf16, #tpu.memory_space<vmem>>, vector<4x256xbf16>
    %c0_1 = arith.constant 0 : index
    %c0_2 = arith.constant 0 : index
    %1 = vector.load %arg3[%c0_1, %c0_2] : memref<4x4xbf16, #tpu.memory_space<vmem>>, vector<4x4xbf16>
    %cst = arith.constant dense<0.000000e+00> : vector<4x256xf32>
    %2 = tpu.matmul %1, %0, %cst {dimension_numbers = #tpu.dot_dimension_numbers<[1], [0], [0], [1], [0, 0, 1, 1], [], []>} : vector<4x4xbf16>, vector<4x256xbf16>, vector<4x256xf32> -> vector<4x256xf32>
    %cst_3 = arith.constant dense<0.000000e+00> : vector<4xf32>
    %3 = vector.multi_reduction <add>, %2, %cst_3 [1] : vector<4x256xf32> to vector<4xf32>
    %4 = vector.shape_cast %3 : vector<4xf32> to vector<4x1xf32>
    %cst_4 = arith.constant 2.560000e+02 : f32
    %5 = vector.broadcast %cst_4 : f32 to vector<4x1xf32>
    %6 = arith.divf %4, %5 : vector<4x1xf32>
    %7 = vector.broadcast %6 : vector<4x1xf32> to vector<4x256xf32>
    %8 = arith.subf %2, %7 : vector<4x256xf32>
    %9 = arith.mulf %8, %8 : vector<4x256xf32>
    %cst_5 = arith.constant dense<0.000000e+00> : vector<4xf32>
    %10 = vector.multi_reduction <add>, %9, %cst_5 [1] : vector<4x256xf32> to vector<4xf32>
    %11 = vector.shape_cast %10 : vector<4xf32> to vector<4x1xf32>
    %cst_6 = arith.constant 2.560000e+02 : f32
    %12 = vector.broadcast %cst_6 : f32 to vector<4x1xf32>
    %13 = arith.divf %11, %12 : vector<4x1xf32>
    %cst_7 = arith.constant 9.99999974E-6 : f32
    %14 = vector.broadcast %cst_7 : f32 to vector<4x1xf32>
    %15 = arith.addf %13, %14 : vector<4x1xf32>
    %16 = math.rsqrt %15 : vector<4x1xf32>
    %17 = vector.broadcast %16 : vector<4x1xf32> to vector<4x256xf32>
    %18 = arith.mulf %8, %17 : vector<4x256xf32>
    %cst_8 = arith.constant 0.000000e+00 : f32
    %19 = vector.broadcast %cst_8 : f32 to vector<4x256xf32>
    %20 = arith.cmpf oge, %18, %19 : vector<4x256xf32>
    %cst_9 = arith.constant 2.000000e-01 : f32
    %21 = vector.broadcast %cst_9 : f32 to vector<4x256xf32>
    %22 = arith.mulf %21, %18 : vector<4x256xf32>
    %23 = arith.select %20, %18, %22 : vector<4x256xi1>, vector<4x256xf32>
    %24 = arith.truncf %23 : vector<4x256xf32> to vector<4x256xbf16>
    %c0_10 = arith.constant 0 : index
    %c0_11 = arith.constant 0 : index
    %25 = vector.load %arg5[%c0_10, %c0_11] : memref<4x256xbf16, #tpu.memory_space<vmem>>, vector<4x256xbf16>
    tpu.vector_store %arg5[%c0_10, %c0_11], %24 {strides = array<i32>} : memref<4x256xbf16, #tpu.memory_space<vmem>>, vector<4x256xbf16>,
    %c0_12 = arith.constant 0 : index
    %c0_13 = arith.constant 0 : index
    %26 = vector.load %arg4[%c0_12, %c0_13] : memref<8x36xbf16, #tpu.memory_space<vmem>>, vector<8x36xbf16>
    %c0_14 = arith.constant 0 : index
    %c0_15 = arith.constant 0 : index
    %27 = vector.load %arg2[%c0_14, %c0_15] : memref<36x128xbf16, #tpu.memory_space<vmem>>, vector<36x128xbf16>
    %cst_16 = arith.constant dense<0.000000e+00> : vector<8x128xf32>
    %28 = tpu.matmul %26, %27, %cst_16 {dimension_numbers = #tpu.dot_dimension_numbers<[1], [0], [0], [1], [0, 0, 1, 1], [], []>} : vector<8x36xbf16>, vector<36x128xbf16>, vector<8x128xf32> -> vector<8x128xf32>
    %29 = tpu.iota {dimensions = array<i32: 1>} : vector<1x128xi32>
    %30 = arith.sitofp %29 : vector<1x128xi32> to vector<1x128xf32>
    %cst_17 = arith.constant 6.400000e+01 : f32
    %31 = vector.broadcast %cst_17 : f32 to vector<1x128xf32>
    %32 = arith.cmpf olt, %30, %31 : vector<1x128xf32>
    %cst_18 = arith.constant 1.000000e+00 : f32
    %cst_19 = arith.constant 0.000000e+00 : f32
    %33 = vector.broadcast %cst_18 : f32 to vector<1x128xf32>
    %34 = vector.broadcast %cst_19 : f32 to vector<1x128xf32>
    %35 = arith.select %32, %33, %34 : vector<1x128xi1>, vector<1x128xf32>
    %36 = vector.broadcast %35 : vector<1x128xf32> to vector<8x128xf32>
    %37 = arith.mulf %28, %36 : vector<8x128xf32>
    %cst_20 = arith.constant dense<0.000000e+00> : vector<8xf32>
    %38 = vector.multi_reduction <add>, %37, %cst_20 [1] : vector<8x128xf32> to vector<8xf32>
    %39 = vector.shape_cast %38 : vector<8xf32> to vector<8x1xf32>
    %cst_21 = arith.constant 6.400000e+01 : f32
    %40 = vector.broadcast %cst_21 : f32 to vector<8x1xf32>
    %41 = arith.divf %39, %40 : vector<8x1xf32>
    %42 = vector.broadcast %41 : vector<8x1xf32> to vector<8x128xf32>
    %43 = arith.subf %28, %42 : vector<8x128xf32>
    %44 = arith.mulf %43, %43 : vector<8x128xf32>
    %45 = vector.broadcast %35 : vector<1x128xf32> to vector<8x128xf32>
    %46 = arith.mulf %44, %45 : vector<8x128xf32>
    %cst_22 = arith.constant dense<0.000000e+00> : vector<8xf32>
    %47 = vector.multi_reduction <add>, %46, %cst_22 [1] : vector<8x128xf32> to vector<8xf32>
    %48 = vector.shape_cast %47 : vector<8xf32> to vector<8x1xf32>
    %cst_23 = arith.constant 6.400000e+01 : f32
    %49 = vector.broadcast %cst_23 : f32 to vector<8x1xf32>
    %50 = arith.divf %48, %49 : vector<8x1xf32>
    %cst_24 = arith.constant 9.99999974E-6 : f32
    %51 = vector.broadcast %cst_24 : f32 to vector<8x1xf32>
    %52 = arith.addf %50, %51 : vector<8x1xf32>
    %53 = math.rsqrt %52 : vector<8x1xf32>
    %54 = vector.broadcast %53 : vector<8x1xf32> to vector<8x128xf32>
    %55 = arith.mulf %43, %54 : vector<8x128xf32>
    %cst_25 = arith.constant 0.000000e+00 : f32
    %56 = vector.broadcast %cst_25 : f32 to vector<8x128xf32>
    %57 = arith.cmpf oge, %55, %56 : vector<8x128xf32>
    %cst_26 = arith.constant 2.000000e-01 : f32
    %58 = vector.broadcast %cst_26 : f32 to vector<8x128xf32>
    %59 = arith.mulf %58, %55 : vector<8x128xf32>
    %60 = arith.select %57, %55, %59 : vector<8x128xi1>, vector<8x128xf32>
    %61 = arith.truncf %60 : vector<8x128xf32> to vector<8x128xbf16>
    %c0_27 = arith.constant 0 : index
    %c0_28 = arith.constant 0 : index
    %62 = vector.load %arg6[%c0_27, %c0_28] : memref<8x128xbf16, #tpu.memory_space<vmem>>, vector<8x128xbf16>
    tpu.vector_store %arg6[%c0_27, %c0_28], %61 {strides = array<i32>} : memref<8x128xbf16, #tpu.memory_space<vmem>>, vector<8x128xbf16>,
    return
  }
  func.func @transform_0(%arg0: i32) -> (i32, i32) {
    %c0_i32 = arith.constant 0 : i32
    %c0_i32_0 = arith.constant 0 : i32
    %c0_i32_1 = arith.constant 0 : i32
    return %c0_i32, %c0_i32_0 : i32, i32
  }
  func.func @transform_1(%arg0: i32) -> (i32, i32) {
    %c0_i32 = arith.constant 0 : i32
    %c0_i32_0 = arith.constant 0 : i32
    %c0_i32_1 = arith.constant 0 : i32
    return %c0_i32, %c0_i32_0 : i32, i32
  }
  func.func @transform_2(%arg0: i32) -> (i32, i32) {
    %c0_i32 = arith.constant 0 : i32
    %c0_i32_0 = arith.constant 0 : i32
    %c0_i32_1 = arith.constant 0 : i32
    return %c0_i32, %c0_i32_0 : i32, i32
  }
  func.func @transform_3(%arg0: i32) -> (i32, i32) {
    %c0_i32 = arith.constant 0 : i32
    %c0_i32_0 = arith.constant 0 : i32
    %c0_i32_1 = arith.constant 0 : i32
    return %c0_i32, %c0_i32_0 : i32, i32
  }
  func.func @transform_4(%arg0: i32) -> (i32, i32) {
    %c0_i32 = arith.constant 0 : i32
    %c0_i32_0 = arith.constant 0 : i32
    %c0_i32_1 = arith.constant 0 : i32
    return %c0_i32, %c0_i32_0 : i32, i32
  }
  func.func @transform_5(%arg0: i32) -> (i32, i32) {
    %c0_i32 = arith.constant 0 : i32
    %c0_i32_0 = arith.constant 0 : i32
    %c0_i32_1 = arith.constant 0 : i32
    return %c0_i32, %c0_i32_0 : i32, i32
  }
}

module attributes {stable_mosaic.version = 11 : i64} {
  func.func @kernel(%arg0: i32, %arg1: memref<9x8x8xbf16, #tpu.memory_space<vmem>>, %arg2: memref<8x150xbf16, #tpu.memory_space<vmem>>, %arg3: memref<8x128xbf16, #tpu.memory_space<vmem>>) attributes {dimension_semantics = [#tpu.dimension_semantics<arbitrary>], iteration_bounds = array<i64: 1>, scalar_prefetch = 0 : i64, scratch_operands = 0 : i64, tpu.core_type = #tpu.core_type<tc>, window_params = [{pipeline_mode = #tpu.pipeline_mode<synchronous>, transform_indices = @transform_0, window_bounds = array<i64: 9, 8, 8>}, {pipeline_mode = #tpu.pipeline_mode<synchronous>, transform_indices = @transform_1, window_bounds = array<i64: 8, 150>}, {pipeline_mode = #tpu.pipeline_mode<synchronous>, transform_indices = @transform_2, window_bounds = array<i64: 8, 128>}]} {
    %c0 = arith.constant 0 : index
    %c0_0 = arith.constant 0 : index
    %0 = vector.load %arg2[%c0, %c0_0] : memref<8x150xbf16, #tpu.memory_space<vmem>>, vector<8x150xbf16>
    %cst = arith.constant 0.000000e+00 : f32
    %1 = vector.broadcast %cst : f32 to vector<8x128xf32>
    %c0_1 = arith.constant 0 : index
    %c0_2 = arith.constant 0 : index
    %c0_3 = arith.constant 0 : index
    %2 = vector.load %arg1[%c0_1, %c0_2, %c0_3] : memref<9x8x8xbf16, #tpu.memory_space<vmem>>, vector<1x8x8xbf16>
    %3 = vector.shape_cast %2 : vector<1x8x8xbf16> to vector<8x8xbf16>
    %4 = vector.extract_strided_slice %0 {offsets = [0, 0], sizes = [8, 128], strides = [1, 1]} : vector<8x150xbf16> to vector<8x128xbf16>
    %cst_4 = arith.constant dense<0.000000e+00> : vector<8x128xf32>
    %5 = tpu.matmul %3, %4, %cst_4 {dimension_numbers = #tpu.dot_dimension_numbers<[1], [0], [0], [1], [0, 0, 1, 1], [], []>} : vector<8x8xbf16>, vector<8x128xbf16>, vector<8x128xf32> -> vector<8x128xf32>
    %6 = arith.addf %1, %5 : vector<8x128xf32>
    %c1 = arith.constant 1 : index
    %c0_5 = arith.constant 0 : index
    %c0_6 = arith.constant 0 : index
    %7 = vector.load %arg1[%c1, %c0_5, %c0_6] : memref<9x8x8xbf16, #tpu.memory_space<vmem>>, vector<1x8x8xbf16>
    %8 = vector.shape_cast %7 : vector<1x8x8xbf16> to vector<8x8xbf16>
    %9 = vector.extract_strided_slice %0 {offsets = [0, 1], sizes = [8, 128], strides = [1, 1]} : vector<8x150xbf16> to vector<8x128xbf16>
    %cst_7 = arith.constant dense<0.000000e+00> : vector<8x128xf32>
    %10 = tpu.matmul %8, %9, %cst_7 {dimension_numbers = #tpu.dot_dimension_numbers<[1], [0], [0], [1], [0, 0, 1, 1], [], []>} : vector<8x8xbf16>, vector<8x128xbf16>, vector<8x128xf32> -> vector<8x128xf32>
    %11 = arith.addf %6, %10 : vector<8x128xf32>
    %c2 = arith.constant 2 : index
    %c0_8 = arith.constant 0 : index
    %c0_9 = arith.constant 0 : index
    %12 = vector.load %arg1[%c2, %c0_8, %c0_9] : memref<9x8x8xbf16, #tpu.memory_space<vmem>>, vector<1x8x8xbf16>
    %13 = vector.shape_cast %12 : vector<1x8x8xbf16> to vector<8x8xbf16>
    %14 = vector.extract_strided_slice %0 {offsets = [0, 2], sizes = [8, 128], strides = [1, 1]} : vector<8x150xbf16> to vector<8x128xbf16>
    %cst_10 = arith.constant dense<0.000000e+00> : vector<8x128xf32>
    %15 = tpu.matmul %13, %14, %cst_10 {dimension_numbers = #tpu.dot_dimension_numbers<[1], [0], [0], [1], [0, 0, 1, 1], [], []>} : vector<8x8xbf16>, vector<8x128xbf16>, vector<8x128xf32> -> vector<8x128xf32>
    %16 = arith.addf %11, %15 : vector<8x128xf32>
    %c3 = arith.constant 3 : index
    %c0_11 = arith.constant 0 : index
    %c0_12 = arith.constant 0 : index
    %17 = vector.load %arg1[%c3, %c0_11, %c0_12] : memref<9x8x8xbf16, #tpu.memory_space<vmem>>, vector<1x8x8xbf16>
    %18 = vector.shape_cast %17 : vector<1x8x8xbf16> to vector<8x8xbf16>
    %19 = vector.extract_strided_slice %0 {offsets = [0, 10], sizes = [8, 128], strides = [1, 1]} : vector<8x150xbf16> to vector<8x128xbf16>
    %cst_13 = arith.constant dense<0.000000e+00> : vector<8x128xf32>
    %20 = tpu.matmul %18, %19, %cst_13 {dimension_numbers = #tpu.dot_dimension_numbers<[1], [0], [0], [1], [0, 0, 1, 1], [], []>} : vector<8x8xbf16>, vector<8x128xbf16>, vector<8x128xf32> -> vector<8x128xf32>
    %21 = arith.addf %16, %20 : vector<8x128xf32>
    %c4 = arith.constant 4 : index
    %c0_14 = arith.constant 0 : index
    %c0_15 = arith.constant 0 : index
    %22 = vector.load %arg1[%c4, %c0_14, %c0_15] : memref<9x8x8xbf16, #tpu.memory_space<vmem>>, vector<1x8x8xbf16>
    %23 = vector.shape_cast %22 : vector<1x8x8xbf16> to vector<8x8xbf16>
    %24 = vector.extract_strided_slice %0 {offsets = [0, 11], sizes = [8, 128], strides = [1, 1]} : vector<8x150xbf16> to vector<8x128xbf16>
    %cst_16 = arith.constant dense<0.000000e+00> : vector<8x128xf32>
    %25 = tpu.matmul %23, %24, %cst_16 {dimension_numbers = #tpu.dot_dimension_numbers<[1], [0], [0], [1], [0, 0, 1, 1], [], []>} : vector<8x8xbf16>, vector<8x128xbf16>, vector<8x128xf32> -> vector<8x128xf32>
    %26 = arith.addf %21, %25 : vector<8x128xf32>
    %c5 = arith.constant 5 : index
    %c0_17 = arith.constant 0 : index
    %c0_18 = arith.constant 0 : index
    %27 = vector.load %arg1[%c5, %c0_17, %c0_18] : memref<9x8x8xbf16, #tpu.memory_space<vmem>>, vector<1x8x8xbf16>
    %28 = vector.shape_cast %27 : vector<1x8x8xbf16> to vector<8x8xbf16>
    %29 = vector.extract_strided_slice %0 {offsets = [0, 12], sizes = [8, 128], strides = [1, 1]} : vector<8x150xbf16> to vector<8x128xbf16>
    %cst_19 = arith.constant dense<0.000000e+00> : vector<8x128xf32>
    %30 = tpu.matmul %28, %29, %cst_19 {dimension_numbers = #tpu.dot_dimension_numbers<[1], [0], [0], [1], [0, 0, 1, 1], [], []>} : vector<8x8xbf16>, vector<8x128xbf16>, vector<8x128xf32> -> vector<8x128xf32>
    %31 = arith.addf %26, %30 : vector<8x128xf32>
    %c6 = arith.constant 6 : index
    %c0_20 = arith.constant 0 : index
    %c0_21 = arith.constant 0 : index
    %32 = vector.load %arg1[%c6, %c0_20, %c0_21] : memref<9x8x8xbf16, #tpu.memory_space<vmem>>, vector<1x8x8xbf16>
    %33 = vector.shape_cast %32 : vector<1x8x8xbf16> to vector<8x8xbf16>
    %34 = vector.extract_strided_slice %0 {offsets = [0, 20], sizes = [8, 128], strides = [1, 1]} : vector<8x150xbf16> to vector<8x128xbf16>
    %cst_22 = arith.constant dense<0.000000e+00> : vector<8x128xf32>
    %35 = tpu.matmul %33, %34, %cst_22 {dimension_numbers = #tpu.dot_dimension_numbers<[1], [0], [0], [1], [0, 0, 1, 1], [], []>} : vector<8x8xbf16>, vector<8x128xbf16>, vector<8x128xf32> -> vector<8x128xf32>
    %36 = arith.addf %31, %35 : vector<8x128xf32>
    %c7 = arith.constant 7 : index
    %c0_23 = arith.constant 0 : index
    %c0_24 = arith.constant 0 : index
    %37 = vector.load %arg1[%c7, %c0_23, %c0_24] : memref<9x8x8xbf16, #tpu.memory_space<vmem>>, vector<1x8x8xbf16>
    %38 = vector.shape_cast %37 : vector<1x8x8xbf16> to vector<8x8xbf16>
    %39 = vector.extract_strided_slice %0 {offsets = [0, 21], sizes = [8, 128], strides = [1, 1]} : vector<8x150xbf16> to vector<8x128xbf16>
    %cst_25 = arith.constant dense<0.000000e+00> : vector<8x128xf32>
    %40 = tpu.matmul %38, %39, %cst_25 {dimension_numbers = #tpu.dot_dimension_numbers<[1], [0], [0], [1], [0, 0, 1, 1], [], []>} : vector<8x8xbf16>, vector<8x128xbf16>, vector<8x128xf32> -> vector<8x128xf32>
    %41 = arith.addf %36, %40 : vector<8x128xf32>
    %c8 = arith.constant 8 : index
    %c0_26 = arith.constant 0 : index
    %c0_27 = arith.constant 0 : index
    %42 = vector.load %arg1[%c8, %c0_26, %c0_27] : memref<9x8x8xbf16, #tpu.memory_space<vmem>>, vector<1x8x8xbf16>
    %43 = vector.shape_cast %42 : vector<1x8x8xbf16> to vector<8x8xbf16>
    %44 = vector.extract_strided_slice %0 {offsets = [0, 22], sizes = [8, 128], strides = [1, 1]} : vector<8x150xbf16> to vector<8x128xbf16>
    %cst_28 = arith.constant dense<0.000000e+00> : vector<8x128xf32>
    %45 = tpu.matmul %43, %44, %cst_28 {dimension_numbers = #tpu.dot_dimension_numbers<[1], [0], [0], [1], [0, 0, 1, 1], [], []>} : vector<8x8xbf16>, vector<8x128xbf16>, vector<8x128xf32> -> vector<8x128xf32>
    %46 = arith.addf %41, %45 : vector<8x128xf32>
    %47 = tpu.iota {dimensions = array<i32: 1>} : vector<1x128xi32>
    %48 = arith.sitofp %47 : vector<1x128xi32> to vector<1x128xf32>
    %cst_29 = arith.constant 5.000000e-01 : f32
    %49 = vector.broadcast %cst_29 : f32 to vector<1x128xf32>
    %50 = arith.addf %48, %49 : vector<1x128xf32>
    %cst_30 = arith.constant 1.000000e-01 : f32
    %51 = vector.broadcast %cst_30 : f32 to vector<1x128xf32>
    %52 = arith.mulf %50, %51 : vector<1x128xf32>
    %53 = math.floor %52 : vector<1x128xf32>
    %cst_31 = arith.constant 1.000000e+01 : f32
    %54 = vector.broadcast %cst_31 : f32 to vector<1x128xf32>
    %55 = arith.mulf %53, %54 : vector<1x128xf32>
    %56 = arith.subf %48, %55 : vector<1x128xf32>
    %cst_32 = arith.constant 8.000000e+00 : f32
    %57 = vector.broadcast %cst_32 : f32 to vector<1x128xf32>
    %58 = arith.cmpf olt, %56, %57 : vector<1x128xf32>
    %cst_33 = arith.constant 8.000000e+01 : f32
    %59 = vector.broadcast %cst_33 : f32 to vector<1x128xf32>
    %60 = arith.cmpf olt, %48, %59 : vector<1x128xf32>
    %61 = arith.andi %58, %60 : vector<1x128xi1>
    %cst_34 = arith.constant 1.000000e+00 : f32
    %cst_35 = arith.constant 0.000000e+00 : f32
    %62 = vector.broadcast %cst_34 : f32 to vector<1x128xf32>
    %63 = vector.broadcast %cst_35 : f32 to vector<1x128xf32>
    %64 = arith.select %61, %62, %63 : vector<1x128xi1>, vector<1x128xf32>
    %65 = vector.broadcast %64 : vector<1x128xf32> to vector<8x128xf32>
    %66 = arith.mulf %46, %65 : vector<8x128xf32>
    %cst_36 = arith.constant dense<0.000000e+00> : vector<8xf32>
    %67 = vector.multi_reduction <add>, %66, %cst_36 [1] : vector<8x128xf32> to vector<8xf32>
    %68 = vector.shape_cast %67 : vector<8xf32> to vector<8x1xf32>
    %cst_37 = arith.constant 6.400000e+01 : f32
    %69 = vector.broadcast %cst_37 : f32 to vector<8x1xf32>
    %70 = arith.divf %68, %69 : vector<8x1xf32>
    %71 = vector.broadcast %70 : vector<8x1xf32> to vector<8x128xf32>
    %72 = arith.subf %46, %71 : vector<8x128xf32>
    %73 = arith.mulf %72, %72 : vector<8x128xf32>
    %74 = vector.broadcast %64 : vector<1x128xf32> to vector<8x128xf32>
    %75 = arith.mulf %73, %74 : vector<8x128xf32>
    %cst_38 = arith.constant dense<0.000000e+00> : vector<8xf32>
    %76 = vector.multi_reduction <add>, %75, %cst_38 [1] : vector<8x128xf32> to vector<8xf32>
    %77 = vector.shape_cast %76 : vector<8xf32> to vector<8x1xf32>
    %cst_39 = arith.constant 6.400000e+01 : f32
    %78 = vector.broadcast %cst_39 : f32 to vector<8x1xf32>
    %79 = arith.divf %77, %78 : vector<8x1xf32>
    %cst_40 = arith.constant 9.99999974E-6 : f32
    %80 = vector.broadcast %cst_40 : f32 to vector<8x1xf32>
    %81 = arith.addf %79, %80 : vector<8x1xf32>
    %82 = math.rsqrt %81 : vector<8x1xf32>
    %83 = vector.broadcast %82 : vector<8x1xf32> to vector<8x128xf32>
    %84 = arith.mulf %72, %83 : vector<8x128xf32>
    %cst_41 = arith.constant 0.000000e+00 : f32
    %85 = vector.broadcast %cst_41 : f32 to vector<8x128xf32>
    %86 = arith.cmpf oge, %84, %85 : vector<8x128xf32>
    %cst_42 = arith.constant 2.000000e-01 : f32
    %87 = vector.broadcast %cst_42 : f32 to vector<8x128xf32>
    %88 = arith.mulf %87, %84 : vector<8x128xf32>
    %89 = arith.select %86, %84, %88 : vector<8x128xi1>, vector<8x128xf32>
    %90 = arith.truncf %89 : vector<8x128xf32> to vector<8x128xbf16>
    %c0_43 = arith.constant 0 : index
    %c0_44 = arith.constant 0 : index
    %91 = vector.load %arg3[%c0_43, %c0_44] : memref<8x128xbf16, #tpu.memory_space<vmem>>, vector<8x128xbf16>
    tpu.vector_store %arg3[%c0_43, %c0_44], %90 {strides = array<i32>} : memref<8x128xbf16, #tpu.memory_space<vmem>>, vector<8x128xbf16>,
    return
  }
  func.func @transform_0(%arg0: i32) -> (i32, i32, i32) {
    %c0_i32 = arith.constant 0 : i32
    %c0_i32_0 = arith.constant 0 : i32
    %c0_i32_1 = arith.constant 0 : i32
    %c0_i32_2 = arith.constant 0 : i32
    return %c0_i32, %c0_i32_0, %c0_i32_1 : i32, i32, i32
  }
  func.func @transform_1(%arg0: i32) -> (i32, i32) {
    %c0_i32 = arith.constant 0 : i32
    %c0_i32_0 = arith.constant 0 : i32
    %c0_i32_1 = arith.constant 0 : i32
    return %c0_i32, %c0_i32_0 : i32, i32
  }
  func.func @transform_2(%arg0: i32) -> (i32, i32) {
    %c0_i32 = arith.constant 0 : i32
    %c0_i32_0 = arith.constant 0 : i32
    %c0_i32_1 = arith.constant 0 : i32
    return %c0_i32, %c0_i32_0 : i32, i32
  }
}

module attributes {stable_mosaic.version = 11 : i64} {
  func.func @kernel(%arg0: i32, %arg1: memref<8x64xbf16, #tpu.memory_space<vmem>>, %arg2: memref<72x128xbf16, #tpu.memory_space<vmem>>, %arg3: memref<4x8xbf16, #tpu.memory_space<vmem>>, %arg4: memref<16x72xbf16, #tpu.memory_space<vmem>>, %arg5: memref<4x64xbf16, #tpu.memory_space<vmem>>, %arg6: memref<16x128xbf16, #tpu.memory_space<vmem>>) attributes {dimension_semantics = [#tpu.dimension_semantics<arbitrary>], iteration_bounds = array<i64: 1>, scalar_prefetch = 0 : i64, scratch_operands = 0 : i64, tpu.core_type = #tpu.core_type<tc>, window_params = [{pipeline_mode = #tpu.pipeline_mode<synchronous>, transform_indices = @transform_0, window_bounds = array<i64: 8, 64>}, {pipeline_mode = #tpu.pipeline_mode<synchronous>, transform_indices = @transform_1, window_bounds = array<i64: 72, 128>}, {pipeline_mode = #tpu.pipeline_mode<synchronous>, transform_indices = @transform_2, window_bounds = array<i64: 4, 8>}, {pipeline_mode = #tpu.pipeline_mode<synchronous>, transform_indices = @transform_3, window_bounds = array<i64: 16, 72>}, {pipeline_mode = #tpu.pipeline_mode<synchronous>, transform_indices = @transform_4, window_bounds = array<i64: 4, 64>}, {pipeline_mode = #tpu.pipeline_mode<synchronous>, transform_indices = @transform_5, window_bounds = array<i64: 16, 128>}]} {
    %c0 = arith.constant 0 : index
    %c0_0 = arith.constant 0 : index
    %0 = vector.load %arg1[%c0, %c0_0] : memref<8x64xbf16, #tpu.memory_space<vmem>>, vector<8x64xbf16>
    %c0_1 = arith.constant 0 : index
    %c0_2 = arith.constant 0 : index
    %1 = vector.load %arg3[%c0_1, %c0_2] : memref<4x8xbf16, #tpu.memory_space<vmem>>, vector<4x8xbf16>
    %cst = arith.constant dense<0.000000e+00> : vector<4x64xf32>
    %2 = tpu.matmul %1, %0, %cst {dimension_numbers = #tpu.dot_dimension_numbers<[1], [0], [0], [1], [0, 0, 1, 1], [], []>} : vector<4x8xbf16>, vector<8x64xbf16>, vector<4x64xf32> -> vector<4x64xf32>
    %cst_3 = arith.constant dense<0.000000e+00> : vector<4xf32>
    %3 = vector.multi_reduction <add>, %2, %cst_3 [1] : vector<4x64xf32> to vector<4xf32>
    %4 = vector.shape_cast %3 : vector<4xf32> to vector<4x1xf32>
    %cst_4 = arith.constant 6.400000e+01 : f32
    %5 = vector.broadcast %cst_4 : f32 to vector<4x1xf32>
    %6 = arith.divf %4, %5 : vector<4x1xf32>
    %7 = vector.broadcast %6 : vector<4x1xf32> to vector<4x64xf32>
    %8 = arith.subf %2, %7 : vector<4x64xf32>
    %9 = arith.mulf %8, %8 : vector<4x64xf32>
    %cst_5 = arith.constant dense<0.000000e+00> : vector<4xf32>
    %10 = vector.multi_reduction <add>, %9, %cst_5 [1] : vector<4x64xf32> to vector<4xf32>
    %11 = vector.shape_cast %10 : vector<4xf32> to vector<4x1xf32>
    %cst_6 = arith.constant 6.400000e+01 : f32
    %12 = vector.broadcast %cst_6 : f32 to vector<4x1xf32>
    %13 = arith.divf %11, %12 : vector<4x1xf32>
    %cst_7 = arith.constant 9.99999974E-6 : f32
    %14 = vector.broadcast %cst_7 : f32 to vector<4x1xf32>
    %15 = arith.addf %13, %14 : vector<4x1xf32>
    %16 = math.rsqrt %15 : vector<4x1xf32>
    %17 = vector.broadcast %16 : vector<4x1xf32> to vector<4x64xf32>
    %18 = arith.mulf %8, %17 : vector<4x64xf32>
    %cst_8 = arith.constant 0.000000e+00 : f32
    %19 = vector.broadcast %cst_8 : f32 to vector<4x64xf32>
    %20 = arith.cmpf oge, %18, %19 : vector<4x64xf32>
    %cst_9 = arith.constant 2.000000e-01 : f32
    %21 = vector.broadcast %cst_9 : f32 to vector<4x64xf32>
    %22 = arith.mulf %21, %18 : vector<4x64xf32>
    %23 = arith.select %20, %18, %22 : vector<4x64xi1>, vector<4x64xf32>
    %24 = arith.truncf %23 : vector<4x64xf32> to vector<4x64xbf16>
    %c0_10 = arith.constant 0 : index
    %c0_11 = arith.constant 0 : index
    %25 = vector.load %arg5[%c0_10, %c0_11] : memref<4x64xbf16, #tpu.memory_space<vmem>>, vector<4x64xbf16>
    tpu.vector_store %arg5[%c0_10, %c0_11], %24 {strides = array<i32>} : memref<4x64xbf16, #tpu.memory_space<vmem>>, vector<4x64xbf16>,
    %c0_12 = arith.constant 0 : index
    %c0_13 = arith.constant 0 : index
    %26 = vector.load %arg4[%c0_12, %c0_13] : memref<16x72xbf16, #tpu.memory_space<vmem>>, vector<16x72xbf16>
    %c0_14 = arith.constant 0 : index
    %c0_15 = arith.constant 0 : index
    %27 = vector.load %arg2[%c0_14, %c0_15] : memref<72x128xbf16, #tpu.memory_space<vmem>>, vector<72x128xbf16>
    %cst_16 = arith.constant dense<0.000000e+00> : vector<16x128xf32>
    %28 = tpu.matmul %26, %27, %cst_16 {dimension_numbers = #tpu.dot_dimension_numbers<[1], [0], [0], [1], [0, 0, 1, 1], [], []>} : vector<16x72xbf16>, vector<72x128xbf16>, vector<16x128xf32> -> vector<16x128xf32>
    %29 = tpu.iota {dimensions = array<i32: 1>} : vector<1x128xi32>
    %30 = arith.sitofp %29 : vector<1x128xi32> to vector<1x128xf32>
    %cst_17 = arith.constant 1.600000e+01 : f32
    %31 = vector.broadcast %cst_17 : f32 to vector<1x128xf32>
    %32 = arith.cmpf olt, %30, %31 : vector<1x128xf32>
    %cst_18 = arith.constant 1.000000e+00 : f32
    %cst_19 = arith.constant 0.000000e+00 : f32
    %33 = vector.broadcast %cst_18 : f32 to vector<1x128xf32>
    %34 = vector.broadcast %cst_19 : f32 to vector<1x128xf32>
    %35 = arith.select %32, %33, %34 : vector<1x128xi1>, vector<1x128xf32>
    %36 = vector.broadcast %35 : vector<1x128xf32> to vector<16x128xf32>
    %37 = arith.mulf %28, %36 : vector<16x128xf32>
    %cst_20 = arith.constant dense<0.000000e+00> : vector<16xf32>
    %38 = vector.multi_reduction <add>, %37, %cst_20 [1] : vector<16x128xf32> to vector<16xf32>
    %39 = vector.shape_cast %38 : vector<16xf32> to vector<16x1xf32>
    %cst_21 = arith.constant 1.600000e+01 : f32
    %40 = vector.broadcast %cst_21 : f32 to vector<16x1xf32>
    %41 = arith.divf %39, %40 : vector<16x1xf32>
    %42 = vector.broadcast %41 : vector<16x1xf32> to vector<16x128xf32>
    %43 = arith.subf %28, %42 : vector<16x128xf32>
    %44 = arith.mulf %43, %43 : vector<16x128xf32>
    %45 = vector.broadcast %35 : vector<1x128xf32> to vector<16x128xf32>
    %46 = arith.mulf %44, %45 : vector<16x128xf32>
    %cst_22 = arith.constant dense<0.000000e+00> : vector<16xf32>
    %47 = vector.multi_reduction <add>, %46, %cst_22 [1] : vector<16x128xf32> to vector<16xf32>
    %48 = vector.shape_cast %47 : vector<16xf32> to vector<16x1xf32>
    %cst_23 = arith.constant 1.600000e+01 : f32
    %49 = vector.broadcast %cst_23 : f32 to vector<16x1xf32>
    %50 = arith.divf %48, %49 : vector<16x1xf32>
    %cst_24 = arith.constant 9.99999974E-6 : f32
    %51 = vector.broadcast %cst_24 : f32 to vector<16x1xf32>
    %52 = arith.addf %50, %51 : vector<16x1xf32>
    %53 = math.rsqrt %52 : vector<16x1xf32>
    %54 = vector.broadcast %53 : vector<16x1xf32> to vector<16x128xf32>
    %55 = arith.mulf %43, %54 : vector<16x128xf32>
    %cst_25 = arith.constant 0.000000e+00 : f32
    %56 = vector.broadcast %cst_25 : f32 to vector<16x128xf32>
    %57 = arith.cmpf oge, %55, %56 : vector<16x128xf32>
    %cst_26 = arith.constant 2.000000e-01 : f32
    %58 = vector.broadcast %cst_26 : f32 to vector<16x128xf32>
    %59 = arith.mulf %58, %55 : vector<16x128xf32>
    %60 = arith.select %57, %55, %59 : vector<16x128xi1>, vector<16x128xf32>
    %61 = arith.truncf %60 : vector<16x128xf32> to vector<16x128xbf16>
    %c0_27 = arith.constant 0 : index
    %c0_28 = arith.constant 0 : index
    %62 = vector.load %arg6[%c0_27, %c0_28] : memref<16x128xbf16, #tpu.memory_space<vmem>>, vector<16x128xbf16>
    tpu.vector_store %arg6[%c0_27, %c0_28], %61 {strides = array<i32>} : memref<16x128xbf16, #tpu.memory_space<vmem>>, vector<16x128xbf16>,
    return
  }
  func.func @transform_0(%arg0: i32) -> (i32, i32) {
    %c0_i32 = arith.constant 0 : i32
    %c0_i32_0 = arith.constant 0 : i32
    %c0_i32_1 = arith.constant 0 : i32
    return %c0_i32, %c0_i32_0 : i32, i32
  }
  func.func @transform_1(%arg0: i32) -> (i32, i32) {
    %c0_i32 = arith.constant 0 : i32
    %c0_i32_0 = arith.constant 0 : i32
    %c0_i32_1 = arith.constant 0 : i32
    return %c0_i32, %c0_i32_0 : i32, i32
  }
  func.func @transform_2(%arg0: i32) -> (i32, i32) {
    %c0_i32 = arith.constant 0 : i32
    %c0_i32_0 = arith.constant 0 : i32
    %c0_i32_1 = arith.constant 0 : i32
    return %c0_i32, %c0_i32_0 : i32, i32
  }
  func.func @transform_3(%arg0: i32) -> (i32, i32) {
    %c0_i32 = arith.constant 0 : i32
    %c0_i32_0 = arith.constant 0 : i32
    %c0_i32_1 = arith.constant 0 : i32
    return %c0_i32, %c0_i32_0 : i32, i32
  }
  func.func @transform_4(%arg0: i32) -> (i32, i32) {
    %c0_i32 = arith.constant 0 : i32
    %c0_i32_0 = arith.constant 0 : i32
    %c0_i32_1 = arith.constant 0 : i32
    return %c0_i32, %c0_i32_0 : i32, i32
  }
  func.func @transform_5(%arg0: i32) -> (i32, i32) {
    %c0_i32 = arith.constant 0 : i32
    %c0_i32_0 = arith.constant 0 : i32
    %c0_i32_1 = arith.constant 0 : i32
    return %c0_i32, %c0_i32_0 : i32, i32
  }
}

module attributes {stable_mosaic.version = 11 : i64} {
  func.func @kernel(%arg0: i32, %arg1: memref<9x16x16xbf16, #tpu.memory_space<vmem>>, %arg2: memref<16x142xbf16, #tpu.memory_space<vmem>>, %arg3: memref<16x128xbf16, #tpu.memory_space<vmem>>) attributes {dimension_semantics = [#tpu.dimension_semantics<arbitrary>], iteration_bounds = array<i64: 1>, scalar_prefetch = 0 : i64, scratch_operands = 0 : i64, tpu.core_type = #tpu.core_type<tc>, window_params = [{pipeline_mode = #tpu.pipeline_mode<synchronous>, transform_indices = @transform_0, window_bounds = array<i64: 9, 16, 16>}, {pipeline_mode = #tpu.pipeline_mode<synchronous>, transform_indices = @transform_1, window_bounds = array<i64: 16, 142>}, {pipeline_mode = #tpu.pipeline_mode<synchronous>, transform_indices = @transform_2, window_bounds = array<i64: 16, 128>}]} {
    %c0 = arith.constant 0 : index
    %c0_0 = arith.constant 0 : index
    %0 = vector.load %arg2[%c0, %c0_0] : memref<16x142xbf16, #tpu.memory_space<vmem>>, vector<16x142xbf16>
    %cst = arith.constant 0.000000e+00 : f32
    %1 = vector.broadcast %cst : f32 to vector<16x128xf32>
    %c0_1 = arith.constant 0 : index
    %c0_2 = arith.constant 0 : index
    %c0_3 = arith.constant 0 : index
    %2 = vector.load %arg1[%c0_1, %c0_2, %c0_3] : memref<9x16x16xbf16, #tpu.memory_space<vmem>>, vector<1x16x16xbf16>
    %3 = vector.shape_cast %2 : vector<1x16x16xbf16> to vector<16x16xbf16>
    %4 = vector.extract_strided_slice %0 {offsets = [0, 0], sizes = [16, 128], strides = [1, 1]} : vector<16x142xbf16> to vector<16x128xbf16>
    %cst_4 = arith.constant dense<0.000000e+00> : vector<16x128xf32>
    %5 = tpu.matmul %3, %4, %cst_4 {dimension_numbers = #tpu.dot_dimension_numbers<[1], [0], [0], [1], [0, 0, 1, 1], [], []>} : vector<16x16xbf16>, vector<16x128xbf16>, vector<16x128xf32> -> vector<16x128xf32>
    %6 = arith.addf %1, %5 : vector<16x128xf32>
    %c1 = arith.constant 1 : index
    %c0_5 = arith.constant 0 : index
    %c0_6 = arith.constant 0 : index
    %7 = vector.load %arg1[%c1, %c0_5, %c0_6] : memref<9x16x16xbf16, #tpu.memory_space<vmem>>, vector<1x16x16xbf16>
    %8 = vector.shape_cast %7 : vector<1x16x16xbf16> to vector<16x16xbf16>
    %9 = vector.extract_strided_slice %0 {offsets = [0, 1], sizes = [16, 128], strides = [1, 1]} : vector<16x142xbf16> to vector<16x128xbf16>
    %cst_7 = arith.constant dense<0.000000e+00> : vector<16x128xf32>
    %10 = tpu.matmul %8, %9, %cst_7 {dimension_numbers = #tpu.dot_dimension_numbers<[1], [0], [0], [1], [0, 0, 1, 1], [], []>} : vector<16x16xbf16>, vector<16x128xbf16>, vector<16x128xf32> -> vector<16x128xf32>
    %11 = arith.addf %6, %10 : vector<16x128xf32>
    %c2 = arith.constant 2 : index
    %c0_8 = arith.constant 0 : index
    %c0_9 = arith.constant 0 : index
    %12 = vector.load %arg1[%c2, %c0_8, %c0_9] : memref<9x16x16xbf16, #tpu.memory_space<vmem>>, vector<1x16x16xbf16>
    %13 = vector.shape_cast %12 : vector<1x16x16xbf16> to vector<16x16xbf16>
    %14 = vector.extract_strided_slice %0 {offsets = [0, 2], sizes = [16, 128], strides = [1, 1]} : vector<16x142xbf16> to vector<16x128xbf16>
    %cst_10 = arith.constant dense<0.000000e+00> : vector<16x128xf32>
    %15 = tpu.matmul %13, %14, %cst_10 {dimension_numbers = #tpu.dot_dimension_numbers<[1], [0], [0], [1], [0, 0, 1, 1], [], []>} : vector<16x16xbf16>, vector<16x128xbf16>, vector<16x128xf32> -> vector<16x128xf32>
    %16 = arith.addf %11, %15 : vector<16x128xf32>
    %c3 = arith.constant 3 : index
    %c0_11 = arith.constant 0 : index
    %c0_12 = arith.constant 0 : index
    %17 = vector.load %arg1[%c3, %c0_11, %c0_12] : memref<9x16x16xbf16, #tpu.memory_space<vmem>>, vector<1x16x16xbf16>
    %18 = vector.shape_cast %17 : vector<1x16x16xbf16> to vector<16x16xbf16>
    %19 = vector.extract_strided_slice %0 {offsets = [0, 6], sizes = [16, 128], strides = [1, 1]} : vector<16x142xbf16> to vector<16x128xbf16>
    %cst_13 = arith.constant dense<0.000000e+00> : vector<16x128xf32>
    %20 = tpu.matmul %18, %19, %cst_13 {dimension_numbers = #tpu.dot_dimension_numbers<[1], [0], [0], [1], [0, 0, 1, 1], [], []>} : vector<16x16xbf16>, vector<16x128xbf16>, vector<16x128xf32> -> vector<16x128xf32>
    %21 = arith.addf %16, %20 : vector<16x128xf32>
    %c4 = arith.constant 4 : index
    %c0_14 = arith.constant 0 : index
    %c0_15 = arith.constant 0 : index
    %22 = vector.load %arg1[%c4, %c0_14, %c0_15] : memref<9x16x16xbf16, #tpu.memory_space<vmem>>, vector<1x16x16xbf16>
    %23 = vector.shape_cast %22 : vector<1x16x16xbf16> to vector<16x16xbf16>
    %24 = vector.extract_strided_slice %0 {offsets = [0, 7], sizes = [16, 128], strides = [1, 1]} : vector<16x142xbf16> to vector<16x128xbf16>
    %cst_16 = arith.constant dense<0.000000e+00> : vector<16x128xf32>
    %25 = tpu.matmul %23, %24, %cst_16 {dimension_numbers = #tpu.dot_dimension_numbers<[1], [0], [0], [1], [0, 0, 1, 1], [], []>} : vector<16x16xbf16>, vector<16x128xbf16>, vector<16x128xf32> -> vector<16x128xf32>
    %26 = arith.addf %21, %25 : vector<16x128xf32>
    %c5 = arith.constant 5 : index
    %c0_17 = arith.constant 0 : index
    %c0_18 = arith.constant 0 : index
    %27 = vector.load %arg1[%c5, %c0_17, %c0_18] : memref<9x16x16xbf16, #tpu.memory_space<vmem>>, vector<1x16x16xbf16>
    %28 = vector.shape_cast %27 : vector<1x16x16xbf16> to vector<16x16xbf16>
    %29 = vector.extract_strided_slice %0 {offsets = [0, 8], sizes = [16, 128], strides = [1, 1]} : vector<16x142xbf16> to vector<16x128xbf16>
    %cst_19 = arith.constant dense<0.000000e+00> : vector<16x128xf32>
    %30 = tpu.matmul %28, %29, %cst_19 {dimension_numbers = #tpu.dot_dimension_numbers<[1], [0], [0], [1], [0, 0, 1, 1], [], []>} : vector<16x16xbf16>, vector<16x128xbf16>, vector<16x128xf32> -> vector<16x128xf32>
    %31 = arith.addf %26, %30 : vector<16x128xf32>
    %c6 = arith.constant 6 : index
    %c0_20 = arith.constant 0 : index
    %c0_21 = arith.constant 0 : index
    %32 = vector.load %arg1[%c6, %c0_20, %c0_21] : memref<9x16x16xbf16, #tpu.memory_space<vmem>>, vector<1x16x16xbf16>
    %33 = vector.shape_cast %32 : vector<1x16x16xbf16> to vector<16x16xbf16>
    %34 = vector.extract_strided_slice %0 {offsets = [0, 12], sizes = [16, 128], strides = [1, 1]} : vector<16x142xbf16> to vector<16x128xbf16>
    %cst_22 = arith.constant dense<0.000000e+00> : vector<16x128xf32>
    %35 = tpu.matmul %33, %34, %cst_22 {dimension_numbers = #tpu.dot_dimension_numbers<[1], [0], [0], [1], [0, 0, 1, 1], [], []>} : vector<16x16xbf16>, vector<16x128xbf16>, vector<16x128xf32> -> vector<16x128xf32>
    %36 = arith.addf %31, %35 : vector<16x128xf32>
    %c7 = arith.constant 7 : index
    %c0_23 = arith.constant 0 : index
    %c0_24 = arith.constant 0 : index
    %37 = vector.load %arg1[%c7, %c0_23, %c0_24] : memref<9x16x16xbf16, #tpu.memory_space<vmem>>, vector<1x16x16xbf16>
    %38 = vector.shape_cast %37 : vector<1x16x16xbf16> to vector<16x16xbf16>
    %39 = vector.extract_strided_slice %0 {offsets = [0, 13], sizes = [16, 128], strides = [1, 1]} : vector<16x142xbf16> to vector<16x128xbf16>
    %cst_25 = arith.constant dense<0.000000e+00> : vector<16x128xf32>
    %40 = tpu.matmul %38, %39, %cst_25 {dimension_numbers = #tpu.dot_dimension_numbers<[1], [0], [0], [1], [0, 0, 1, 1], [], []>} : vector<16x16xbf16>, vector<16x128xbf16>, vector<16x128xf32> -> vector<16x128xf32>
    %41 = arith.addf %36, %40 : vector<16x128xf32>
    %c8 = arith.constant 8 : index
    %c0_26 = arith.constant 0 : index
    %c0_27 = arith.constant 0 : index
    %42 = vector.load %arg1[%c8, %c0_26, %c0_27] : memref<9x16x16xbf16, #tpu.memory_space<vmem>>, vector<1x16x16xbf16>
    %43 = vector.shape_cast %42 : vector<1x16x16xbf16> to vector<16x16xbf16>
    %44 = vector.extract_strided_slice %0 {offsets = [0, 14], sizes = [16, 128], strides = [1, 1]} : vector<16x142xbf16> to vector<16x128xbf16>
    %cst_28 = arith.constant dense<0.000000e+00> : vector<16x128xf32>
    %45 = tpu.matmul %43, %44, %cst_28 {dimension_numbers = #tpu.dot_dimension_numbers<[1], [0], [0], [1], [0, 0, 1, 1], [], []>} : vector<16x16xbf16>, vector<16x128xbf16>, vector<16x128xf32> -> vector<16x128xf32>
    %46 = arith.addf %41, %45 : vector<16x128xf32>
    %47 = tpu.iota {dimensions = array<i32: 1>} : vector<1x128xi32>
    %48 = arith.sitofp %47 : vector<1x128xi32> to vector<1x128xf32>
    %cst_29 = arith.constant 5.000000e-01 : f32
    %49 = vector.broadcast %cst_29 : f32 to vector<1x128xf32>
    %50 = arith.addf %48, %49 : vector<1x128xf32>
    %cst_30 = arith.constant 0.166666672 : f32
    %51 = vector.broadcast %cst_30 : f32 to vector<1x128xf32>
    %52 = arith.mulf %50, %51 : vector<1x128xf32>
    %53 = math.floor %52 : vector<1x128xf32>
    %cst_31 = arith.constant 6.000000e+00 : f32
    %54 = vector.broadcast %cst_31 : f32 to vector<1x128xf32>
    %55 = arith.mulf %53, %54 : vector<1x128xf32>
    %56 = arith.subf %48, %55 : vector<1x128xf32>
    %cst_32 = arith.constant 4.000000e+00 : f32
    %57 = vector.broadcast %cst_32 : f32 to vector<1x128xf32>
    %58 = arith.cmpf olt, %56, %57 : vector<1x128xf32>
    %cst_33 = arith.constant 2.400000e+01 : f32
    %59 = vector.broadcast %cst_33 : f32 to vector<1x128xf32>
    %60 = arith.cmpf olt, %48, %59 : vector<1x128xf32>
    %61 = arith.andi %58, %60 : vector<1x128xi1>
    %cst_34 = arith.constant 1.000000e+00 : f32
    %cst_35 = arith.constant 0.000000e+00 : f32
    %62 = vector.broadcast %cst_34 : f32 to vector<1x128xf32>
    %63 = vector.broadcast %cst_35 : f32 to vector<1x128xf32>
    %64 = arith.select %61, %62, %63 : vector<1x128xi1>, vector<1x128xf32>
    %65 = vector.broadcast %64 : vector<1x128xf32> to vector<16x128xf32>
    %66 = arith.mulf %46, %65 : vector<16x128xf32>
    %cst_36 = arith.constant dense<0.000000e+00> : vector<16xf32>
    %67 = vector.multi_reduction <add>, %66, %cst_36 [1] : vector<16x128xf32> to vector<16xf32>
    %68 = vector.shape_cast %67 : vector<16xf32> to vector<16x1xf32>
    %cst_37 = arith.constant 1.600000e+01 : f32
    %69 = vector.broadcast %cst_37 : f32 to vector<16x1xf32>
    %70 = arith.divf %68, %69 : vector<16x1xf32>
    %71 = vector.broadcast %70 : vector<16x1xf32> to vector<16x128xf32>
    %72 = arith.subf %46, %71 : vector<16x128xf32>
    %73 = arith.mulf %72, %72 : vector<16x128xf32>
    %74 = vector.broadcast %64 : vector<1x128xf32> to vector<16x128xf32>
    %75 = arith.mulf %73, %74 : vector<16x128xf32>
    %cst_38 = arith.constant dense<0.000000e+00> : vector<16xf32>
    %76 = vector.multi_reduction <add>, %75, %cst_38 [1] : vector<16x128xf32> to vector<16xf32>
    %77 = vector.shape_cast %76 : vector<16xf32> to vector<16x1xf32>
    %cst_39 = arith.constant 1.600000e+01 : f32
    %78 = vector.broadcast %cst_39 : f32 to vector<16x1xf32>
    %79 = arith.divf %77, %78 : vector<16x1xf32>
    %cst_40 = arith.constant 9.99999974E-6 : f32
    %80 = vector.broadcast %cst_40 : f32 to vector<16x1xf32>
    %81 = arith.addf %79, %80 : vector<16x1xf32>
    %82 = math.rsqrt %81 : vector<16x1xf32>
    %83 = vector.broadcast %82 : vector<16x1xf32> to vector<16x128xf32>
    %84 = arith.mulf %72, %83 : vector<16x128xf32>
    %cst_41 = arith.constant 0.000000e+00 : f32
    %85 = vector.broadcast %cst_41 : f32 to vector<16x128xf32>
    %86 = arith.cmpf oge, %84, %85 : vector<16x128xf32>
    %cst_42 = arith.constant 2.000000e-01 : f32
    %87 = vector.broadcast %cst_42 : f32 to vector<16x128xf32>
    %88 = arith.mulf %87, %84 : vector<16x128xf32>
    %89 = arith.select %86, %84, %88 : vector<16x128xi1>, vector<16x128xf32>
    %90 = arith.truncf %89 : vector<16x128xf32> to vector<16x128xbf16>
    %c0_43 = arith.constant 0 : index
    %c0_44 = arith.constant 0 : index
    %91 = vector.load %arg3[%c0_43, %c0_44] : memref<16x128xbf16, #tpu.memory_space<vmem>>, vector<16x128xbf16>
    tpu.vector_store %arg3[%c0_43, %c0_44], %90 {strides = array<i32>} : memref<16x128xbf16, #tpu.memory_space<vmem>>, vector<16x128xbf16>,
    return
  }
  func.func @transform_0(%arg0: i32) -> (i32, i32, i32) {
    %c0_i32 = arith.constant 0 : i32
    %c0_i32_0 = arith.constant 0 : i32
    %c0_i32_1 = arith.constant 0 : i32
    %c0_i32_2 = arith.constant 0 : i32
    return %c0_i32, %c0_i32_0, %c0_i32_1 : i32, i32, i32
  }
  func.func @transform_1(%arg0: i32) -> (i32, i32) {
    %c0_i32 = arith.constant 0 : i32
    %c0_i32_0 = arith.constant 0 : i32
    %c0_i32_1 = arith.constant 0 : i32
    return %c0_i32, %c0_i32_0 : i32, i32
  }
  func.func @transform_2(%arg0: i32) -> (i32, i32) {
    %c0_i32 = arith.constant 0 : i32
    %c0_i32_0 = arith.constant 0 : i32
    %c0_i32_1 = arith.constant 0 : i32
    return %c0_i32, %c0_i32_0 : i32, i32
  }
}

module attributes {stable_mosaic.version = 11 : i64} {
  func.func @kernel(%arg0: i32, %arg1: memref<16x150xbf16, #tpu.memory_space<vmem>>, %arg2: memref<4x150xbf16, #tpu.memory_space<vmem>>, %arg3: memref<9x16x16xbf16, #tpu.memory_space<vmem>>, %arg4: memref<9x16x4xbf16, #tpu.memory_space<vmem>>, %arg5: memref<16x16xbf16, #tpu.memory_space<vmem>>, %arg6: memref<16x128xbf16, #tpu.memory_space<vmem>>) attributes {dimension_semantics = [#tpu.dimension_semantics<arbitrary>], iteration_bounds = array<i64: 1>, scalar_prefetch = 0 : i64, scratch_operands = 0 : i64, tpu.core_type = #tpu.core_type<tc>, window_params = [{pipeline_mode = #tpu.pipeline_mode<synchronous>, transform_indices = @transform_0, window_bounds = array<i64: 16, 150>}, {pipeline_mode = #tpu.pipeline_mode<synchronous>, transform_indices = @transform_1, window_bounds = array<i64: 4, 150>}, {pipeline_mode = #tpu.pipeline_mode<synchronous>, transform_indices = @transform_2, window_bounds = array<i64: 9, 16, 16>}, {pipeline_mode = #tpu.pipeline_mode<synchronous>, transform_indices = @transform_3, window_bounds = array<i64: 9, 16, 4>}, {pipeline_mode = #tpu.pipeline_mode<synchronous>, transform_indices = @transform_4, window_bounds = array<i64: 16, 16>}, {pipeline_mode = #tpu.pipeline_mode<synchronous>, transform_indices = @transform_5, window_bounds = array<i64: 16, 128>}]} {
    %0 = tpu.iota {dimensions = array<i32: 1>} : vector<1x150xi32>
    %1 = arith.sitofp %0 : vector<1x150xi32> to vector<1x150xf32>
    %cst = arith.constant 5.000000e-01 : f32
    %2 = vector.broadcast %cst : f32 to vector<1x150xf32>
    %3 = arith.addf %1, %2 : vector<1x150xf32>
    %cst_0 = arith.constant 1.000000e-01 : f32
    %4 = vector.broadcast %cst_0 : f32 to vector<1x150xf32>
    %5 = arith.mulf %3, %4 : vector<1x150xf32>
    %6 = math.floor %5 : vector<1x150xf32>
    %cst_1 = arith.constant 1.000000e+01 : f32
    %7 = vector.broadcast %cst_1 : f32 to vector<1x150xf32>
    %8 = arith.mulf %6, %7 : vector<1x150xf32>
    %9 = arith.subf %1, %8 : vector<1x150xf32>
    %cst_2 = arith.constant 1.000000e+00 : f32
    %10 = vector.broadcast %cst_2 : f32 to vector<1x150xf32>
    %11 = arith.cmpf oge, %6, %10 : vector<1x150xf32>
    %cst_3 = arith.constant 9.000000e+00 : f32
    %12 = vector.broadcast %cst_3 : f32 to vector<1x150xf32>
    %13 = arith.cmpf olt, %6, %12 : vector<1x150xf32>
    %14 = arith.andi %11, %13 : vector<1x150xi1>
    %cst_4 = arith.constant 1.000000e+00 : f32
    %15 = vector.broadcast %cst_4 : f32 to vector<1x150xf32>
    %16 = arith.cmpf oge, %9, %15 : vector<1x150xf32>
    %17 = arith.andi %14, %16 : vector<1x150xi1>
    %cst_5 = arith.constant 9.000000e+00 : f32
    %18 = vector.broadcast %cst_5 : f32 to vector<1x150xf32>
    %19 = arith.cmpf olt, %9, %18 : vector<1x150xf32>
    %20 = arith.andi %17, %19 : vector<1x150xi1>
    %cst_6 = arith.constant 1.000000e+00 : f32
    %cst_7 = arith.constant 0.000000e+00 : f32
    %21 = vector.broadcast %cst_6 : f32 to vector<1x150xf32>
    %22 = vector.broadcast %cst_7 : f32 to vector<1x150xf32>
    %23 = arith.select %20, %21, %22 : vector<1x150xi1>, vector<1x150xf32>
    %c0 = arith.constant 0 : index
    %c0_8 = arith.constant 0 : index
    %24 = vector.load %arg1[%c0, %c0_8] : memref<16x150xbf16, #tpu.memory_space<vmem>>, vector<16x150xbf16>
    %25 = arith.extf %24 : vector<16x150xbf16> to vector<16x150xf32>
    %26 = vector.broadcast %23 : vector<1x150xf32> to vector<16x150xf32>
    %27 = arith.mulf %25, %26 : vector<16x150xf32>
    %cst_9 = arith.constant dense<0.000000e+00> : vector<16xf32>
    %28 = vector.multi_reduction <add>, %27, %cst_9 [1] : vector<16x150xf32> to vector<16xf32>
    %29 = vector.shape_cast %28 : vector<16xf32> to vector<16x1xf32>
    %cst_10 = arith.constant 6.400000e+01 : f32
    %30 = vector.broadcast %cst_10 : f32 to vector<16x1xf32>
    %31 = arith.divf %29, %30 : vector<16x1xf32>
    %32 = vector.broadcast %31 : vector<16x1xf32> to vector<16x150xf32>
    %33 = arith.subf %25, %32 : vector<16x150xf32>
    %34 = arith.mulf %33, %33 : vector<16x150xf32>
    %35 = vector.broadcast %23 : vector<1x150xf32> to vector<16x150xf32>
    %36 = arith.mulf %34, %35 : vector<16x150xf32>
    %cst_11 = arith.constant dense<0.000000e+00> : vector<16xf32>
    %37 = vector.multi_reduction <add>, %36, %cst_11 [1] : vector<16x150xf32> to vector<16xf32>
    %38 = vector.shape_cast %37 : vector<16xf32> to vector<16x1xf32>
    %cst_12 = arith.constant 6.400000e+01 : f32
    %39 = vector.broadcast %cst_12 : f32 to vector<16x1xf32>
    %40 = arith.divf %38, %39 : vector<16x1xf32>
    %cst_13 = arith.constant 9.99999974E-6 : f32
    %41 = vector.broadcast %cst_13 : f32 to vector<16x1xf32>
    %42 = arith.addf %40, %41 : vector<16x1xf32>
    %43 = math.rsqrt %42 : vector<16x1xf32>
    %44 = vector.broadcast %43 : vector<16x1xf32> to vector<16x150xf32>
    %45 = arith.mulf %33, %44 : vector<16x150xf32>
    %46 = arith.truncf %45 : vector<16x150xf32> to vector<16x150xbf16>
    %c0_14 = arith.constant 0 : index
    %c0_15 = arith.constant 0 : index
    %47 = vector.load %arg2[%c0_14, %c0_15] : memref<4x150xbf16, #tpu.memory_space<vmem>>, vector<4x150xbf16>
    %48 = arith.extf %47 : vector<4x150xbf16> to vector<4x150xf32>
    %49 = vector.broadcast %23 : vector<1x150xf32> to vector<4x150xf32>
    %50 = arith.mulf %48, %49 : vector<4x150xf32>
    %cst_16 = arith.constant dense<0.000000e+00> : vector<4xf32>
    %51 = vector.multi_reduction <add>, %50, %cst_16 [1] : vector<4x150xf32> to vector<4xf32>
    %52 = vector.shape_cast %51 : vector<4xf32> to vector<4x1xf32>
    %cst_17 = arith.constant 6.400000e+01 : f32
    %53 = vector.broadcast %cst_17 : f32 to vector<4x1xf32>
    %54 = arith.divf %52, %53 : vector<4x1xf32>
    %55 = vector.broadcast %54 : vector<4x1xf32> to vector<4x150xf32>
    %56 = arith.subf %48, %55 : vector<4x150xf32>
    %57 = arith.mulf %56, %56 : vector<4x150xf32>
    %58 = vector.broadcast %23 : vector<1x150xf32> to vector<4x150xf32>
    %59 = arith.mulf %57, %58 : vector<4x150xf32>
    %cst_18 = arith.constant dense<0.000000e+00> : vector<4xf32>
    %60 = vector.multi_reduction <add>, %59, %cst_18 [1] : vector<4x150xf32> to vector<4xf32>
    %61 = vector.shape_cast %60 : vector<4xf32> to vector<4x1xf32>
    %cst_19 = arith.constant 6.400000e+01 : f32
    %62 = vector.broadcast %cst_19 : f32 to vector<4x1xf32>
    %63 = arith.divf %61, %62 : vector<4x1xf32>
    %cst_20 = arith.constant 9.99999974E-6 : f32
    %64 = vector.broadcast %cst_20 : f32 to vector<4x1xf32>
    %65 = arith.addf %63, %64 : vector<4x1xf32>
    %66 = math.rsqrt %65 : vector<4x1xf32>
    %67 = vector.broadcast %66 : vector<4x1xf32> to vector<4x150xf32>
    %68 = arith.mulf %56, %67 : vector<4x150xf32>
    %69 = arith.truncf %68 : vector<4x150xf32> to vector<4x150xbf16>
    %cst_21 = arith.constant 0.000000e+00 : f32
    %70 = vector.broadcast %cst_21 : f32 to vector<16x128xf32>
    %c0_22 = arith.constant 0 : index
    %c0_23 = arith.constant 0 : index
    %c0_24 = arith.constant 0 : index
    %71 = vector.load %arg3[%c0_22, %c0_23, %c0_24] : memref<9x16x16xbf16, #tpu.memory_space<vmem>>, vector<1x16x16xbf16>
    %72 = vector.shape_cast %71 : vector<1x16x16xbf16> to vector<16x16xbf16>
    %73 = vector.extract_strided_slice %46 {offsets = [0, 0], sizes = [16, 128], strides = [1, 1]} : vector<16x150xbf16> to vector<16x128xbf16>
    %cst_25 = arith.constant dense<0.000000e+00> : vector<16x128xf32>
    %74 = tpu.matmul %72, %73, %cst_25 {dimension_numbers = #tpu.dot_dimension_numbers<[1], [0], [0], [1], [0, 0, 1, 1], [], []>} : vector<16x16xbf16>, vector<16x128xbf16>, vector<16x128xf32> -> vector<16x128xf32>
    %75 = arith.addf %70, %74 : vector<16x128xf32>
    %c0_26 = arith.constant 0 : index
    %c0_27 = arith.constant 0 : index
    %c0_28 = arith.constant 0 : index
    %76 = vector.load %arg4[%c0_26, %c0_27, %c0_28] : memref<9x16x4xbf16, #tpu.memory_space<vmem>>, vector<1x16x4xbf16>
    %77 = vector.shape_cast %76 : vector<1x16x4xbf16> to vector<16x4xbf16>
    %78 = vector.extract_strided_slice %69 {offsets = [0, 0], sizes = [4, 128], strides = [1, 1]} : vector<4x150xbf16> to vector<4x128xbf16>
    %cst_29 = arith.constant dense<0.000000e+00> : vector<16x128xf32>
    %79 = tpu.matmul %77, %78, %cst_29 {dimension_numbers = #tpu.dot_dimension_numbers<[1], [0], [0], [1], [0, 0, 1, 1], [], []>} : vector<16x4xbf16>, vector<4x128xbf16>, vector<16x128xf32> -> vector<16x128xf32>
    %80 = arith.addf %75, %79 : vector<16x128xf32>
    %c1 = arith.constant 1 : index
    %c0_30 = arith.constant 0 : index
    %c0_31 = arith.constant 0 : index
    %81 = vector.load %arg3[%c1, %c0_30, %c0_31] : memref<9x16x16xbf16, #tpu.memory_space<vmem>>, vector<1x16x16xbf16>
    %82 = vector.shape_cast %81 : vector<1x16x16xbf16> to vector<16x16xbf16>
    %83 = vector.extract_strided_slice %46 {offsets = [0, 1], sizes = [16, 128], strides = [1, 1]} : vector<16x150xbf16> to vector<16x128xbf16>
    %cst_32 = arith.constant dense<0.000000e+00> : vector<16x128xf32>
    %84 = tpu.matmul %82, %83, %cst_32 {dimension_numbers = #tpu.dot_dimension_numbers<[1], [0], [0], [1], [0, 0, 1, 1], [], []>} : vector<16x16xbf16>, vector<16x128xbf16>, vector<16x128xf32> -> vector<16x128xf32>
    %85 = arith.addf %80, %84 : vector<16x128xf32>
    %c1_33 = arith.constant 1 : index
    %c0_34 = arith.constant 0 : index
    %c0_35 = arith.constant 0 : index
    %86 = vector.load %arg4[%c1_33, %c0_34, %c0_35] : memref<9x16x4xbf16, #tpu.memory_space<vmem>>, vector<1x16x4xbf16>
    %87 = vector.shape_cast %86 : vector<1x16x4xbf16> to vector<16x4xbf16>
    %88 = vector.extract_strided_slice %69 {offsets = [0, 1], sizes = [4, 128], strides = [1, 1]} : vector<4x150xbf16> to vector<4x128xbf16>
    %cst_36 = arith.constant dense<0.000000e+00> : vector<16x128xf32>
    %89 = tpu.matmul %87, %88, %cst_36 {dimension_numbers = #tpu.dot_dimension_numbers<[1], [0], [0], [1], [0, 0, 1, 1], [], []>} : vector<16x4xbf16>, vector<4x128xbf16>, vector<16x128xf32> -> vector<16x128xf32>
    %90 = arith.addf %85, %89 : vector<16x128xf32>
    %c2 = arith.constant 2 : index
    %c0_37 = arith.constant 0 : index
    %c0_38 = arith.constant 0 : index
    %91 = vector.load %arg3[%c2, %c0_37, %c0_38] : memref<9x16x16xbf16, #tpu.memory_space<vmem>>, vector<1x16x16xbf16>
    %92 = vector.shape_cast %91 : vector<1x16x16xbf16> to vector<16x16xbf16>
    %93 = vector.extract_strided_slice %46 {offsets = [0, 2], sizes = [16, 128], strides = [1, 1]} : vector<16x150xbf16> to vector<16x128xbf16>
    %cst_39 = arith.constant dense<0.000000e+00> : vector<16x128xf32>
    %94 = tpu.matmul %92, %93, %cst_39 {dimension_numbers = #tpu.dot_dimension_numbers<[1], [0], [0], [1], [0, 0, 1, 1], [], []>} : vector<16x16xbf16>, vector<16x128xbf16>, vector<16x128xf32> -> vector<16x128xf32>
    %95 = arith.addf %90, %94 : vector<16x128xf32>
    %c2_40 = arith.constant 2 : index
    %c0_41 = arith.constant 0 : index
    %c0_42 = arith.constant 0 : index
    %96 = vector.load %arg4[%c2_40, %c0_41, %c0_42] : memref<9x16x4xbf16, #tpu.memory_space<vmem>>, vector<1x16x4xbf16>
    %97 = vector.shape_cast %96 : vector<1x16x4xbf16> to vector<16x4xbf16>
    %98 = vector.extract_strided_slice %69 {offsets = [0, 2], sizes = [4, 128], strides = [1, 1]} : vector<4x150xbf16> to vector<4x128xbf16>
    %cst_43 = arith.constant dense<0.000000e+00> : vector<16x128xf32>
    %99 = tpu.matmul %97, %98, %cst_43 {dimension_numbers = #tpu.dot_dimension_numbers<[1], [0], [0], [1], [0, 0, 1, 1], [], []>} : vector<16x4xbf16>, vector<4x128xbf16>, vector<16x128xf32> -> vector<16x128xf32>
    %100 = arith.addf %95, %99 : vector<16x128xf32>
    %c3 = arith.constant 3 : index
    %c0_44 = arith.constant 0 : index
    %c0_45 = arith.constant 0 : index
    %101 = vector.load %arg3[%c3, %c0_44, %c0_45] : memref<9x16x16xbf16, #tpu.memory_space<vmem>>, vector<1x16x16xbf16>
    %102 = vector.shape_cast %101 : vector<1x16x16xbf16> to vector<16x16xbf16>
    %103 = vector.extract_strided_slice %46 {offsets = [0, 10], sizes = [16, 128], strides = [1, 1]} : vector<16x150xbf16> to vector<16x128xbf16>
    %cst_46 = arith.constant dense<0.000000e+00> : vector<16x128xf32>
    %104 = tpu.matmul %102, %103, %cst_46 {dimension_numbers = #tpu.dot_dimension_numbers<[1], [0], [0], [1], [0, 0, 1, 1], [], []>} : vector<16x16xbf16>, vector<16x128xbf16>, vector<16x128xf32> -> vector<16x128xf32>
    %105 = arith.addf %100, %104 : vector<16x128xf32>
    %c3_47 = arith.constant 3 : index
    %c0_48 = arith.constant 0 : index
    %c0_49 = arith.constant 0 : index
    %106 = vector.load %arg4[%c3_47, %c0_48, %c0_49] : memref<9x16x4xbf16, #tpu.memory_space<vmem>>, vector<1x16x4xbf16>
    %107 = vector.shape_cast %106 : vector<1x16x4xbf16> to vector<16x4xbf16>
    %108 = vector.extract_strided_slice %69 {offsets = [0, 10], sizes = [4, 128], strides = [1, 1]} : vector<4x150xbf16> to vector<4x128xbf16>
    %cst_50 = arith.constant dense<0.000000e+00> : vector<16x128xf32>
    %109 = tpu.matmul %107, %108, %cst_50 {dimension_numbers = #tpu.dot_dimension_numbers<[1], [0], [0], [1], [0, 0, 1, 1], [], []>} : vector<16x4xbf16>, vector<4x128xbf16>, vector<16x128xf32> -> vector<16x128xf32>
    %110 = arith.addf %105, %109 : vector<16x128xf32>
    %c4 = arith.constant 4 : index
    %c0_51 = arith.constant 0 : index
    %c0_52 = arith.constant 0 : index
    %111 = vector.load %arg3[%c4, %c0_51, %c0_52] : memref<9x16x16xbf16, #tpu.memory_space<vmem>>, vector<1x16x16xbf16>
    %112 = vector.shape_cast %111 : vector<1x16x16xbf16> to vector<16x16xbf16>
    %113 = vector.extract_strided_slice %46 {offsets = [0, 11], sizes = [16, 128], strides = [1, 1]} : vector<16x150xbf16> to vector<16x128xbf16>
    %cst_53 = arith.constant dense<0.000000e+00> : vector<16x128xf32>
    %114 = tpu.matmul %112, %113, %cst_53 {dimension_numbers = #tpu.dot_dimension_numbers<[1], [0], [0], [1], [0, 0, 1, 1], [], []>} : vector<16x16xbf16>, vector<16x128xbf16>, vector<16x128xf32> -> vector<16x128xf32>
    %115 = arith.addf %110, %114 : vector<16x128xf32>
    %c4_54 = arith.constant 4 : index
    %c0_55 = arith.constant 0 : index
    %c0_56 = arith.constant 0 : index
    %116 = vector.load %arg4[%c4_54, %c0_55, %c0_56] : memref<9x16x4xbf16, #tpu.memory_space<vmem>>, vector<1x16x4xbf16>
    %117 = vector.shape_cast %116 : vector<1x16x4xbf16> to vector<16x4xbf16>
    %118 = vector.extract_strided_slice %69 {offsets = [0, 11], sizes = [4, 128], strides = [1, 1]} : vector<4x150xbf16> to vector<4x128xbf16>
    %cst_57 = arith.constant dense<0.000000e+00> : vector<16x128xf32>
    %119 = tpu.matmul %117, %118, %cst_57 {dimension_numbers = #tpu.dot_dimension_numbers<[1], [0], [0], [1], [0, 0, 1, 1], [], []>} : vector<16x4xbf16>, vector<4x128xbf16>, vector<16x128xf32> -> vector<16x128xf32>
    %120 = arith.addf %115, %119 : vector<16x128xf32>
    %c5 = arith.constant 5 : index
    %c0_58 = arith.constant 0 : index
    %c0_59 = arith.constant 0 : index
    %121 = vector.load %arg3[%c5, %c0_58, %c0_59] : memref<9x16x16xbf16, #tpu.memory_space<vmem>>, vector<1x16x16xbf16>
    %122 = vector.shape_cast %121 : vector<1x16x16xbf16> to vector<16x16xbf16>
    %123 = vector.extract_strided_slice %46 {offsets = [0, 12], sizes = [16, 128], strides = [1, 1]} : vector<16x150xbf16> to vector<16x128xbf16>
    %cst_60 = arith.constant dense<0.000000e+00> : vector<16x128xf32>
    %124 = tpu.matmul %122, %123, %cst_60 {dimension_numbers = #tpu.dot_dimension_numbers<[1], [0], [0], [1], [0, 0, 1, 1], [], []>} : vector<16x16xbf16>, vector<16x128xbf16>, vector<16x128xf32> -> vector<16x128xf32>
    %125 = arith.addf %120, %124 : vector<16x128xf32>
    %c5_61 = arith.constant 5 : index
    %c0_62 = arith.constant 0 : index
    %c0_63 = arith.constant 0 : index
    %126 = vector.load %arg4[%c5_61, %c0_62, %c0_63] : memref<9x16x4xbf16, #tpu.memory_space<vmem>>, vector<1x16x4xbf16>
    %127 = vector.shape_cast %126 : vector<1x16x4xbf16> to vector<16x4xbf16>
    %128 = vector.extract_strided_slice %69 {offsets = [0, 12], sizes = [4, 128], strides = [1, 1]} : vector<4x150xbf16> to vector<4x128xbf16>
    %cst_64 = arith.constant dense<0.000000e+00> : vector<16x128xf32>
    %129 = tpu.matmul %127, %128, %cst_64 {dimension_numbers = #tpu.dot_dimension_numbers<[1], [0], [0], [1], [0, 0, 1, 1], [], []>} : vector<16x4xbf16>, vector<4x128xbf16>, vector<16x128xf32> -> vector<16x128xf32>
    %130 = arith.addf %125, %129 : vector<16x128xf32>
    %c6 = arith.constant 6 : index
    %c0_65 = arith.constant 0 : index
    %c0_66 = arith.constant 0 : index
    %131 = vector.load %arg3[%c6, %c0_65, %c0_66] : memref<9x16x16xbf16, #tpu.memory_space<vmem>>, vector<1x16x16xbf16>
    %132 = vector.shape_cast %131 : vector<1x16x16xbf16> to vector<16x16xbf16>
    %133 = vector.extract_strided_slice %46 {offsets = [0, 20], sizes = [16, 128], strides = [1, 1]} : vector<16x150xbf16> to vector<16x128xbf16>
    %cst_67 = arith.constant dense<0.000000e+00> : vector<16x128xf32>
    %134 = tpu.matmul %132, %133, %cst_67 {dimension_numbers = #tpu.dot_dimension_numbers<[1], [0], [0], [1], [0, 0, 1, 1], [], []>} : vector<16x16xbf16>, vector<16x128xbf16>, vector<16x128xf32> -> vector<16x128xf32>
    %135 = arith.addf %130, %134 : vector<16x128xf32>
    %c6_68 = arith.constant 6 : index
    %c0_69 = arith.constant 0 : index
    %c0_70 = arith.constant 0 : index
    %136 = vector.load %arg4[%c6_68, %c0_69, %c0_70] : memref<9x16x4xbf16, #tpu.memory_space<vmem>>, vector<1x16x4xbf16>
    %137 = vector.shape_cast %136 : vector<1x16x4xbf16> to vector<16x4xbf16>
    %138 = vector.extract_strided_slice %69 {offsets = [0, 20], sizes = [4, 128], strides = [1, 1]} : vector<4x150xbf16> to vector<4x128xbf16>
    %cst_71 = arith.constant dense<0.000000e+00> : vector<16x128xf32>
    %139 = tpu.matmul %137, %138, %cst_71 {dimension_numbers = #tpu.dot_dimension_numbers<[1], [0], [0], [1], [0, 0, 1, 1], [], []>} : vector<16x4xbf16>, vector<4x128xbf16>, vector<16x128xf32> -> vector<16x128xf32>
    %140 = arith.addf %135, %139 : vector<16x128xf32>
    %c7 = arith.constant 7 : index
    %c0_72 = arith.constant 0 : index
    %c0_73 = arith.constant 0 : index
    %141 = vector.load %arg3[%c7, %c0_72, %c0_73] : memref<9x16x16xbf16, #tpu.memory_space<vmem>>, vector<1x16x16xbf16>
    %142 = vector.shape_cast %141 : vector<1x16x16xbf16> to vector<16x16xbf16>
    %143 = vector.extract_strided_slice %46 {offsets = [0, 21], sizes = [16, 128], strides = [1, 1]} : vector<16x150xbf16> to vector<16x128xbf16>
    %cst_74 = arith.constant dense<0.000000e+00> : vector<16x128xf32>
    %144 = tpu.matmul %142, %143, %cst_74 {dimension_numbers = #tpu.dot_dimension_numbers<[1], [0], [0], [1], [0, 0, 1, 1], [], []>} : vector<16x16xbf16>, vector<16x128xbf16>, vector<16x128xf32> -> vector<16x128xf32>
    %145 = arith.addf %140, %144 : vector<16x128xf32>
    %c7_75 = arith.constant 7 : index
    %c0_76 = arith.constant 0 : index
    %c0_77 = arith.constant 0 : index
    %146 = vector.load %arg4[%c7_75, %c0_76, %c0_77] : memref<9x16x4xbf16, #tpu.memory_space<vmem>>, vector<1x16x4xbf16>
    %147 = vector.shape_cast %146 : vector<1x16x4xbf16> to vector<16x4xbf16>
    %148 = vector.extract_strided_slice %69 {offsets = [0, 21], sizes = [4, 128], strides = [1, 1]} : vector<4x150xbf16> to vector<4x128xbf16>
    %cst_78 = arith.constant dense<0.000000e+00> : vector<16x128xf32>
    %149 = tpu.matmul %147, %148, %cst_78 {dimension_numbers = #tpu.dot_dimension_numbers<[1], [0], [0], [1], [0, 0, 1, 1], [], []>} : vector<16x4xbf16>, vector<4x128xbf16>, vector<16x128xf32> -> vector<16x128xf32>
    %150 = arith.addf %145, %149 : vector<16x128xf32>
    %c8 = arith.constant 8 : index
    %c0_79 = arith.constant 0 : index
    %c0_80 = arith.constant 0 : index
    %151 = vector.load %arg3[%c8, %c0_79, %c0_80] : memref<9x16x16xbf16, #tpu.memory_space<vmem>>, vector<1x16x16xbf16>
    %152 = vector.shape_cast %151 : vector<1x16x16xbf16> to vector<16x16xbf16>
    %153 = vector.extract_strided_slice %46 {offsets = [0, 22], sizes = [16, 128], strides = [1, 1]} : vector<16x150xbf16> to vector<16x128xbf16>
    %cst_81 = arith.constant dense<0.000000e+00> : vector<16x128xf32>
    %154 = tpu.matmul %152, %153, %cst_81 {dimension_numbers = #tpu.dot_dimension_numbers<[1], [0], [0], [1], [0, 0, 1, 1], [], []>} : vector<16x16xbf16>, vector<16x128xbf16>, vector<16x128xf32> -> vector<16x128xf32>
    %155 = arith.addf %150, %154 : vector<16x128xf32>
    %c8_82 = arith.constant 8 : index
    %c0_83 = arith.constant 0 : index
    %c0_84 = arith.constant 0 : index
    %156 = vector.load %arg4[%c8_82, %c0_83, %c0_84] : memref<9x16x4xbf16, #tpu.memory_space<vmem>>, vector<1x16x4xbf16>
    %157 = vector.shape_cast %156 : vector<1x16x4xbf16> to vector<16x4xbf16>
    %158 = vector.extract_strided_slice %69 {offsets = [0, 22], sizes = [4, 128], strides = [1, 1]} : vector<4x150xbf16> to vector<4x128xbf16>
    %cst_85 = arith.constant dense<0.000000e+00> : vector<16x128xf32>
    %159 = tpu.matmul %157, %158, %cst_85 {dimension_numbers = #tpu.dot_dimension_numbers<[1], [0], [0], [1], [0, 0, 1, 1], [], []>} : vector<16x4xbf16>, vector<4x128xbf16>, vector<16x128xf32> -> vector<16x128xf32>
    %160 = arith.addf %155, %159 : vector<16x128xf32>
    %161 = tpu.iota {dimensions = array<i32: 1>} : vector<1x128xi32>
    %162 = arith.sitofp %161 : vector<1x128xi32> to vector<1x128xf32>
    %cst_86 = arith.constant 5.000000e-01 : f32
    %163 = vector.broadcast %cst_86 : f32 to vector<1x128xf32>
    %164 = arith.addf %162, %163 : vector<1x128xf32>
    %cst_87 = arith.constant 1.000000e-01 : f32
    %165 = vector.broadcast %cst_87 : f32 to vector<1x128xf32>
    %166 = arith.mulf %164, %165 : vector<1x128xf32>
    %167 = math.floor %166 : vector<1x128xf32>
    %cst_88 = arith.constant 1.000000e+01 : f32
    %168 = vector.broadcast %cst_88 : f32 to vector<1x128xf32>
    %169 = arith.mulf %167, %168 : vector<1x128xf32>
    %170 = arith.subf %162, %169 : vector<1x128xf32>
    %cst_89 = arith.constant 8.000000e+00 : f32
    %171 = vector.broadcast %cst_89 : f32 to vector<1x128xf32>
    %172 = arith.cmpf olt, %170, %171 : vector<1x128xf32>
    %cst_90 = arith.constant 8.000000e+01 : f32
    %173 = vector.broadcast %cst_90 : f32 to vector<1x128xf32>
    %174 = arith.cmpf olt, %162, %173 : vector<1x128xf32>
    %175 = arith.andi %172, %174 : vector<1x128xi1>
    %cst_91 = arith.constant 1.000000e+00 : f32
    %cst_92 = arith.constant 0.000000e+00 : f32
    %176 = vector.broadcast %cst_91 : f32 to vector<1x128xf32>
    %177 = vector.broadcast %cst_92 : f32 to vector<1x128xf32>
    %178 = arith.select %175, %176, %177 : vector<1x128xi1>, vector<1x128xf32>
    %179 = vector.broadcast %178 : vector<1x128xf32> to vector<16x128xf32>
    %180 = arith.mulf %160, %179 : vector<16x128xf32>
    %cst_93 = arith.constant dense<0.000000e+00> : vector<16xf32>
    %181 = vector.multi_reduction <add>, %180, %cst_93 [1] : vector<16x128xf32> to vector<16xf32>
    %182 = vector.shape_cast %181 : vector<16xf32> to vector<16x1xf32>
    %cst_94 = arith.constant 6.400000e+01 : f32
    %183 = vector.broadcast %cst_94 : f32 to vector<16x1xf32>
    %184 = arith.divf %182, %183 : vector<16x1xf32>
    %185 = vector.broadcast %184 : vector<16x1xf32> to vector<16x128xf32>
    %186 = arith.subf %160, %185 : vector<16x128xf32>
    %187 = arith.mulf %186, %186 : vector<16x128xf32>
    %188 = vector.broadcast %178 : vector<1x128xf32> to vector<16x128xf32>
    %189 = arith.mulf %187, %188 : vector<16x128xf32>
    %cst_95 = arith.constant dense<0.000000e+00> : vector<16xf32>
    %190 = vector.multi_reduction <add>, %189, %cst_95 [1] : vector<16x128xf32> to vector<16xf32>
    %191 = vector.shape_cast %190 : vector<16xf32> to vector<16x1xf32>
    %cst_96 = arith.constant 6.400000e+01 : f32
    %192 = vector.broadcast %cst_96 : f32 to vector<16x1xf32>
    %193 = arith.divf %191, %192 : vector<16x1xf32>
    %cst_97 = arith.constant 9.99999974E-6 : f32
    %194 = vector.broadcast %cst_97 : f32 to vector<16x1xf32>
    %195 = arith.addf %193, %194 : vector<16x1xf32>
    %196 = math.rsqrt %195 : vector<16x1xf32>
    %197 = vector.broadcast %196 : vector<16x1xf32> to vector<16x128xf32>
    %198 = arith.mulf %186, %197 : vector<16x128xf32>
    %cst_98 = arith.constant 0.000000e+00 : f32
    %199 = vector.broadcast %cst_98 : f32 to vector<16x128xf32>
    %200 = arith.cmpf oge, %198, %199 : vector<16x128xf32>
    %cst_99 = arith.constant 2.000000e-01 : f32
    %201 = vector.broadcast %cst_99 : f32 to vector<16x128xf32>
    %202 = arith.mulf %201, %198 : vector<16x128xf32>
    %203 = arith.select %200, %198, %202 : vector<16x128xi1>, vector<16x128xf32>
    %c0_100 = arith.constant 0 : index
    %c0_101 = arith.constant 0 : index
    %204 = vector.load %arg5[%c0_100, %c0_101] : memref<16x16xbf16, #tpu.memory_space<vmem>>, vector<16x16xbf16>
    %205 = arith.truncf %203 : vector<16x128xf32> to vector<16x128xbf16>
    %cst_102 = arith.constant dense<0.000000e+00> : vector<16x128xf32>
    %206 = tpu.matmul %204, %205, %cst_102 {dimension_numbers = #tpu.dot_dimension_numbers<[1], [0], [0], [1], [0, 0, 1, 1], [], []>} : vector<16x16xbf16>, vector<16x128xbf16>, vector<16x128xf32> -> vector<16x128xf32>
    %207 = vector.broadcast %178 : vector<1x128xf32> to vector<16x128xf32>
    %208 = arith.mulf %206, %207 : vector<16x128xf32>
    %cst_103 = arith.constant dense<0.000000e+00> : vector<16xf32>
    %209 = vector.multi_reduction <add>, %208, %cst_103 [1] : vector<16x128xf32> to vector<16xf32>
    %210 = vector.shape_cast %209 : vector<16xf32> to vector<16x1xf32>
    %cst_104 = arith.constant 6.400000e+01 : f32
    %211 = vector.broadcast %cst_104 : f32 to vector<16x1xf32>
    %212 = arith.divf %210, %211 : vector<16x1xf32>
    %213 = vector.broadcast %212 : vector<16x1xf32> to vector<16x128xf32>
    %214 = arith.subf %206, %213 : vector<16x128xf32>
    %215 = arith.mulf %214, %214 : vector<16x128xf32>
    %216 = vector.broadcast %178 : vector<1x128xf32> to vector<16x128xf32>
    %217 = arith.mulf %215, %216 : vector<16x128xf32>
    %cst_105 = arith.constant dense<0.000000e+00> : vector<16xf32>
    %218 = vector.multi_reduction <add>, %217, %cst_105 [1] : vector<16x128xf32> to vector<16xf32>
    %219 = vector.shape_cast %218 : vector<16xf32> to vector<16x1xf32>
    %cst_106 = arith.constant 6.400000e+01 : f32
    %220 = vector.broadcast %cst_106 : f32 to vector<16x1xf32>
    %221 = arith.divf %219, %220 : vector<16x1xf32>
    %cst_107 = arith.constant 9.99999974E-6 : f32
    %222 = vector.broadcast %cst_107 : f32 to vector<16x1xf32>
    %223 = arith.addf %221, %222 : vector<16x1xf32>
    %224 = math.rsqrt %223 : vector<16x1xf32>
    %225 = vector.broadcast %224 : vector<16x1xf32> to vector<16x128xf32>
    %226 = arith.mulf %214, %225 : vector<16x128xf32>
    %cst_108 = arith.constant 0.000000e+00 : f32
    %227 = vector.broadcast %cst_108 : f32 to vector<16x128xf32>
    %228 = arith.cmpf oge, %226, %227 : vector<16x128xf32>
    %cst_109 = arith.constant 2.000000e-01 : f32
    %229 = vector.broadcast %cst_109 : f32 to vector<16x128xf32>
    %230 = arith.mulf %229, %226 : vector<16x128xf32>
    %231 = arith.select %228, %226, %230 : vector<16x128xi1>, vector<16x128xf32>
    %232 = arith.truncf %231 : vector<16x128xf32> to vector<16x128xbf16>
    %c0_110 = arith.constant 0 : index
    %c0_111 = arith.constant 0 : index
    %233 = vector.load %arg6[%c0_110, %c0_111] : memref<16x128xbf16, #tpu.memory_space<vmem>>, vector<16x128xbf16>
    tpu.vector_store %arg6[%c0_110, %c0_111], %232 {strides = array<i32>} : memref<16x128xbf16, #tpu.memory_space<vmem>>, vector<16x128xbf16>,
    return
  }
  func.func @transform_0(%arg0: i32) -> (i32, i32) {
    %c0_i32 = arith.constant 0 : i32
    %c0_i32_0 = arith.constant 0 : i32
    %c0_i32_1 = arith.constant 0 : i32
    return %c0_i32, %c0_i32_0 : i32, i32
  }
  func.func @transform_1(%arg0: i32) -> (i32, i32) {
    %c0_i32 = arith.constant 0 : i32
    %c0_i32_0 = arith.constant 0 : i32
    %c0_i32_1 = arith.constant 0 : i32
    return %c0_i32, %c0_i32_0 : i32, i32
  }
  func.func @transform_2(%arg0: i32) -> (i32, i32, i32) {
    %c0_i32 = arith.constant 0 : i32
    %c0_i32_0 = arith.constant 0 : i32
    %c0_i32_1 = arith.constant 0 : i32
    %c0_i32_2 = arith.constant 0 : i32
    return %c0_i32, %c0_i32_0, %c0_i32_1 : i32, i32, i32
  }
  func.func @transform_3(%arg0: i32) -> (i32, i32, i32) {
    %c0_i32 = arith.constant 0 : i32
    %c0_i32_0 = arith.constant 0 : i32
    %c0_i32_1 = arith.constant 0 : i32
    %c0_i32_2 = arith.constant 0 : i32
    return %c0_i32, %c0_i32_0, %c0_i32_1 : i32, i32, i32
  }
  func.func @transform_4(%arg0: i32) -> (i32, i32) {
    %c0_i32 = arith.constant 0 : i32
    %c0_i32_0 = arith.constant 0 : i32
    %c0_i32_1 = arith.constant 0 : i32
    return %c0_i32, %c0_i32_0 : i32, i32
  }
  func.func @transform_5(%arg0: i32) -> (i32, i32) {
    %c0_i32 = arith.constant 0 : i32
    %c0_i32_0 = arith.constant 0 : i32
    %c0_i32_1 = arith.constant 0 : i32
    return %c0_i32, %c0_i32_0 : i32, i32
  }
}

module attributes {stable_mosaic.version = 11 : i64} {
  func.func @kernel(%arg0: i32, %arg1: memref<16x422xbf16, #tpu.memory_space<vmem>>, %arg2: memref<4x422xbf16, #tpu.memory_space<vmem>>, %arg3: memref<9x8x16xbf16, #tpu.memory_space<vmem>>, %arg4: memref<9x8x4xbf16, #tpu.memory_space<vmem>>, %arg5: memref<8x8xbf16, #tpu.memory_space<vmem>>, %arg6: memref<8x384xbf16, #tpu.memory_space<vmem>>) attributes {dimension_semantics = [#tpu.dimension_semantics<arbitrary>], iteration_bounds = array<i64: 1>, scalar_prefetch = 0 : i64, scratch_operands = 0 : i64, tpu.core_type = #tpu.core_type<tc>, window_params = [{pipeline_mode = #tpu.pipeline_mode<synchronous>, transform_indices = @transform_0, window_bounds = array<i64: 16, 422>}, {pipeline_mode = #tpu.pipeline_mode<synchronous>, transform_indices = @transform_1, window_bounds = array<i64: 4, 422>}, {pipeline_mode = #tpu.pipeline_mode<synchronous>, transform_indices = @transform_2, window_bounds = array<i64: 9, 8, 16>}, {pipeline_mode = #tpu.pipeline_mode<synchronous>, transform_indices = @transform_3, window_bounds = array<i64: 9, 8, 4>}, {pipeline_mode = #tpu.pipeline_mode<synchronous>, transform_indices = @transform_4, window_bounds = array<i64: 8, 8>}, {pipeline_mode = #tpu.pipeline_mode<synchronous>, transform_indices = @transform_5, window_bounds = array<i64: 8, 384>}]} {
    %0 = tpu.iota {dimensions = array<i32: 1>} : vector<1x422xi32>
    %1 = arith.sitofp %0 : vector<1x422xi32> to vector<1x422xf32>
    %cst = arith.constant 5.000000e-01 : f32
    %2 = vector.broadcast %cst : f32 to vector<1x422xf32>
    %3 = arith.addf %1, %2 : vector<1x422xf32>
    %cst_0 = arith.constant 0.055555556 : f32
    %4 = vector.broadcast %cst_0 : f32 to vector<1x422xf32>
    %5 = arith.mulf %3, %4 : vector<1x422xf32>
    %6 = math.floor %5 : vector<1x422xf32>
    %cst_1 = arith.constant 1.800000e+01 : f32
    %7 = vector.broadcast %cst_1 : f32 to vector<1x422xf32>
    %8 = arith.mulf %6, %7 : vector<1x422xf32>
    %9 = arith.subf %1, %8 : vector<1x422xf32>
    %cst_2 = arith.constant 1.000000e+00 : f32
    %10 = vector.broadcast %cst_2 : f32 to vector<1x422xf32>
    %11 = arith.cmpf oge, %6, %10 : vector<1x422xf32>
    %cst_3 = arith.constant 1.700000e+01 : f32
    %12 = vector.broadcast %cst_3 : f32 to vector<1x422xf32>
    %13 = arith.cmpf olt, %6, %12 : vector<1x422xf32>
    %14 = arith.andi %11, %13 : vector<1x422xi1>
    %cst_4 = arith.constant 1.000000e+00 : f32
    %15 = vector.broadcast %cst_4 : f32 to vector<1x422xf32>
    %16 = arith.cmpf oge, %9, %15 : vector<1x422xf32>
    %17 = arith.andi %14, %16 : vector<1x422xi1>
    %cst_5 = arith.constant 1.700000e+01 : f32
    %18 = vector.broadcast %cst_5 : f32 to vector<1x422xf32>
    %19 = arith.cmpf olt, %9, %18 : vector<1x422xf32>
    %20 = arith.andi %17, %19 : vector<1x422xi1>
    %cst_6 = arith.constant 1.000000e+00 : f32
    %cst_7 = arith.constant 0.000000e+00 : f32
    %21 = vector.broadcast %cst_6 : f32 to vector<1x422xf32>
    %22 = vector.broadcast %cst_7 : f32 to vector<1x422xf32>
    %23 = arith.select %20, %21, %22 : vector<1x422xi1>, vector<1x422xf32>
    %c0 = arith.constant 0 : index
    %c0_8 = arith.constant 0 : index
    %24 = vector.load %arg1[%c0, %c0_8] : memref<16x422xbf16, #tpu.memory_space<vmem>>, vector<16x422xbf16>
    %25 = arith.extf %24 : vector<16x422xbf16> to vector<16x422xf32>
    %26 = vector.broadcast %23 : vector<1x422xf32> to vector<16x422xf32>
    %27 = arith.mulf %25, %26 : vector<16x422xf32>
    %cst_9 = arith.constant dense<0.000000e+00> : vector<16xf32>
    %28 = vector.multi_reduction <add>, %27, %cst_9 [1] : vector<16x422xf32> to vector<16xf32>
    %29 = vector.shape_cast %28 : vector<16xf32> to vector<16x1xf32>
    %cst_10 = arith.constant 2.560000e+02 : f32
    %30 = vector.broadcast %cst_10 : f32 to vector<16x1xf32>
    %31 = arith.divf %29, %30 : vector<16x1xf32>
    %32 = vector.broadcast %31 : vector<16x1xf32> to vector<16x422xf32>
    %33 = arith.subf %25, %32 : vector<16x422xf32>
    %34 = arith.mulf %33, %33 : vector<16x422xf32>
    %35 = vector.broadcast %23 : vector<1x422xf32> to vector<16x422xf32>
    %36 = arith.mulf %34, %35 : vector<16x422xf32>
    %cst_11 = arith.constant dense<0.000000e+00> : vector<16xf32>
    %37 = vector.multi_reduction <add>, %36, %cst_11 [1] : vector<16x422xf32> to vector<16xf32>
    %38 = vector.shape_cast %37 : vector<16xf32> to vector<16x1xf32>
    %cst_12 = arith.constant 2.560000e+02 : f32
    %39 = vector.broadcast %cst_12 : f32 to vector<16x1xf32>
    %40 = arith.divf %38, %39 : vector<16x1xf32>
    %cst_13 = arith.constant 9.99999974E-6 : f32
    %41 = vector.broadcast %cst_13 : f32 to vector<16x1xf32>
    %42 = arith.addf %40, %41 : vector<16x1xf32>
    %43 = math.rsqrt %42 : vector<16x1xf32>
    %44 = vector.broadcast %43 : vector<16x1xf32> to vector<16x422xf32>
    %45 = arith.mulf %33, %44 : vector<16x422xf32>
    %46 = arith.truncf %45 : vector<16x422xf32> to vector<16x422xbf16>
    %c0_14 = arith.constant 0 : index
    %c0_15 = arith.constant 0 : index
    %47 = vector.load %arg2[%c0_14, %c0_15] : memref<4x422xbf16, #tpu.memory_space<vmem>>, vector<4x422xbf16>
    %48 = arith.extf %47 : vector<4x422xbf16> to vector<4x422xf32>
    %49 = vector.broadcast %23 : vector<1x422xf32> to vector<4x422xf32>
    %50 = arith.mulf %48, %49 : vector<4x422xf32>
    %cst_16 = arith.constant dense<0.000000e+00> : vector<4xf32>
    %51 = vector.multi_reduction <add>, %50, %cst_16 [1] : vector<4x422xf32> to vector<4xf32>
    %52 = vector.shape_cast %51 : vector<4xf32> to vector<4x1xf32>
    %cst_17 = arith.constant 2.560000e+02 : f32
    %53 = vector.broadcast %cst_17 : f32 to vector<4x1xf32>
    %54 = arith.divf %52, %53 : vector<4x1xf32>
    %55 = vector.broadcast %54 : vector<4x1xf32> to vector<4x422xf32>
    %56 = arith.subf %48, %55 : vector<4x422xf32>
    %57 = arith.mulf %56, %56 : vector<4x422xf32>
    %58 = vector.broadcast %23 : vector<1x422xf32> to vector<4x422xf32>
    %59 = arith.mulf %57, %58 : vector<4x422xf32>
    %cst_18 = arith.constant dense<0.000000e+00> : vector<4xf32>
    %60 = vector.multi_reduction <add>, %59, %cst_18 [1] : vector<4x422xf32> to vector<4xf32>
    %61 = vector.shape_cast %60 : vector<4xf32> to vector<4x1xf32>
    %cst_19 = arith.constant 2.560000e+02 : f32
    %62 = vector.broadcast %cst_19 : f32 to vector<4x1xf32>
    %63 = arith.divf %61, %62 : vector<4x1xf32>
    %cst_20 = arith.constant 9.99999974E-6 : f32
    %64 = vector.broadcast %cst_20 : f32 to vector<4x1xf32>
    %65 = arith.addf %63, %64 : vector<4x1xf32>
    %66 = math.rsqrt %65 : vector<4x1xf32>
    %67 = vector.broadcast %66 : vector<4x1xf32> to vector<4x422xf32>
    %68 = arith.mulf %56, %67 : vector<4x422xf32>
    %69 = arith.truncf %68 : vector<4x422xf32> to vector<4x422xbf16>
    %cst_21 = arith.constant 0.000000e+00 : f32
    %70 = vector.broadcast %cst_21 : f32 to vector<8x384xf32>
    %c0_22 = arith.constant 0 : index
    %c0_23 = arith.constant 0 : index
    %c0_24 = arith.constant 0 : index
    %71 = vector.load %arg3[%c0_22, %c0_23, %c0_24] : memref<9x8x16xbf16, #tpu.memory_space<vmem>>, vector<1x8x16xbf16>
    %72 = vector.shape_cast %71 : vector<1x8x16xbf16> to vector<8x16xbf16>
    %73 = vector.extract_strided_slice %46 {offsets = [0, 0], sizes = [16, 384], strides = [1, 1]} : vector<16x422xbf16> to vector<16x384xbf16>
    %cst_25 = arith.constant dense<0.000000e+00> : vector<8x384xf32>
    %74 = tpu.matmul %72, %73, %cst_25 {dimension_numbers = #tpu.dot_dimension_numbers<[1], [0], [0], [1], [0, 0, 1, 1], [], []>} : vector<8x16xbf16>, vector<16x384xbf16>, vector<8x384xf32> -> vector<8x384xf32>
    %75 = arith.addf %70, %74 : vector<8x384xf32>
    %c0_26 = arith.constant 0 : index
    %c0_27 = arith.constant 0 : index
    %c0_28 = arith.constant 0 : index
    %76 = vector.load %arg4[%c0_26, %c0_27, %c0_28] : memref<9x8x4xbf16, #tpu.memory_space<vmem>>, vector<1x8x4xbf16>
    %77 = vector.shape_cast %76 : vector<1x8x4xbf16> to vector<8x4xbf16>
    %78 = vector.extract_strided_slice %69 {offsets = [0, 0], sizes = [4, 384], strides = [1, 1]} : vector<4x422xbf16> to vector<4x384xbf16>
    %cst_29 = arith.constant dense<0.000000e+00> : vector<8x384xf32>
    %79 = tpu.matmul %77, %78, %cst_29 {dimension_numbers = #tpu.dot_dimension_numbers<[1], [0], [0], [1], [0, 0, 1, 1], [], []>} : vector<8x4xbf16>, vector<4x384xbf16>, vector<8x384xf32> -> vector<8x384xf32>
    %80 = arith.addf %75, %79 : vector<8x384xf32>
    %c1 = arith.constant 1 : index
    %c0_30 = arith.constant 0 : index
    %c0_31 = arith.constant 0 : index
    %81 = vector.load %arg3[%c1, %c0_30, %c0_31] : memref<9x8x16xbf16, #tpu.memory_space<vmem>>, vector<1x8x16xbf16>
    %82 = vector.shape_cast %81 : vector<1x8x16xbf16> to vector<8x16xbf16>
    %83 = vector.extract_strided_slice %46 {offsets = [0, 1], sizes = [16, 384], strides = [1, 1]} : vector<16x422xbf16> to vector<16x384xbf16>
    %cst_32 = arith.constant dense<0.000000e+00> : vector<8x384xf32>
    %84 = tpu.matmul %82, %83, %cst_32 {dimension_numbers = #tpu.dot_dimension_numbers<[1], [0], [0], [1], [0, 0, 1, 1], [], []>} : vector<8x16xbf16>, vector<16x384xbf16>, vector<8x384xf32> -> vector<8x384xf32>
    %85 = arith.addf %80, %84 : vector<8x384xf32>
    %c1_33 = arith.constant 1 : index
    %c0_34 = arith.constant 0 : index
    %c0_35 = arith.constant 0 : index
    %86 = vector.load %arg4[%c1_33, %c0_34, %c0_35] : memref<9x8x4xbf16, #tpu.memory_space<vmem>>, vector<1x8x4xbf16>
    %87 = vector.shape_cast %86 : vector<1x8x4xbf16> to vector<8x4xbf16>
    %88 = vector.extract_strided_slice %69 {offsets = [0, 1], sizes = [4, 384], strides = [1, 1]} : vector<4x422xbf16> to vector<4x384xbf16>
    %cst_36 = arith.constant dense<0.000000e+00> : vector<8x384xf32>
    %89 = tpu.matmul %87, %88, %cst_36 {dimension_numbers = #tpu.dot_dimension_numbers<[1], [0], [0], [1], [0, 0, 1, 1], [], []>} : vector<8x4xbf16>, vector<4x384xbf16>, vector<8x384xf32> -> vector<8x384xf32>
    %90 = arith.addf %85, %89 : vector<8x384xf32>
    %c2 = arith.constant 2 : index
    %c0_37 = arith.constant 0 : index
    %c0_38 = arith.constant 0 : index
    %91 = vector.load %arg3[%c2, %c0_37, %c0_38] : memref<9x8x16xbf16, #tpu.memory_space<vmem>>, vector<1x8x16xbf16>
    %92 = vector.shape_cast %91 : vector<1x8x16xbf16> to vector<8x16xbf16>
    %93 = vector.extract_strided_slice %46 {offsets = [0, 2], sizes = [16, 384], strides = [1, 1]} : vector<16x422xbf16> to vector<16x384xbf16>
    %cst_39 = arith.constant dense<0.000000e+00> : vector<8x384xf32>
    %94 = tpu.matmul %92, %93, %cst_39 {dimension_numbers = #tpu.dot_dimension_numbers<[1], [0], [0], [1], [0, 0, 1, 1], [], []>} : vector<8x16xbf16>, vector<16x384xbf16>, vector<8x384xf32> -> vector<8x384xf32>
    %95 = arith.addf %90, %94 : vector<8x384xf32>
    %c2_40 = arith.constant 2 : index
    %c0_41 = arith.constant 0 : index
    %c0_42 = arith.constant 0 : index
    %96 = vector.load %arg4[%c2_40, %c0_41, %c0_42] : memref<9x8x4xbf16, #tpu.memory_space<vmem>>, vector<1x8x4xbf16>
    %97 = vector.shape_cast %96 : vector<1x8x4xbf16> to vector<8x4xbf16>
    %98 = vector.extract_strided_slice %69 {offsets = [0, 2], sizes = [4, 384], strides = [1, 1]} : vector<4x422xbf16> to vector<4x384xbf16>
    %cst_43 = arith.constant dense<0.000000e+00> : vector<8x384xf32>
    %99 = tpu.matmul %97, %98, %cst_43 {dimension_numbers = #tpu.dot_dimension_numbers<[1], [0], [0], [1], [0, 0, 1, 1], [], []>} : vector<8x4xbf16>, vector<4x384xbf16>, vector<8x384xf32> -> vector<8x384xf32>
    %100 = arith.addf %95, %99 : vector<8x384xf32>
    %c3 = arith.constant 3 : index
    %c0_44 = arith.constant 0 : index
    %c0_45 = arith.constant 0 : index
    %101 = vector.load %arg3[%c3, %c0_44, %c0_45] : memref<9x8x16xbf16, #tpu.memory_space<vmem>>, vector<1x8x16xbf16>
    %102 = vector.shape_cast %101 : vector<1x8x16xbf16> to vector<8x16xbf16>
    %103 = vector.extract_strided_slice %46 {offsets = [0, 18], sizes = [16, 384], strides = [1, 1]} : vector<16x422xbf16> to vector<16x384xbf16>
    %cst_46 = arith.constant dense<0.000000e+00> : vector<8x384xf32>
    %104 = tpu.matmul %102, %103, %cst_46 {dimension_numbers = #tpu.dot_dimension_numbers<[1], [0], [0], [1], [0, 0, 1, 1], [], []>} : vector<8x16xbf16>, vector<16x384xbf16>, vector<8x384xf32> -> vector<8x384xf32>
    %105 = arith.addf %100, %104 : vector<8x384xf32>
    %c3_47 = arith.constant 3 : index
    %c0_48 = arith.constant 0 : index
    %c0_49 = arith.constant 0 : index
    %106 = vector.load %arg4[%c3_47, %c0_48, %c0_49] : memref<9x8x4xbf16, #tpu.memory_space<vmem>>, vector<1x8x4xbf16>
    %107 = vector.shape_cast %106 : vector<1x8x4xbf16> to vector<8x4xbf16>
    %108 = vector.extract_strided_slice %69 {offsets = [0, 18], sizes = [4, 384], strides = [1, 1]} : vector<4x422xbf16> to vector<4x384xbf16>
    %cst_50 = arith.constant dense<0.000000e+00> : vector<8x384xf32>
    %109 = tpu.matmul %107, %108, %cst_50 {dimension_numbers = #tpu.dot_dimension_numbers<[1], [0], [0], [1], [0, 0, 1, 1], [], []>} : vector<8x4xbf16>, vector<4x384xbf16>, vector<8x384xf32> -> vector<8x384xf32>
    %110 = arith.addf %105, %109 : vector<8x384xf32>
    %c4 = arith.constant 4 : index
    %c0_51 = arith.constant 0 : index
    %c0_52 = arith.constant 0 : index
    %111 = vector.load %arg3[%c4, %c0_51, %c0_52] : memref<9x8x16xbf16, #tpu.memory_space<vmem>>, vector<1x8x16xbf16>
    %112 = vector.shape_cast %111 : vector<1x8x16xbf16> to vector<8x16xbf16>
    %113 = vector.extract_strided_slice %46 {offsets = [0, 19], sizes = [16, 384], strides = [1, 1]} : vector<16x422xbf16> to vector<16x384xbf16>
    %cst_53 = arith.constant dense<0.000000e+00> : vector<8x384xf32>
    %114 = tpu.matmul %112, %113, %cst_53 {dimension_numbers = #tpu.dot_dimension_numbers<[1], [0], [0], [1], [0, 0, 1, 1], [], []>} : vector<8x16xbf16>, vector<16x384xbf16>, vector<8x384xf32> -> vector<8x384xf32>
    %115 = arith.addf %110, %114 : vector<8x384xf32>
    %c4_54 = arith.constant 4 : index
    %c0_55 = arith.constant 0 : index
    %c0_56 = arith.constant 0 : index
    %116 = vector.load %arg4[%c4_54, %c0_55, %c0_56] : memref<9x8x4xbf16, #tpu.memory_space<vmem>>, vector<1x8x4xbf16>
    %117 = vector.shape_cast %116 : vector<1x8x4xbf16> to vector<8x4xbf16>
    %118 = vector.extract_strided_slice %69 {offsets = [0, 19], sizes = [4, 384], strides = [1, 1]} : vector<4x422xbf16> to vector<4x384xbf16>
    %cst_57 = arith.constant dense<0.000000e+00> : vector<8x384xf32>
    %119 = tpu.matmul %117, %118, %cst_57 {dimension_numbers = #tpu.dot_dimension_numbers<[1], [0], [0], [1], [0, 0, 1, 1], [], []>} : vector<8x4xbf16>, vector<4x384xbf16>, vector<8x384xf32> -> vector<8x384xf32>
    %120 = arith.addf %115, %119 : vector<8x384xf32>
    %c5 = arith.constant 5 : index
    %c0_58 = arith.constant 0 : index
    %c0_59 = arith.constant 0 : index
    %121 = vector.load %arg3[%c5, %c0_58, %c0_59] : memref<9x8x16xbf16, #tpu.memory_space<vmem>>, vector<1x8x16xbf16>
    %122 = vector.shape_cast %121 : vector<1x8x16xbf16> to vector<8x16xbf16>
    %123 = vector.extract_strided_slice %46 {offsets = [0, 20], sizes = [16, 384], strides = [1, 1]} : vector<16x422xbf16> to vector<16x384xbf16>
    %cst_60 = arith.constant dense<0.000000e+00> : vector<8x384xf32>
    %124 = tpu.matmul %122, %123, %cst_60 {dimension_numbers = #tpu.dot_dimension_numbers<[1], [0], [0], [1], [0, 0, 1, 1], [], []>} : vector<8x16xbf16>, vector<16x384xbf16>, vector<8x384xf32> -> vector<8x384xf32>
    %125 = arith.addf %120, %124 : vector<8x384xf32>
    %c5_61 = arith.constant 5 : index
    %c0_62 = arith.constant 0 : index
    %c0_63 = arith.constant 0 : index
    %126 = vector.load %arg4[%c5_61, %c0_62, %c0_63] : memref<9x8x4xbf16, #tpu.memory_space<vmem>>, vector<1x8x4xbf16>
    %127 = vector.shape_cast %126 : vector<1x8x4xbf16> to vector<8x4xbf16>
    %128 = vector.extract_strided_slice %69 {offsets = [0, 20], sizes = [4, 384], strides = [1, 1]} : vector<4x422xbf16> to vector<4x384xbf16>
    %cst_64 = arith.constant dense<0.000000e+00> : vector<8x384xf32>
    %129 = tpu.matmul %127, %128, %cst_64 {dimension_numbers = #tpu.dot_dimension_numbers<[1], [0], [0], [1], [0, 0, 1, 1], [], []>} : vector<8x4xbf16>, vector<4x384xbf16>, vector<8x384xf32> -> vector<8x384xf32>
    %130 = arith.addf %125, %129 : vector<8x384xf32>
    %c6 = arith.constant 6 : index
    %c0_65 = arith.constant 0 : index
    %c0_66 = arith.constant 0 : index
    %131 = vector.load %arg3[%c6, %c0_65, %c0_66] : memref<9x8x16xbf16, #tpu.memory_space<vmem>>, vector<1x8x16xbf16>
    %132 = vector.shape_cast %131 : vector<1x8x16xbf16> to vector<8x16xbf16>
    %133 = vector.extract_strided_slice %46 {offsets = [0, 36], sizes = [16, 384], strides = [1, 1]} : vector<16x422xbf16> to vector<16x384xbf16>
    %cst_67 = arith.constant dense<0.000000e+00> : vector<8x384xf32>
    %134 = tpu.matmul %132, %133, %cst_67 {dimension_numbers = #tpu.dot_dimension_numbers<[1], [0], [0], [1], [0, 0, 1, 1], [], []>} : vector<8x16xbf16>, vector<16x384xbf16>, vector<8x384xf32> -> vector<8x384xf32>
    %135 = arith.addf %130, %134 : vector<8x384xf32>
    %c6_68 = arith.constant 6 : index
    %c0_69 = arith.constant 0 : index
    %c0_70 = arith.constant 0 : index
    %136 = vector.load %arg4[%c6_68, %c0_69, %c0_70] : memref<9x8x4xbf16, #tpu.memory_space<vmem>>, vector<1x8x4xbf16>
    %137 = vector.shape_cast %136 : vector<1x8x4xbf16> to vector<8x4xbf16>
    %138 = vector.extract_strided_slice %69 {offsets = [0, 36], sizes = [4, 384], strides = [1, 1]} : vector<4x422xbf16> to vector<4x384xbf16>
    %cst_71 = arith.constant dense<0.000000e+00> : vector<8x384xf32>
    %139 = tpu.matmul %137, %138, %cst_71 {dimension_numbers = #tpu.dot_dimension_numbers<[1], [0], [0], [1], [0, 0, 1, 1], [], []>} : vector<8x4xbf16>, vector<4x384xbf16>, vector<8x384xf32> -> vector<8x384xf32>
    %140 = arith.addf %135, %139 : vector<8x384xf32>
    %c7 = arith.constant 7 : index
    %c0_72 = arith.constant 0 : index
    %c0_73 = arith.constant 0 : index
    %141 = vector.load %arg3[%c7, %c0_72, %c0_73] : memref<9x8x16xbf16, #tpu.memory_space<vmem>>, vector<1x8x16xbf16>
    %142 = vector.shape_cast %141 : vector<1x8x16xbf16> to vector<8x16xbf16>
    %143 = vector.extract_strided_slice %46 {offsets = [0, 37], sizes = [16, 384], strides = [1, 1]} : vector<16x422xbf16> to vector<16x384xbf16>
    %cst_74 = arith.constant dense<0.000000e+00> : vector<8x384xf32>
    %144 = tpu.matmul %142, %143, %cst_74 {dimension_numbers = #tpu.dot_dimension_numbers<[1], [0], [0], [1], [0, 0, 1, 1], [], []>} : vector<8x16xbf16>, vector<16x384xbf16>, vector<8x384xf32> -> vector<8x384xf32>
    %145 = arith.addf %140, %144 : vector<8x384xf32>
    %c7_75 = arith.constant 7 : index
    %c0_76 = arith.constant 0 : index
    %c0_77 = arith.constant 0 : index
    %146 = vector.load %arg4[%c7_75, %c0_76, %c0_77] : memref<9x8x4xbf16, #tpu.memory_space<vmem>>, vector<1x8x4xbf16>
    %147 = vector.shape_cast %146 : vector<1x8x4xbf16> to vector<8x4xbf16>
    %148 = vector.extract_strided_slice %69 {offsets = [0, 37], sizes = [4, 384], strides = [1, 1]} : vector<4x422xbf16> to vector<4x384xbf16>
    %cst_78 = arith.constant dense<0.000000e+00> : vector<8x384xf32>
    %149 = tpu.matmul %147, %148, %cst_78 {dimension_numbers = #tpu.dot_dimension_numbers<[1], [0], [0], [1], [0, 0, 1, 1], [], []>} : vector<8x4xbf16>, vector<4x384xbf16>, vector<8x384xf32> -> vector<8x384xf32>
    %150 = arith.addf %145, %149 : vector<8x384xf32>
    %c8 = arith.constant 8 : index
    %c0_79 = arith.constant 0 : index
    %c0_80 = arith.constant 0 : index
    %151 = vector.load %arg3[%c8, %c0_79, %c0_80] : memref<9x8x16xbf16, #tpu.memory_space<vmem>>, vector<1x8x16xbf16>
    %152 = vector.shape_cast %151 : vector<1x8x16xbf16> to vector<8x16xbf16>
    %153 = vector.extract_strided_slice %46 {offsets = [0, 38], sizes = [16, 384], strides = [1, 1]} : vector<16x422xbf16> to vector<16x384xbf16>
    %cst_81 = arith.constant dense<0.000000e+00> : vector<8x384xf32>
    %154 = tpu.matmul %152, %153, %cst_81 {dimension_numbers = #tpu.dot_dimension_numbers<[1], [0], [0], [1], [0, 0, 1, 1], [], []>} : vector<8x16xbf16>, vector<16x384xbf16>, vector<8x384xf32> -> vector<8x384xf32>
    %155 = arith.addf %150, %154 : vector<8x384xf32>
    %c8_82 = arith.constant 8 : index
    %c0_83 = arith.constant 0 : index
    %c0_84 = arith.constant 0 : index
    %156 = vector.load %arg4[%c8_82, %c0_83, %c0_84] : memref<9x8x4xbf16, #tpu.memory_space<vmem>>, vector<1x8x4xbf16>
    %157 = vector.shape_cast %156 : vector<1x8x4xbf16> to vector<8x4xbf16>
    %158 = vector.extract_strided_slice %69 {offsets = [0, 38], sizes = [4, 384], strides = [1, 1]} : vector<4x422xbf16> to vector<4x384xbf16>
    %cst_85 = arith.constant dense<0.000000e+00> : vector<8x384xf32>
    %159 = tpu.matmul %157, %158, %cst_85 {dimension_numbers = #tpu.dot_dimension_numbers<[1], [0], [0], [1], [0, 0, 1, 1], [], []>} : vector<8x4xbf16>, vector<4x384xbf16>, vector<8x384xf32> -> vector<8x384xf32>
    %160 = arith.addf %155, %159 : vector<8x384xf32>
    %161 = tpu.iota {dimensions = array<i32: 1>} : vector<1x384xi32>
    %162 = arith.sitofp %161 : vector<1x384xi32> to vector<1x384xf32>
    %cst_86 = arith.constant 5.000000e-01 : f32
    %163 = vector.broadcast %cst_86 : f32 to vector<1x384xf32>
    %164 = arith.addf %162, %163 : vector<1x384xf32>
    %cst_87 = arith.constant 0.055555556 : f32
    %165 = vector.broadcast %cst_87 : f32 to vector<1x384xf32>
    %166 = arith.mulf %164, %165 : vector<1x384xf32>
    %167 = math.floor %166 : vector<1x384xf32>
    %cst_88 = arith.constant 1.800000e+01 : f32
    %168 = vector.broadcast %cst_88 : f32 to vector<1x384xf32>
    %169 = arith.mulf %167, %168 : vector<1x384xf32>
    %170 = arith.subf %162, %169 : vector<1x384xf32>
    %cst_89 = arith.constant 1.600000e+01 : f32
    %171 = vector.broadcast %cst_89 : f32 to vector<1x384xf32>
    %172 = arith.cmpf olt, %170, %171 : vector<1x384xf32>
    %cst_90 = arith.constant 2.880000e+02 : f32
    %173 = vector.broadcast %cst_90 : f32 to vector<1x384xf32>
    %174 = arith.cmpf olt, %162, %173 : vector<1x384xf32>
    %175 = arith.andi %172, %174 : vector<1x384xi1>
    %cst_91 = arith.constant 1.000000e+00 : f32
    %cst_92 = arith.constant 0.000000e+00 : f32
    %176 = vector.broadcast %cst_91 : f32 to vector<1x384xf32>
    %177 = vector.broadcast %cst_92 : f32 to vector<1x384xf32>
    %178 = arith.select %175, %176, %177 : vector<1x384xi1>, vector<1x384xf32>
    %179 = vector.broadcast %178 : vector<1x384xf32> to vector<8x384xf32>
    %180 = arith.mulf %160, %179 : vector<8x384xf32>
    %cst_93 = arith.constant dense<0.000000e+00> : vector<8xf32>
    %181 = vector.multi_reduction <add>, %180, %cst_93 [1] : vector<8x384xf32> to vector<8xf32>
    %182 = vector.shape_cast %181 : vector<8xf32> to vector<8x1xf32>
    %cst_94 = arith.constant 2.560000e+02 : f32
    %183 = vector.broadcast %cst_94 : f32 to vector<8x1xf32>
    %184 = arith.divf %182, %183 : vector<8x1xf32>
    %185 = vector.broadcast %184 : vector<8x1xf32> to vector<8x384xf32>
    %186 = arith.subf %160, %185 : vector<8x384xf32>
    %187 = arith.mulf %186, %186 : vector<8x384xf32>
    %188 = vector.broadcast %178 : vector<1x384xf32> to vector<8x384xf32>
    %189 = arith.mulf %187, %188 : vector<8x384xf32>
    %cst_95 = arith.constant dense<0.000000e+00> : vector<8xf32>
    %190 = vector.multi_reduction <add>, %189, %cst_95 [1] : vector<8x384xf32> to vector<8xf32>
    %191 = vector.shape_cast %190 : vector<8xf32> to vector<8x1xf32>
    %cst_96 = arith.constant 2.560000e+02 : f32
    %192 = vector.broadcast %cst_96 : f32 to vector<8x1xf32>
    %193 = arith.divf %191, %192 : vector<8x1xf32>
    %cst_97 = arith.constant 9.99999974E-6 : f32
    %194 = vector.broadcast %cst_97 : f32 to vector<8x1xf32>
    %195 = arith.addf %193, %194 : vector<8x1xf32>
    %196 = math.rsqrt %195 : vector<8x1xf32>
    %197 = vector.broadcast %196 : vector<8x1xf32> to vector<8x384xf32>
    %198 = arith.mulf %186, %197 : vector<8x384xf32>
    %cst_98 = arith.constant 0.000000e+00 : f32
    %199 = vector.broadcast %cst_98 : f32 to vector<8x384xf32>
    %200 = arith.cmpf oge, %198, %199 : vector<8x384xf32>
    %cst_99 = arith.constant 2.000000e-01 : f32
    %201 = vector.broadcast %cst_99 : f32 to vector<8x384xf32>
    %202 = arith.mulf %201, %198 : vector<8x384xf32>
    %203 = arith.select %200, %198, %202 : vector<8x384xi1>, vector<8x384xf32>
    %c0_100 = arith.constant 0 : index
    %c0_101 = arith.constant 0 : index
    %204 = vector.load %arg5[%c0_100, %c0_101] : memref<8x8xbf16, #tpu.memory_space<vmem>>, vector<8x8xbf16>
    %205 = arith.truncf %203 : vector<8x384xf32> to vector<8x384xbf16>
    %cst_102 = arith.constant dense<0.000000e+00> : vector<8x384xf32>
    %206 = tpu.matmul %204, %205, %cst_102 {dimension_numbers = #tpu.dot_dimension_numbers<[1], [0], [0], [1], [0, 0, 1, 1], [], []>} : vector<8x8xbf16>, vector<8x384xbf16>, vector<8x384xf32> -> vector<8x384xf32>
    %207 = vector.broadcast %178 : vector<1x384xf32> to vector<8x384xf32>
    %208 = arith.mulf %206, %207 : vector<8x384xf32>
    %cst_103 = arith.constant dense<0.000000e+00> : vector<8xf32>
    %209 = vector.multi_reduction <add>, %208, %cst_103 [1] : vector<8x384xf32> to vector<8xf32>
    %210 = vector.shape_cast %209 : vector<8xf32> to vector<8x1xf32>
    %cst_104 = arith.constant 2.560000e+02 : f32
    %211 = vector.broadcast %cst_104 : f32 to vector<8x1xf32>
    %212 = arith.divf %210, %211 : vector<8x1xf32>
    %213 = vector.broadcast %212 : vector<8x1xf32> to vector<8x384xf32>
    %214 = arith.subf %206, %213 : vector<8x384xf32>
    %215 = arith.mulf %214, %214 : vector<8x384xf32>
    %216 = vector.broadcast %178 : vector<1x384xf32> to vector<8x384xf32>
    %217 = arith.mulf %215, %216 : vector<8x384xf32>
    %cst_105 = arith.constant dense<0.000000e+00> : vector<8xf32>
    %218 = vector.multi_reduction <add>, %217, %cst_105 [1] : vector<8x384xf32> to vector<8xf32>
    %219 = vector.shape_cast %218 : vector<8xf32> to vector<8x1xf32>
    %cst_106 = arith.constant 2.560000e+02 : f32
    %220 = vector.broadcast %cst_106 : f32 to vector<8x1xf32>
    %221 = arith.divf %219, %220 : vector<8x1xf32>
    %cst_107 = arith.constant 9.99999974E-6 : f32
    %222 = vector.broadcast %cst_107 : f32 to vector<8x1xf32>
    %223 = arith.addf %221, %222 : vector<8x1xf32>
    %224 = math.rsqrt %223 : vector<8x1xf32>
    %225 = vector.broadcast %224 : vector<8x1xf32> to vector<8x384xf32>
    %226 = arith.mulf %214, %225 : vector<8x384xf32>
    %cst_108 = arith.constant 0.000000e+00 : f32
    %227 = vector.broadcast %cst_108 : f32 to vector<8x384xf32>
    %228 = arith.cmpf oge, %226, %227 : vector<8x384xf32>
    %cst_109 = arith.constant 2.000000e-01 : f32
    %229 = vector.broadcast %cst_109 : f32 to vector<8x384xf32>
    %230 = arith.mulf %229, %226 : vector<8x384xf32>
    %231 = arith.select %228, %226, %230 : vector<8x384xi1>, vector<8x384xf32>
    %232 = arith.truncf %231 : vector<8x384xf32> to vector<8x384xbf16>
    %c0_110 = arith.constant 0 : index
    %c0_111 = arith.constant 0 : index
    %233 = vector.load %arg6[%c0_110, %c0_111] : memref<8x384xbf16, #tpu.memory_space<vmem>>, vector<8x384xbf16>
    tpu.vector_store %arg6[%c0_110, %c0_111], %232 {strides = array<i32>} : memref<8x384xbf16, #tpu.memory_space<vmem>>, vector<8x384xbf16>,
    return
  }
  func.func @transform_0(%arg0: i32) -> (i32, i32) {
    %c0_i32 = arith.constant 0 : i32
    %c0_i32_0 = arith.constant 0 : i32
    %c0_i32_1 = arith.constant 0 : i32
    return %c0_i32, %c0_i32_0 : i32, i32
  }
  func.func @transform_1(%arg0: i32) -> (i32, i32) {
    %c0_i32 = arith.constant 0 : i32
    %c0_i32_0 = arith.constant 0 : i32
    %c0_i32_1 = arith.constant 0 : i32
    return %c0_i32, %c0_i32_0 : i32, i32
  }
  func.func @transform_2(%arg0: i32) -> (i32, i32, i32) {
    %c0_i32 = arith.constant 0 : i32
    %c0_i32_0 = arith.constant 0 : i32
    %c0_i32_1 = arith.constant 0 : i32
    %c0_i32_2 = arith.constant 0 : i32
    return %c0_i32, %c0_i32_0, %c0_i32_1 : i32, i32, i32
  }
  func.func @transform_3(%arg0: i32) -> (i32, i32, i32) {
    %c0_i32 = arith.constant 0 : i32
    %c0_i32_0 = arith.constant 0 : i32
    %c0_i32_1 = arith.constant 0 : i32
    %c0_i32_2 = arith.constant 0 : i32
    return %c0_i32, %c0_i32_0, %c0_i32_1 : i32, i32, i32
  }
  func.func @transform_4(%arg0: i32) -> (i32, i32) {
    %c0_i32 = arith.constant 0 : i32
    %c0_i32_0 = arith.constant 0 : i32
    %c0_i32_1 = arith.constant 0 : i32
    return %c0_i32, %c0_i32_0 : i32, i32
  }
  func.func @transform_5(%arg0: i32) -> (i32, i32) {
    %c0_i32 = arith.constant 0 : i32
    %c0_i32_0 = arith.constant 0 : i32
    %c0_i32_1 = arith.constant 0 : i32
    return %c0_i32, %c0_i32_0 : i32, i32
  }
}

module attributes {stable_mosaic.version = 11 : i64} {
  func.func @kernel(%arg0: i32, %arg1: memref<3x8xbf16, #tpu.memory_space<vmem>>, %arg2: memref<8x256xbf16, #tpu.memory_space<vmem>>, %arg3: memref<3x1xf32, #tpu.memory_space<vmem>>, %arg4: memref<3x256xf32, #tpu.memory_space<vmem>>) attributes {dimension_semantics = [#tpu.dimension_semantics<arbitrary>], iteration_bounds = array<i64: 1>, scalar_prefetch = 0 : i64, scratch_operands = 0 : i64, tpu.core_type = #tpu.core_type<tc>, window_params = [{pipeline_mode = #tpu.pipeline_mode<synchronous>, transform_indices = @transform_0, window_bounds = array<i64: 3, 8>}, {pipeline_mode = #tpu.pipeline_mode<synchronous>, transform_indices = @transform_1, window_bounds = array<i64: 8, 256>}, {pipeline_mode = #tpu.pipeline_mode<synchronous>, transform_indices = @transform_2, window_bounds = array<i64: 3, 1>}, {pipeline_mode = #tpu.pipeline_mode<synchronous>, transform_indices = @transform_3, window_bounds = array<i64: 3, 256>}]} {
    %c0 = arith.constant 0 : index
    %c0_0 = arith.constant 0 : index
    %0 = vector.load %arg1[%c0, %c0_0] : memref<3x8xbf16, #tpu.memory_space<vmem>>, vector<3x8xbf16>
    %c0_1 = arith.constant 0 : index
    %c0_2 = arith.constant 0 : index
    %1 = vector.load %arg2[%c0_1, %c0_2] : memref<8x256xbf16, #tpu.memory_space<vmem>>, vector<8x256xbf16>
    %cst = arith.constant dense<0.000000e+00> : vector<3x256xf32>
    %2 = tpu.matmul %0, %1, %cst {dimension_numbers = #tpu.dot_dimension_numbers<[1], [0], [0], [1], [0, 0, 1, 1], [], []>} : vector<3x8xbf16>, vector<8x256xbf16>, vector<3x256xf32> -> vector<3x256xf32>
    %c0_3 = arith.constant 0 : index
    %c0_4 = arith.constant 0 : index
    %3 = vector.load %arg3[%c0_3, %c0_4] : memref<3x1xf32, #tpu.memory_space<vmem>>, vector<3x1xf32>
    %4 = vector.broadcast %3 : vector<3x1xf32> to vector<3x256xf32>
    %5 = arith.addf %2, %4 : vector<3x256xf32>
    %cst_5 = arith.constant 0.000000e+00 : f32
    %6 = vector.broadcast %cst_5 : f32 to vector<3x256xf32>
    %7 = arith.subf %6, %5 : vector<3x256xf32>
    %8 = math.exp %7 : vector<3x256xf32>
    %cst_6 = arith.constant 1.000000e+00 : f32
    %9 = vector.broadcast %cst_6 : f32 to vector<3x256xf32>
    %10 = arith.addf %9, %8 : vector<3x256xf32>
    %cst_7 = arith.constant 1.000000e+00 : f32
    %11 = vector.broadcast %cst_7 : f32 to vector<3x256xf32>
    %12 = arith.divf %11, %10 : vector<3x256xf32>
    %c0_8 = arith.constant 0 : index
    %c0_9 = arith.constant 0 : index
    %13 = vector.load %arg4[%c0_8, %c0_9] : memref<3x256xf32, #tpu.memory_space<vmem>>, vector<3x256xf32>
    tpu.vector_store %arg4[%c0_8, %c0_9], %12 {strides = array<i32>} : memref<3x256xf32, #tpu.memory_space<vmem>>, vector<3x256xf32>,
    return
  }
  func.func @transform_0(%arg0: i32) -> (i32, i32) {
    %c0_i32 = arith.constant 0 : i32
    %c0_i32_0 = arith.constant 0 : i32
    %c0_i32_1 = arith.constant 0 : i32
    return %c0_i32, %c0_i32_0 : i32, i32
  }
  func.func @transform_1(%arg0: i32) -> (i32, i32) {
    %c0_i32 = arith.constant 0 : i32
    %c0_i32_0 = arith.constant 0 : i32
    %c0_i32_1 = arith.constant 0 : i32
    return %c0_i32, %c0_i32_0 : i32, i32
  }
  func.func @transform_2(%arg0: i32) -> (i32, i32) {
    %c0_i32 = arith.constant 0 : i32
    %c0_i32_0 = arith.constant 0 : i32
    %c0_i32_1 = arith.constant 0 : i32
    return %c0_i32, %c0_i32_0 : i32, i32
  }
  func.func @transform_3(%arg0: i32) -> (i32, i32) {
    %c0_i32 = arith.constant 0 : i32
    %c0_i32_0 = arith.constant 0 : i32
    %c0_i32_1 = arith.constant 0 : i32
    return %c0_i32, %c0_i32_0 : i32, i32
  }
}

</mosaic_0001>

<bundles_post_ra>
// kernel: _lambda_.7
= control target key start
LH: loop header
LB: loop body
LE: loop exit
PB: predicated region body
PF: predicated region fallthrough
CT: control target
= control target key end

     0   :  { %vm35_vm0 = vcmask 1041408   ;;  %v258_v0 = vmov 0.0   ;;  %v259_v2 = vmov 0   ;;  %vm31_vm1 = vcmask 31744   ;;  %s322_s0 = inlined_call_operand.vmem [shape: bf16[4,256], index: 0, kind: input, shape index: {}]   ;;  %s323_s1 = inlined_call_operand.vmem [shape: bf16[36,128], index: 1, kind: input, shape index: {}]   ;;  %s324_s2 = inlined_call_operand.vmem [shape: bf16[4,4], index: 2, kind: input, shape index: {}]   ;;  %s325_s3 = inlined_call_operand.vmem [shape: bf16[8,36], index: 3, kind: input, shape index: {}]   ;;  %s326_s4 = inlined_call_operand.vmem [shape: bf16[4,256], index: 4, kind: output, shape index: {0}]   ;;  %s327_s5 = inlined_call_operand.vmem [shape: bf16[8,128], index: 5, kind: output, shape index: {1}]  }
   0x1   :  { %238 = vmatprep.subr.bf16.mxu1 %v258_v0  ;;  %v225_v1 = vld.sshfl [vmem:[%s322_s0] sm:$0x33 pattern:$0x76325410]  ;;  %74 = vmatprep.mubr.bf16.mxu0 %v259_v2  ;;  %v252_v6 = vld [vmem:[%s323_s1 + $0x8] sm:$0xff]   ;;  %vm260_vm2 = vmmov 0   ;;  %v193_v11 = vlaneseq }
   0x2   :  { %v30_v3 = vcombine.high %v225_v1, %v225_v1  ;;  %v251_v4 = vld [vmem:[%s323_s1] sm:$0xff]   ;;  %v37_v5 = vsel %vm35_vm0, %v225_v1, 0  ;;  %v253_v8 = vld [vmem:[%s323_s1 + $0x10] ss:$0 sps:$4 sm:$0x33]   ;;  %244 = vmatprep.mubr.msk.bf16.mxu1 %vm260_vm2, %v258_v0  ;;  %vm146_vm3 = vcmask 293888  }
   0x3   :  { %239 = vmatpush3.bf16.msra.mxu1 %v251_v4  ;;  %v21_v7 = vld [vmem:[%s324_s2] sm:$0x3]  ;;  %v151_v9 = vsel %vm35_vm0, %v253_v8, 0  ;;  %v194_v12 = vand.u32 127, %v193_v11  ;;  %vm83_vm4 = vcmask 1043456  }
   0x4   :  { %226 = vmatprep.subr.msk.bf16.mxu0 %vm35_vm0, %v30_v3  ;;  %240 = vmatprep.subr.bf16.mxu1 %v258_v0  ;;  %v125_v10 = vld [vmem:[%s325_s3] sm:$0xf] }
   0x5   :  { %43 = vmatpush1.bf16.msra.mxu0 %v37_v5  ;;  %v195_v13 = vcvt.s32.f32 %v194_v12 }
   0x7   :  { %241 = vmatpush3.bf16.msra.mxu1 %v252_v6  ;;  %vm196_vm5 = vcmp.lt.f32.partialorder %v195_v13, 64.0 }
   0x8   :  { %227 = vmatmul.mubr.msk.bf16.vlgmr.msra.gmra.mrb[0].mxu0 %vm31_vm1, %v21_v7  ;;  %242 = vmatprep.subr.bf16.mxu1 %v258_v0  ;;  %v197_v21 = vsel %vm196_vm5, 1.0, %v258_v0 }
   0xb   :  { %243 = vmatpush3.bf16.msra.mxu1 %v151_v9 }
   0xe   :  { %245 = vmatmul.mubr.msk.bf16.vlgmr.msra.gmra.mrb[0].mxu1 %vm146_vm3, %v125_v10 }
  0xdb   :  { %v76_v14 = vpop.f32.mrb[0].mxu0 }
  0xdc   :  { %v78_v15 = vpop.f32.mrb[1].mxu0  ;;  %v84_v16 = vsel %vm83_vm4, %v76_v14, 0.0 }
  0xdd   :  { %v80_v17 = vpop.f32.mrb[2].mxu0  ;;  %v85_v18 = vsel %vm83_vm4, %v78_v15, 0.0 }
  0xde   :  { %v81_v19 = vpop.f32.mrb[3].mxu0  ;;  %v86_v20 = vadd.f32 %v85_v18, %v84_v16 }
  0xe0   :  { %87 = vadd.xlane.f32.xlu0 %v86_v20 }
  0xe1   :  { %v187_v22 = vpop.f32.mrb[0].mxu1 }
  0xe2   :  { %v246_v23 = vpop.f32.mrb[1].mxu1  ;;  %v198_v24 = vmul.f32 %v197_v21, %v187_v22 }
  0xe3   :  { %v190_v25 = vpop.f32.mrb[2].mxu1 }
  0xe4   :  { %v247_v26 = vpop.f32.mrb[3].mxu1  ;;  %199 = vadd.xlane.f32.xlu0 %v198_v24 }
 0x16d   :  { %v88_v27 = vpop.xlane.xlu0 %87 }
 0x16e   :  { %v90_v28 = vmul.f32 0.00390625, %v88_v27 }
 0x170   :  { %v91_v29 = vsub.f32 %v76_v14, %v90_v28  ;;  %v92_v30 = vsub.f32 %v78_v15, %v90_v28 }
 0x171   :  { %v200_v31 = vpop.xlane.xlu0 %199 }
 0x172   :  { %v93_v32 = vmul.f32 %v91_v29, %v91_v29  ;;  %v94_v33 = vmul.f32 %v92_v30, %v92_v30  ;;  %v202_v34 = vmul.f32 0.015625, %v200_v31 }
 0x174   :  { %v95_v35 = vsel %vm83_vm4, %v93_v32, 0.0  ;;  %v96_v36 = vsel %vm83_vm4, %v94_v33, 0.0  ;;  %v203_v37 = vsub.f32 %v187_v22, %v202_v34 }
 0x175   :  { %v97_v38 = vadd.f32 %v96_v36, %v95_v35 }
 0x176   :  { %v204_v39 = vmul.f32 %v203_v37, %v203_v37 }
 0x177   :  { %98 = vadd.xlane.f32.xlu1 %v97_v38 }
 0x178   :  { %v205_v40 = vmul.f32 %v204_v39, %v197_v21 }
 0x17b   :  { %206 = vadd.xlane.f32.xlu1 %v205_v40 }
 0x204   :  { %v99_v41 = vpop.xlane.xlu1 %98 }
 0x205   :  { %v100_v42 = vmul.f32 0.00390625, %v99_v41 }
 0x207   :  { %v101_v43 = vadd.f32 1e-05, %v100_v42 }
 0x208   :  { %v207_v44 = vpop.xlane.xlu1 %206 }
 0x209   :  { %254 = vrsqrt.f32 %v101_v43  ;;  %v208_v45 = vmul.f32 0.015625, %v207_v44 }
 0x20b   :  { %v209_v46 = vadd.f32 1e-05, %v208_v45 }
 0x20d   :  { %256 = vrsqrt.f32 %v209_v46 }
 0x213   :  { %v255_v47 = vpop.eup %254 }
 0x214   :  { %v103_v48 = vmul.f32 %v255_v47, %v91_v29  ;;  %v104_v49 = vmul.f32 %v255_v47, %v92_v30 }
 0x216   :  { %vm105_vm6 = vcmp.ge.f32.partialorder %v103_v48, 0.0  ;;  %vm106_vm7 = vcmp.ge.f32.partialorder %v104_v49, 0.0  ;;  %v107_v50 = vmul.f32 0.2, %v103_v48  ;;  %v108_v51 = vmul.f32 0.2, %v104_v49 }
 0x217   :  { %v257_v52 = vpop.eup %256 }
 0x218   :  { %v109_v53 = vsel %vm105_vm6, %v103_v48, %v107_v50  ;;  %v110_v54 = vsel %vm106_vm7, %v104_v49, %v108_v51  ;;  %v211_v55 = vmul.f32 %v257_v52, %v203_v37 }
 0x219   :  { %v228_v56 = vpack.c.bf16 %v110_v54, %v109_v53 }
 0x21a   :  { %vm212_vm8 = vcmp.ge.f32.partialorder %v211_v55, 0.0  ;;  %v213_v57 = vmul.f32 0.2, %v211_v55 }
 0x21b   :  { %229 = vst.sshfl [vmem:[%s326_s4] sm:$0x33 pattern:$0x76325410] %v228_v56 }
 0x21c   :  { %v214_v58 = vsel %vm212_vm8, %v211_v55, %v213_v57 }
 0x21d   :  { %v215_v59 = vpack.c.bf16 %v214_v58, %v214_v58 }
 0x21f   :  { %216 = vst [vmem:[%s327_s5] sm:$0xf] %v215_v59 }

// kernel: _lambda_.8
= control target key start
LH: loop header
LB: loop body
LE: loop exit
PB: predicated region body
PF: predicated region fallthrough
CT: control target
= control target key end

     0   :  { %v675_v1 = vmov 0.0   ;;  %vm676_vm0 = vmmov 0   ;;  %s677_s11 = smov 127   ;;  %s678_s12 = smov 117   ;;  %vm25_vm1 = vcmask 1039360   ;;  %vm237_vm2 = vcmask 957440   ;;  %s779_s1 = inlined_call_operand.vmem [shape: bf16[8,150], index: 1, kind: input, shape index: {}]   ;;  %s780_s0 = inlined_call_operand.vmem [shape: bf16[9,8,8], index: 0, kind: input, shape index: {}]   ;;  %s781_s2 = inlined_call_operand.vmem [shape: bf16[8,128], index: 2, kind: output, shape index: {}]  }
   0x1   :  { %v12_v0 = vld [vmem:[%s779_s1] sm:$0xff]  ;;  %578 = vmatprep.subr.bf16.mxu1 %v675_v1  ;;  %602 = vmatprep.subr.bf16.mxu0 %v675_v1  ;;  %s679_s1 = smov 116   ;;  %s680_s13 = smov 108   ;;  %vm31_vm3 = vcmask 1043456   ;;  %vm292_vm4 = vcmask 949248   ;;  %vm27_vm5 = vcmask 64512   ;;  %v506_v46 = vlaneseq }
   0x2   :  { %v542_v2 = vcombine.low %v12_v0, %v12_v0  ;;  %580 = vmatprep.mubr.msk.bf16.mxu1 %vm676_vm0, %v675_v1  ;;  %604 = vmatprep.mubr.msk.bf16.mxu0 %vm676_vm0, %v675_v1  ;;  %v543_v3 = vcombine.high %v12_v0, %v12_v0  ;;  %s681_s14 = smov 126   ;;  %s682_s15 = smov 107   ;;  %v541_v12 = vld [vmem:[%s780_s0 + $0x4] sm:$0xf]  ;;  %v550_v13 = vld [vmem:[%s780_s0 + $0x10] sm:$0xf] }
   0x3   :  { %s683_s16 = smov 118   ;;  %s684_s17 = smov 106   ;;  %v79_v16 = vsel %vm31_vm3, %v12_v0, 0  ;;  %vm347_vm6 = vcmask 883712   ;;  %vm127_vm7 = vcmask 1031168   ;;  %vm402_vm8 = vcmask 875520  }
   0x4   :  { %21 = vrot.lane.b32.xlu1 %v542_v2, %s677_s11  ;;  %233 = vrot.lane.b32.xlu0 %v542_v2, %s678_s12  ;;  %v13_v25 = vld [vmem:[%s780_s0] sm:$0xf]  ;;  %v552_v26 = vld [vmem:[%s780_s0 + $0x14] sm:$0xf]  ;;  %vm182_vm9 = vcmask 965632   ;;  %vm457_vm10 = vcmask 867328  }
   0x5   :  { %v546_v35 = vld [vmem:[%s780_s0 + $0x8] sm:$0xf]  ;;  %v554_v36 = vld [vmem:[%s780_s0 + $0x18] sm:$0xf]  ;;  %v548_v42 = vld [vmem:[%s780_s0 + $0xc] sm:$0xf] }
   0x6   :  { %v556_v43 = vld [vmem:[%s780_s0 + $0x1c] sm:$0xf]  ;;  %v558_v45 = vld [vmem:[%s780_s0 + $0x20] sm:$0xf]  ;;  %v507_v47 = vand.u32 127, %v506_v46 }
   0x8   :  { %23 = vrot.lane.b32.xlu1 %v543_v3, %s677_s11  ;;  %235 = vrot.lane.b32.xlu0 %v543_v3, %s678_s12  ;;  %v508_v48 = vcvt.s32.f32 %v507_v47 }
   0xa   :  { %v509_v49 = vadd.f32 0.5, %v508_v48  ;;  %vm515_vm12 = vcmp.lt.f32.partialorder %v508_v48, 80.0 }
   0xc   :  { %290 = vrot.lane.b32.xlu1 %v543_v3, %s679_s1  ;;  %288 = vrot.lane.b32.xlu0 %v542_v2, %s679_s1  ;;  %v510_v50 = vmul.f32 0.1, %v509_v49 }
   0xe   :  { %v511_v51 = vfloor.f32 %v510_v50 }
  0x10   :  { %345 = vrot.lane.b32.xlu1 %v543_v3, %s680_s13  ;;  %343 = vrot.lane.b32.xlu0 %v542_v2, %s680_s13  ;;  %v512_v52 = vmul.f32 10.0, %v511_v51 }
  0x12   :  { %v513_v56 = vsub.f32 %v508_v48, %v512_v52 }
  0x14   :  { %125 = vrot.lane.b32.xlu1 %v543_v3, %s681_s14  ;;  %123 = vrot.lane.b32.xlu0 %v542_v2, %s681_s14  ;;  %vm514_vm11 = vcmp.lt.f32.partialorder %v513_v56, 8.0 }
  0x15   :  { %vm516_vm13 = vmand %vm514_vm11, %vm515_vm12 }
  0x16   :  { %v517_v59 = vsel %vm516_vm13, 1.0, %v675_v1 }
  0x18   :  { %400 = vrot.lane.b32.xlu1 %v543_v3, %s682_s15  ;;  %398 = vrot.lane.b32.xlu0 %v542_v2, %s682_s15 }
  0x1c   :  { %180 = vrot.lane.b32.xlu1 %v543_v3, %s683_s16  ;;  %178 = vrot.lane.b32.xlu0 %v542_v2, %s683_s16 }
  0x20   :  { %455 = vrot.lane.b32.xlu1 %v543_v3, %s684_s17  ;;  %453 = vrot.lane.b32.xlu0 %v542_v2, %s684_s17 }
  0x76   :  { %v22_v4 = vpop.permute.xlu1 %21  ;;  %v234_v5 = vpop.permute.xlu0 %233 }
  0x7a   :  { %v24_v6 = vpop.permute.xlu1 %23  ;;  %v236_v7 = vpop.permute.xlu0 %235 }
  0x7b   :  { %v26_v8 = vsel %vm25_vm1, %v22_v4, %v24_v6  ;;  %v238_v9 = vsel %vm237_vm2, %v234_v5, %v236_v7 }
  0x7c   :  { %v33_v10 = vsel %vm31_vm3, %v26_v8, 0  ;;  %v243_v11 = vsel %vm31_vm3, %v238_v9, 0 }
  0x7d   :  { %579 = vmatpush3.bf16.msra.mxu1 %v33_v10  ;;  %603 = vmatpush3.bf16.msra.mxu0 %v243_v11 }
  0x7e   :  { %v291_v14 = vpop.permute.xlu1 %290  ;;  %v289_v15 = vpop.permute.xlu0 %288  ;;  %608 = vmatprep.subr.bf16.mxu0 %v675_v1  ;;  %584 = vmatprep.subr.bf16.mxu1 %v675_v1 }
  0x7f   :  { %v293_v17 = vsel %vm292_vm4, %v289_v15, %v291_v14 }
  0x80   :  { %v298_v18 = vsel %vm31_vm3, %v293_v17, 0  ;;  %581 = vmatmul.mubr.msk.bf16.vlgmr.msra.gmra.mrb[0].mxu1 %vm27_vm5, %v541_v12  ;;  %605 = vmatmul.mubr.msk.bf16.vlgmr.msra.gmra.mrb[0].mxu0 %vm27_vm5, %v550_v13 }
  0x81   :  { %609 = vmatpush3.bf16.msra.mxu0 %v298_v18  ;;  %585 = vmatpush3.bf16.msra.mxu1 %v79_v16 }
  0x82   :  { %v346_v19 = vpop.permute.xlu1 %345  ;;  %v344_v20 = vpop.permute.xlu0 %343  ;;  %586 = vmatprep.mubr.msk.bf16.mxu1 %vm676_vm0, %v675_v1  ;;  %610 = vmatprep.mubr.msk.bf16.mxu0 %vm676_vm0, %v675_v1 }
  0x83   :  { %614 = vmatprep.subr.bf16.mxu0 %v675_v1  ;;  %590 = vmatprep.subr.bf16.mxu1 %v675_v1  ;;  %v348_v23 = vsel %vm347_vm6, %v344_v20, %v346_v19 }
  0x84   :  { %v353_v27 = vsel %vm31_vm3, %v348_v23, 0 }
  0x86   :  { %v126_v21 = vpop.permute.xlu1 %125  ;;  %v124_v22 = vpop.permute.xlu0 %123 }
  0x87   :  { %v128_v24 = vsel %vm127_vm7, %v124_v22, %v126_v21 }
  0x88   :  { %v133_v28 = vsel %vm31_vm3, %v128_v24, 0 }
  0x8a   :  { %v401_v29 = vpop.permute.xlu1 %400  ;;  %v399_v30 = vpop.permute.xlu0 %398 }
  0x8b   :  { %v403_v33 = vsel %vm402_vm8, %v399_v30, %v401_v29 }
  0x8c   :  { %587 = vmatmul.mubr.msk.bf16.vlgmr.msra.gmra.mrb[0].mxu1 %vm27_vm5, %v13_v25  ;;  %611 = vmatmul.mubr.msk.bf16.vlgmr.msra.gmra.mrb[0].mxu0 %vm27_vm5, %v552_v26  ;;  %v408_v37 = vsel %vm31_vm3, %v403_v33, 0 }
  0x8d   :  { %615 = vmatpush3.bf16.msra.mxu0 %v353_v27  ;;  %591 = vmatpush3.bf16.msra.mxu1 %v133_v28 }
  0x8e   :  { %592 = vmatprep.mubr.msk.bf16.mxu1 %vm676_vm0, %v675_v1  ;;  %616 = vmatprep.mubr.msk.bf16.mxu0 %vm676_vm0, %v675_v1  ;;  %v181_v31 = vpop.permute.xlu1 %180  ;;  %v179_v32 = vpop.permute.xlu0 %178 }
  0x8f   :  { %620 = vmatprep.subr.bf16.mxu0 %v675_v1  ;;  %596 = vmatprep.subr.bf16.mxu1 %v675_v1  ;;  %v183_v34 = vsel %vm182_vm9, %v179_v32, %v181_v31 }
  0x90   :  { %v188_v38 = vsel %vm31_vm3, %v183_v34, 0 }
  0x92   :  { %v456_v39 = vpop.permute.xlu1 %455  ;;  %v454_v40 = vpop.permute.xlu0 %453 }
  0x93   :  { %v458_v41 = vsel %vm457_vm10, %v454_v40, %v456_v39 }
  0x94   :  { %v463_v44 = vsel %vm31_vm3, %v458_v41, 0 }
  0x98   :  { %593 = vmatmul.mubr.msk.bf16.vlgmr.msra.gmra.mrb[0].mxu1 %vm27_vm5, %v546_v35  ;;  %617 = vmatmul.mubr.msk.bf16.vlgmr.msra.gmra.mrb[0].mxu0 %vm27_vm5, %v554_v36 }
  0x99   :  { %621 = vmatpush3.bf16.msra.mxu0 %v408_v37  ;;  %597 = vmatpush3.bf16.msra.mxu1 %v188_v38 }
  0x9a   :  { %598 = vmatprep.mubr.msk.bf16.mxu1 %vm676_vm0, %v675_v1  ;;  %622 = vmatprep.mubr.msk.bf16.mxu0 %vm676_vm0, %v675_v1 }
  0x9b   :  { %626 = vmatprep.subr.bf16.mxu0 %v675_v1 }
  0xa4   :  { %599 = vmatmul.mubr.msk.bf16.vlgmr.msra.gmra.mrb[0].mxu1 %vm27_vm5, %v548_v42  ;;  %623 = vmatmul.mubr.msk.bf16.vlgmr.msra.gmra.mrb[0].mxu0 %vm27_vm5, %v556_v43 }
  0xa5   :  { %627 = vmatpush3.bf16.msra.mxu0 %v463_v44  ;;  %628 = vmatprep.mubr.msk.bf16.mxu0 %vm676_vm0, %v675_v1 }
  0xb0   :  { %629 = vmatmul.mubr.msk.bf16.vlgmr.msra.gmra.mrb[0].mxu0 %vm27_vm5, %v558_v45 }
 0x177   :  { %v224_v53 = vpop.f32.mrb[0].mxu1 }
 0x178   :  { %v600_v54 = vpop.f32.mrb[1].mxu1 }
 0x179   :  { %v227_v55 = vpop.f32.mrb[2].mxu1 }
 0x17a   :  { %v601_v57 = vpop.f32.mrb[3].mxu1 }
 0x183   :  { %v499_v58 = vpop.f32.mrb[0].mxu0 }
 0x184   :  { %v632_v60 = vadd.f32 %v499_v58, %v224_v53  ;;  %v630_v61 = vpop.f32.mrb[1].mxu0 }
 0x185   :  { %v502_v62 = vpop.f32.mrb[2].mxu0 }
 0x186   :  { %v631_v63 = vpop.f32.mrb[3].mxu0  ;;  %v518_v0 = vmul.f32 %v632_v60, %v517_v59 }
 0x188   :  { %519 = vadd.xlane.f32.xlu0 %v518_v0 }
 0x215   :  { %v520_v2 = vpop.xlane.xlu0 %519 }
 0x216   :  { %v522_v3 = vmul.f32 0.015625, %v520_v2 }
 0x218   :  { %v523_v4 = vsub.f32 %v632_v60, %v522_v3 }
 0x21a   :  { %v524_v5 = vmul.f32 %v523_v4, %v523_v4 }
 0x21c   :  { %v525_v6 = vmul.f32 %v524_v5, %v517_v59 }
 0x21e   :  { %526 = vadd.xlane.f32.xlu1 %v525_v6 }
 0x2ab   :  { %v527_v7 = vpop.xlane.xlu1 %526 }
 0x2ac   :  { %v528_v8 = vmul.f32 0.015625, %v527_v7 }
 0x2ae   :  { %v529_v9 = vadd.f32 1e-05, %v528_v8 }
 0x2b0   :  { %673 = vrsqrt.f32 %v529_v9 }
 0x2ba   :  { %v674_v10 = vpop.eup %673 }
 0x2bb   :  { %v531_v11 = vmul.f32 %v674_v10, %v523_v4 }
 0x2bd   :  { %vm532_vm14 = vcmp.ge.f32.partialorder %v531_v11, 0.0  ;;  %v533_v1 = vmul.f32 0.2, %v531_v11 }
 0x2bf   :  { %v534_v12 = vsel %vm532_vm14, %v531_v11, %v533_v1 }
 0x2c0   :  { %v535_v13 = vpack.c.bf16 %v534_v12, %v534_v12 }
 0x2c2   :  { %536 = vst [vmem:[%s781_s2] sm:$0xf] %v535_v13 }

// kernel: _lambda_.9
= control target key start
LH: loop header
LB: loop body
LE: loop exit
PB: predicated region body
PF: predicated region fallthrough
CT: control target
= control target key end

     0   :  { %vm26_vm0 = vcmask 1043456   ;;  %v297_v0 = vmov 0.0   ;;  %vm298_vm1 = vmmov 0   ;;  %vm22_vm2 = vcmask 64512   ;;  %s363_s0 = inlined_call_operand.vmem [shape: bf16[8,64], index: 0, kind: input, shape index: {}]   ;;  %s364_s1 = inlined_call_operand.vmem [shape: bf16[72,128], index: 1, kind: input, shape index: {}]   ;;  %s365_s2 = inlined_call_operand.vmem [shape: bf16[4,8], index: 2, kind: input, shape index: {}]   ;;  %s366_s3 = inlined_call_operand.vmem [shape: bf16[16,72], index: 3, kind: input, shape index: {}]   ;;  %s367_s4 = inlined_call_operand.vmem [shape: bf16[4,64], index: 4, kind: output, shape index: {0}]   ;;  %s368_s5 = inlined_call_operand.vmem [shape: bf16[16,128], index: 5, kind: output, shape index: {1}]  }
   0x1   :  { %263 = vmatprep.subr.bf16.mxu0 %v297_v0  ;;  %v20_v1 = vld [vmem:[%s363_s0] sm:$0xf]  ;;  %269 = vmatprep.subr.bf16.mxu1 %v297_v0  ;;  %v286_v5 = vld [vmem:[%s364_s1 + $0x8] sm:$0xff]   ;;  %v287_v6 = vld [vmem:[%s364_s1 + $0x10] sm:$0xff]   ;;  %vm134_vm3 = vcmask 588800   ;;  %vm70_vm4 = vcmask 519168   ;;  %v182_v12 = vlaneseq }
   0x2   :  { %v28_v2 = vsel %vm26_vm0, %v20_v1, 0  ;;  %v285_v3 = vld [vmem:[%s364_s1] sm:$0xff]   ;;  %265 = vmatprep.mubr.msk.bf16.mxu0 %vm298_vm1, %v297_v0  ;;  %279 = vmatprep.mubr.msk.bf16.mxu1 %vm298_vm1, %v297_v0  ;;  %v288_v7 = vld [vmem:[%s364_s1 + $0x18] sm:$0xff]   ;;  %vm89_vm7 = vcmask 517120  }
   0x3   :  { %264 = vmatpush3.bf16.msra.mxu0 %v28_v2  ;;  %v21_v4 = vld [vmem:[%s365_s2] sm:$0x3]  ;;  %270 = vmatpush3.bf16.msra.mxu1 %v285_v3  ;;  %v183_v17 = vand.u32 127, %v182_v12 }
   0x4   :  { %271 = vmatprep.subr.bf16.mxu1 %v297_v0  ;;  %v289_v8 = vld [vmem:[%s364_s1 + $0x20] ss:$0 sps:$4 sm:$0xff]  }
   0x5   :  { %v139_v9 = vsel %vm26_vm0, %v289_v8, 0  ;;  %v290_v10 = vld [vmem:[%s366_s3] sm:$0xff]   ;;  %v184_v18 = vcvt.s32.f32 %v183_v17 }
   0x6   :  { %266 = vmatmul.mubr.msk.bf16.vlgmr.msra.gmra.mrb[0].mxu0 %vm22_vm2, %v21_v4 }
   0x7   :  { %272 = vmatpush3.bf16.msra.mxu1 %v286_v5  ;;  %vm185_vm5 = vcmp.lt.f32.partialorder %v184_v18, 16.0 }
   0x8   :  { %273 = vmatprep.subr.bf16.mxu1 %v297_v0  ;;  %v186_v19 = vsel %vm185_vm5, 1.0, %v297_v0 }
   0xb   :  { %274 = vmatpush3.bf16.msra.mxu1 %v287_v6 }
   0xc   :  { %275 = vmatprep.subr.bf16.mxu1 %v297_v0 }
   0xf   :  { %276 = vmatpush3.bf16.msra.mxu1 %v288_v7 }
  0x10   :  { %277 = vmatprep.subr.bf16.mxu1 %v297_v0 }
  0x13   :  { %278 = vmatpush3.bf16.msra.mxu1 %v139_v9 }
  0x16   :  { %280 = vmatmul.mubr.msk.bf16.vlgmr.msra.gmra.mrb[0].mxu1 %vm134_vm3, %v290_v10 }
  0xd9   :  { %v64_v11 = vpop.f32.mrb[0].mxu0 }
  0xda   :  { %v71_v13 = vsel %vm70_vm4, %v64_v11, 0.0  ;;  %v267_v14 = vpop.f32.mrb[1].mxu0 }
  0xdb   :  { %72 = vadd.xlane.f32.xlu1 %v71_v13  ;;  %v67_v15 = vpop.f32.mrb[2].mxu0 }
  0xdc   :  { %v268_v16 = vpop.f32.mrb[3].mxu0 }
  0xe9   :  { %v175_v20 = vpop.f32.mrb[0].mxu1 }
  0xea   :  { %v281_v21 = vpop.f32.mrb[1].mxu1  ;;  %v187_v22 = vmul.f32 %v186_v19, %v175_v20 }
  0xeb   :  { %v178_v23 = vpop.f32.mrb[2].mxu1 }
  0xec   :  { %189 = vadd.xlane.f32.xlu0 %v187_v22  ;;  %v282_v24 = vpop.f32.mrb[3].mxu1  ;;  %v188_v25 = vmul.f32 %v186_v19, %v178_v23 }
  0xf0   :  { %191 = vadd.xlane.f32.xlu0 %v188_v25 }
 0x168   :  { %v73_v26 = vpop.xlane.xlu1 %72 }
 0x169   :  { %v75_v27 = vmul.f32 0.015625, %v73_v26 }
 0x16b   :  { %v76_v28 = vsub.f32 %v64_v11, %v75_v27 }
 0x16d   :  { %v77_v29 = vmul.f32 %v76_v28, %v76_v28 }
 0x16f   :  { %v78_v30 = vsel %vm70_vm4, %v77_v29, 0.0 }
 0x170   :  { %79 = vadd.xlane.f32.xlu1 %v78_v30 }
 0x179   :  { %v190_v31 = vpop.xlane.xlu0 %189 }
 0x17a   :  { %v194_v32 = vmul.f32 0.0625, %v190_v31 }
 0x17c   :  { %v196_v33 = vsub.f32 %v175_v20, %v194_v32 }
 0x17d   :  { %v192_v34 = vpop.xlane.xlu0 %191 }
 0x17e   :  { %v195_v35 = vmul.f32 0.0625, %v192_v34  ;;  %v198_v36 = vmul.f32 %v196_v33, %v196_v33 }
 0x180   :  { %v197_v37 = vsub.f32 %v178_v23, %v195_v35  ;;  %v200_v38 = vmul.f32 %v198_v36, %v186_v19 }
 0x182   :  { %202 = vadd.xlane.f32.xlu0 %v200_v38  ;;  %v199_v39 = vmul.f32 %v197_v37, %v197_v37 }
 0x184   :  { %v201_v40 = vmul.f32 %v199_v39, %v186_v19 }
 0x186   :  { %204 = vadd.xlane.f32.xlu1 %v201_v40 }
 0x1fd   :  { %v80_v41 = vpop.xlane.xlu1 %79 }
 0x1fe   :  { %v81_v42 = vmul.f32 0.015625, %v80_v41 }
 0x200   :  { %v82_v43 = vadd.f32 1e-05, %v81_v42 }
 0x202   :  { %291 = vrsqrt.f32 %v82_v43 }
 0x20c   :  { %v292_v44 = vpop.eup %291 }
 0x20d   :  { %v84_v45 = vmul.f32 %v292_v44, %v76_v28 }
 0x20f   :  { %vm85_vm6 = vcmp.ge.f32.partialorder %v84_v45, 0.0  ;;  %v86_v46 = vmul.f32 0.2, %v84_v45  ;;  %v203_v47 = vpop.xlane.xlu0 %202 }
 0x210   :  { %v206_v49 = vmul.f32 0.0625, %v203_v47 }
 0x211   :  { %v87_v48 = vsel %vm85_vm6, %v84_v45, %v86_v46 }
 0x212   :  { %v88_v50 = vpack.c.bf16 %v87_v48, %v87_v48  ;;  %v208_v51 = vadd.f32 1e-05, %v206_v49 }
 0x213   :  { %v205_v52 = vpop.xlane.xlu1 %204 }
 0x214   :  { %90 = vst.msk [vmem:[%s367_s4] sm:$0x3] %vm89_vm7, %v88_v50  ;;  %293 = vrsqrt.f32 %v208_v51  ;;  %v207_v53 = vmul.f32 0.0625, %v205_v52 }
 0x216   :  { %v209_v54 = vadd.f32 1e-05, %v207_v53 }
 0x218   :  { %295 = vrsqrt.f32 %v209_v54 }
 0x21e   :  { %v294_v55 = vpop.eup %293 }
 0x21f   :  { %v212_v56 = vmul.f32 %v294_v55, %v196_v33 }
 0x221   :  { %v216_v58 = vmul.f32 0.2, %v212_v56  ;;  %vm214_vm8 = vcmp.ge.f32.partialorder %v212_v56, 0.0 }
 0x222   :  { %v296_v57 = vpop.eup %295 }
 0x223   :  { %v213_v59 = vmul.f32 %v296_v57, %v197_v37  ;;  %v218_v61 = vsel %vm214_vm8, %v212_v56, %v216_v58 }
 0x225   :  { %vm215_vm9 = vcmp.ge.f32.partialorder %v213_v59, 0.0  ;;  %v217_v60 = vmul.f32 0.2, %v213_v59 }
 0x227   :  { %v219_v62 = vsel %vm215_vm9, %v213_v59, %v217_v60 }
 0x228   :  { %v253_v63 = vpack.c.bf16 %v219_v62, %v218_v61 }
 0x22a   :  { %254 = vst [vmem:[%s368_s5] sm:$0xff] %v253_v63  }

// kernel: _lambda_.10
= control target key start
LH: loop header
LB: loop body
LE: loop exit
PB: predicated region body
PF: predicated region fallthrough
CT: control target
= control target key end

     0   :  { %v793_v1 = vmov 0.0   ;;  %vm794_vm0 = vmmov 0   ;;  %s795_s13 = smov 127   ;;  %s796_s14 = smov 121   ;;  %vm36_vm1 = vcmask 1039360   ;;  %vm268_vm2 = vcmask 990208   ;;  %s891_s1 = inlined_call_operand.vmem [shape: bf16[16,142], index: 1, kind: input, shape index: {}]   ;;  %s892_s0 = inlined_call_operand.vmem [shape: bf16[9,16,16], index: 0, kind: input, shape index: {}]   ;;  %s893_s2 = inlined_call_operand.vmem [shape: bf16[16,128], index: 2, kind: output, shape index: {}]  }
   0x1   :  { %v777_v0 = vld [vmem:[%s891_s1] ss:$8 sps:$4 sm:$0xff]   ;;  %683 = vmatprep.subr.bf16.mxu1 %v793_v1  ;;  %707 = vmatprep.subr.bf16.mxu0 %v793_v1  ;;  %v779_v2 = vld [vmem:[%s891_s1 + $0x4] ss:$8 sps:$4 sm:$0xff]   ;;  %s797_s15 = smov 120   ;;  %s798_s16 = smov 116   ;;  %v561_v36 = vlaneseq }
   0x2   :  { %685 = vmatprep.mubr.msk.bf16.mxu1 %vm794_vm0, %v793_v1  ;;  %709 = vmatprep.mubr.msk.bf16.mxu0 %vm794_vm0, %v793_v1  ;;  %s799_s1 = smov 126   ;;  %s800_s17 = smov 115   ;;  %v780_v9 = vld [vmem:[%s892_s0 + $0x8] sm:$0xff]   ;;  %v781_v10 = vld [vmem:[%s892_s0 + $0x20] sm:$0xff]   ;;  %vm329_vm3 = vcmask 982016   ;;  %vm39_vm4 = vcmask 130048  }
   0x3   :  { %32 = vrot.lane.b32.xlu1 %v777_v0, %s795_s13  ;;  %264 = vrot.lane.b32.xlu0 %v777_v0, %s796_s14  ;;  %s801_s18 = smov 122   ;;  %s802_s19 = smov 114   ;;  %vm390_vm5 = vcmask 949248   ;;  %vm146_vm6 = vcmask 1031168   ;;  %v782_v18 = vld [vmem:[%s892_s0] sm:$0xff]   ;;  %v783_v19 = vld [vmem:[%s892_s0 + $0x28] sm:$0xff]  }
   0x4   :  { %vm451_vm7 = vcmask 941056   ;;  %vm207_vm8 = vcmask 998400   ;;  %v784_v26 = vld [vmem:[%s892_s0 + $0x10] sm:$0xff]   ;;  %vm512_vm9 = vcmask 932864   ;;  %v786_v32 = vld [vmem:[%s892_s0 + $0x18] sm:$0xff]   ;;  %v788_v35 = vld [vmem:[%s892_s0 + $0x40] sm:$0xff]  }
   0x5   :  { %v785_v27 = vld [vmem:[%s892_s0 + $0x30] sm:$0xff]   ;;  %v787_v33 = vld [vmem:[%s892_s0 + $0x38] sm:$0xff]   ;;  %v562_v37 = vand.u32 127, %v561_v36 }
   0x7   :  { %34 = vrot.lane.b32.xlu1 %v779_v2, %s795_s13  ;;  %266 = vrot.lane.b32.xlu0 %v779_v2, %s796_s14  ;;  %v563_v38 = vcvt.s32.f32 %v562_v37 }
   0x9   :  { %v564_v39 = vadd.f32 0.5, %v563_v38  ;;  %vm570_vm11 = vcmp.lt.f32.partialorder %v563_v38, 24.0 }
   0xb   :  { %327 = vrot.lane.b32.xlu1 %v779_v2, %s797_s15  ;;  %325 = vrot.lane.b32.xlu0 %v777_v0, %s797_s15  ;;  %v565_v40 = vmul.f32 0.16666667, %v564_v39 }
   0xd   :  { %v566_v41 = vfloor.f32 %v565_v40 }
   0xf   :  { %388 = vrot.lane.b32.xlu1 %v779_v2, %s798_s16  ;;  %386 = vrot.lane.b32.xlu0 %v777_v0, %s798_s16  ;;  %v567_v42 = vmul.f32 6.0, %v566_v41 }
  0x11   :  { %v568_v46 = vsub.f32 %v563_v38, %v567_v42 }
  0x13   :  { %144 = vrot.lane.b32.xlu1 %v779_v2, %s799_s1  ;;  %142 = vrot.lane.b32.xlu0 %v777_v0, %s799_s1  ;;  %vm569_vm10 = vcmp.lt.f32.partialorder %v568_v46, 4.0 }
  0x14   :  { %vm571_vm12 = vmand %vm569_vm10, %vm570_vm11 }
  0x15   :  { %v572_v49 = vsel %vm571_vm12, 1.0, %v793_v1 }
  0x17   :  { %449 = vrot.lane.b32.xlu1 %v779_v2, %s800_s17  ;;  %447 = vrot.lane.b32.xlu0 %v777_v0, %s800_s17 }
  0x1b   :  { %205 = vrot.lane.b32.xlu1 %v779_v2, %s801_s18  ;;  %203 = vrot.lane.b32.xlu0 %v777_v0, %s801_s18 }
  0x1f   :  { %510 = vrot.lane.b32.xlu1 %v779_v2, %s802_s19  ;;  %508 = vrot.lane.b32.xlu0 %v777_v0, %s802_s19 }
  0x75   :  { %v33_v3 = vpop.permute.xlu1 %32  ;;  %v265_v4 = vpop.permute.xlu0 %264 }
  0x79   :  { %v35_v5 = vpop.permute.xlu1 %34  ;;  %v267_v6 = vpop.permute.xlu0 %266 }
  0x7a   :  { %v37_v7 = vsel %vm36_vm1, %v33_v3, %v35_v5  ;;  %v269_v8 = vsel %vm268_vm2, %v265_v4, %v267_v6 }
  0x7b   :  { %684 = vmatpush3.bf16.msra.mxu1 %v37_v7  ;;  %708 = vmatpush3.bf16.msra.mxu0 %v269_v8 }
  0x7c   :  { %713 = vmatprep.subr.bf16.mxu0 %v793_v1  ;;  %689 = vmatprep.subr.bf16.mxu1 %v793_v1 }
  0x7d   :  { %v328_v11 = vpop.permute.xlu1 %327  ;;  %v326_v12 = vpop.permute.xlu0 %325 }
  0x7e   :  { %v330_v13 = vsel %vm329_vm3, %v326_v12, %v328_v11  ;;  %686 = vmatmul.mubr.msk.bf16.vlgmr.msra.gmra.mrb[0].mxu1 %vm39_vm4, %v780_v9  ;;  %710 = vmatmul.mubr.msk.bf16.vlgmr.msra.gmra.mrb[0].mxu0 %vm39_vm4, %v781_v10 }
  0x7f   :  { %714 = vmatpush3.bf16.msra.mxu0 %v330_v13  ;;  %690 = vmatpush3.bf16.msra.mxu1 %v777_v0 }
  0x80   :  { %691 = vmatprep.mubr.msk.bf16.mxu1 %vm794_vm0, %v793_v1  ;;  %715 = vmatprep.mubr.msk.bf16.mxu0 %vm794_vm0, %v793_v1 }
  0x81   :  { %v389_v14 = vpop.permute.xlu1 %388  ;;  %v387_v15 = vpop.permute.xlu0 %386  ;;  %719 = vmatprep.subr.bf16.mxu0 %v793_v1  ;;  %695 = vmatprep.subr.bf16.mxu1 %v793_v1 }
  0x82   :  { %v391_v20 = vsel %vm390_vm5, %v387_v15, %v389_v14 }
  0x85   :  { %v145_v16 = vpop.permute.xlu1 %144  ;;  %v143_v17 = vpop.permute.xlu0 %142 }
  0x86   :  { %v147_v21 = vsel %vm146_vm6, %v143_v17, %v145_v16 }
  0x89   :  { %v450_v22 = vpop.permute.xlu1 %449  ;;  %v448_v23 = vpop.permute.xlu0 %447 }
  0x8a   :  { %692 = vmatmul.mubr.msk.bf16.vlgmr.msra.gmra.mrb[0].mxu1 %vm39_vm4, %v782_v18  ;;  %716 = vmatmul.mubr.msk.bf16.vlgmr.msra.gmra.mrb[0].mxu0 %vm39_vm4, %v783_v19  ;;  %v452_v28 = vsel %vm451_vm7, %v448_v23, %v450_v22 }
  0x8b   :  { %720 = vmatpush3.bf16.msra.mxu0 %v391_v20  ;;  %696 = vmatpush3.bf16.msra.mxu1 %v147_v21 }
  0x8c   :  { %697 = vmatprep.mubr.msk.bf16.mxu1 %vm794_vm0, %v793_v1  ;;  %721 = vmatprep.mubr.msk.bf16.mxu0 %vm794_vm0, %v793_v1 }
  0x8d   :  { %725 = vmatprep.subr.bf16.mxu0 %v793_v1  ;;  %701 = vmatprep.subr.bf16.mxu1 %v793_v1  ;;  %v206_v24 = vpop.permute.xlu1 %205  ;;  %v204_v25 = vpop.permute.xlu0 %203 }
  0x8e   :  { %v208_v29 = vsel %vm207_vm8, %v204_v25, %v206_v24 }
  0x91   :  { %v511_v30 = vpop.permute.xlu1 %510  ;;  %v509_v31 = vpop.permute.xlu0 %508 }
  0x92   :  { %v513_v34 = vsel %vm512_vm9, %v509_v31, %v511_v30 }
  0x96   :  { %698 = vmatmul.mubr.msk.bf16.vlgmr.msra.gmra.mrb[0].mxu1 %vm39_vm4, %v784_v26  ;;  %722 = vmatmul.mubr.msk.bf16.vlgmr.msra.gmra.mrb[0].mxu0 %vm39_vm4, %v785_v27 }
  0x97   :  { %726 = vmatpush3.bf16.msra.mxu0 %v452_v28  ;;  %702 = vmatpush3.bf16.msra.mxu1 %v208_v29 }
  0x98   :  { %703 = vmatprep.mubr.msk.bf16.mxu1 %vm794_vm0, %v793_v1  ;;  %727 = vmatprep.mubr.msk.bf16.mxu0 %vm794_vm0, %v793_v1 }
  0x99   :  { %731 = vmatprep.subr.bf16.mxu0 %v793_v1 }
  0xa2   :  { %704 = vmatmul.mubr.msk.bf16.vlgmr.msra.gmra.mrb[0].mxu1 %vm39_vm4, %v786_v32  ;;  %728 = vmatmul.mubr.msk.bf16.vlgmr.msra.gmra.mrb[0].mxu0 %vm39_vm4, %v787_v33 }
  0xa3   :  { %732 = vmatpush3.bf16.msra.mxu0 %v513_v34  ;;  %733 = vmatprep.mubr.msk.bf16.mxu0 %vm794_vm0, %v793_v1 }
  0xae   :  { %734 = vmatmul.mubr.msk.bf16.vlgmr.msra.gmra.mrb[0].mxu0 %vm39_vm4, %v788_v35 }
 0x175   :  { %v247_v43 = vpop.f32.mrb[0].mxu1 }
 0x176   :  { %v705_v44 = vpop.f32.mrb[1].mxu1 }
 0x177   :  { %v250_v45 = vpop.f32.mrb[2].mxu1 }
 0x178   :  { %v706_v47 = vpop.f32.mrb[3].mxu1 }
 0x181   :  { %v552_v48 = vpop.f32.mrb[0].mxu0 }
 0x182   :  { %v737_v50 = vadd.f32 %v552_v48, %v247_v43  ;;  %v735_v51 = vpop.f32.mrb[1].mxu0 }
 0x183   :  { %v555_v52 = vpop.f32.mrb[2].mxu0 }
 0x184   :  { %v738_v53 = vadd.f32 %v555_v52, %v250_v45  ;;  %v736_v54 = vpop.f32.mrb[3].mxu0  ;;  %v573_v55 = vmul.f32 %v737_v50, %v572_v49 }
 0x186   :  { %575 = vadd.xlane.f32.xlu0 %v573_v55  ;;  %v574_v56 = vmul.f32 %v738_v53, %v572_v49 }
 0x188   :  { %577 = vadd.xlane.f32.xlu1 %v574_v56 }
 0x213   :  { %v576_v57 = vpop.xlane.xlu0 %575 }
 0x214   :  { %v580_v58 = vmul.f32 0.0625, %v576_v57 }
 0x215   :  { %v578_v59 = vpop.xlane.xlu1 %577 }
 0x216   :  { %v582_v60 = vsub.f32 %v737_v50, %v580_v58  ;;  %v581_v61 = vmul.f32 0.0625, %v578_v59 }
 0x218   :  { %v583_v62 = vsub.f32 %v738_v53, %v581_v61  ;;  %v584_v63 = vmul.f32 %v582_v60, %v582_v60 }
 0x21a   :  { %v586_v0 = vmul.f32 %v584_v63, %v572_v49  ;;  %v585_v2 = vmul.f32 %v583_v62, %v583_v62 }
 0x21c   :  { %588 = vadd.xlane.f32.xlu0 %v586_v0  ;;  %v587_v1 = vmul.f32 %v585_v2, %v572_v49 }
 0x220   :  { %590 = vadd.xlane.f32.xlu0 %v587_v1 }
 0x2a9   :  { %v589_v3 = vpop.xlane.xlu0 %588 }
 0x2aa   :  { %v592_v4 = vmul.f32 0.0625, %v589_v3 }
 0x2ac   :  { %v594_v5 = vadd.f32 1e-05, %v592_v4 }
 0x2ad   :  { %v591_v6 = vpop.xlane.xlu0 %590 }
 0x2ae   :  { %789 = vrsqrt.f32 %v594_v5  ;;  %v593_v7 = vmul.f32 0.0625, %v591_v6 }
 0x2b0   :  { %v595_v8 = vadd.f32 1e-05, %v593_v7 }
 0x2b2   :  { %791 = vrsqrt.f32 %v595_v8 }
 0x2b8   :  { %v790_v9 = vpop.eup %789 }
 0x2b9   :  { %v598_v10 = vmul.f32 %v790_v9, %v582_v60 }
 0x2bb   :  { %v602_v12 = vmul.f32 0.2, %v598_v10  ;;  %vm600_vm13 = vcmp.ge.f32.partialorder %v598_v10, 0.0 }
 0x2bc   :  { %v792_v11 = vpop.eup %791 }
 0x2bd   :  { %v599_v13 = vmul.f32 %v792_v11, %v583_v62  ;;  %v604_v15 = vsel %vm600_vm13, %v598_v10, %v602_v12 }
 0x2bf   :  { %vm601_vm14 = vcmp.ge.f32.partialorder %v599_v13, 0.0  ;;  %v603_v14 = vmul.f32 0.2, %v599_v13 }
 0x2c1   :  { %v605_v16 = vsel %vm601_vm14, %v599_v13, %v603_v14 }
 0x2c2   :  { %v663_v17 = vpack.c.bf16 %v605_v16, %v604_v15 }
 0x2c4   :  { %664 = vst [vmem:[%s893_s2] sm:$0xff] %v663_v17  }

// kernel: _lambda_.11
= control target key start
LH: loop header
LB: loop body
LE: loop exit
PB: predicated region body
PF: predicated region fallthrough
CT: control target
= control target key end

     0   :  { %v21_v0 = vlaneseq  ;;  %v1733_v1 = vmov 0.0   ;;  %vm62_vm14 = vcmask 179200   ;;  %vm116_vm15 = vcmask 1043456   ;;  %s1738_s26 = smov 127   ;;  %s1739_s27 = smov 108   ;;  %s1973_s0 = inlined_call_operand.vmem [shape: bf16[16,150], index: 0, kind: input, shape index: {}]   ;;  %s1974_s1 = inlined_call_operand.vmem [shape: bf16[4,150], index: 1, kind: input, shape index: {}]   ;;  %s1975_s3 = inlined_call_operand.vmem [shape: bf16[9,16,4], index: 3, kind: input, shape index: {}]   ;;  %s1976_s2 = inlined_call_operand.vmem [shape: bf16[9,16,16], index: 2, kind: input, shape index: {}]   ;;  %s1977_s4 = inlined_call_operand.vmem [shape: bf16[16,16], index: 4, kind: input, shape index: {}]   ;;  %s1978_s5 = inlined_call_operand.vmem [shape: bf16[16,128], index: 5, kind: output, shape index: {}]  }
   0x1   :  { %1509 = vmatprep.subr.bf16.mxu1 %v1733_v1  ;;  %1557 = vmatprep.subr.bf16.mxu0 %v1733_v1  ;;  %v52_v15 = vld [vmem:[%s1973_s0] sm:$0xff]  ;;  %v53_v16 = vld [vmem:[%s1973_s0 + $0x8] sm:$0xff]  ;;  %v1734_v40 = vmov 839922192   ;;  %s1736_s0 = smov 117   ;;  %s1740_s30 = smov 126  }
   0x2   :  { %v22_v2 = vand.u32 127, %v21_v0  ;;  %v54_v18 = vunpack.c.l.bf16 %v52_v15  ;;  %v106_v19 = vld [vmem:[%s1974_s1] sm:$0xf]  ;;  %v55_v20 = vunpack.c.h.bf16 %v52_v15  ;;  %v57_v21 = vunpack.c.h.bf16 %v53_v16  ;;  %s1737_s1 = smov 116   ;;  %s1741_s6 = smov 107  }
   0x3   :  { %v56_v23 = vunpack.c.l.bf16 %v53_v16  ;;  %v107_v24 = vunpack.c.l.bf16 %v106_v19  ;;  %v126_v41 = vunpack.c.l.s4 %v1734_v40  ;;  %v129_v43 = vshrl.u32 %v21_v0, 7  ;;  %s1742_s7 = smov 118   ;;  %s1743_s8 = smov 106  }
   0x4   :  { %v23_v3 = vadd.s32 128, %v22_v2  ;;  %v1777_v4 = vcvt.s32.f32 %v22_v2 }
   0x5   :  { %v127_v42 = vunpack.c.0.s8 %v126_v41 }
   0x6   :  { %v25_v5 = vcvt.s32.f32 %v23_v3  ;;  %v26_v6 = vadd.f32 0.5, %v1777_v4 }
   0x7   :  { %v130_v48 = vsub.s32 %v127_v42, %v129_v43  ;;  %v1701_v43 = vld [vmem:[%s1976_s2 + $0x20] sm:$0xff]  }
   0x8   :  { %v27_v7 = vadd.f32 0.5, %v25_v5  ;;  %v28_v8 = vmul.f32 0.1, %v26_v6 }
   0xa   :  { %v29_v9 = vmul.f32 0.1, %v27_v7  ;;  %v30_v10 = vfloor.f32 %v28_v8 }
   0xc   :  { %v31_v11 = vfloor.f32 %v29_v9  ;;  %v32_v12 = vmul.f32 10.0, %v30_v10  ;;  %vm36_vm0 = vcmp.ge.f32.partialorder %v30_v10, 1.0  ;;  %vm38_vm1 = vcmp.lt.f32.partialorder %v30_v10, 9.0 }
   0xd   :  { %vm40_vm4 = vmand %vm36_vm0, %vm38_vm1  ;;  %vm118_vm0 = vcmask 175104   ;;  %vm1735_vm1 = vmmov 0  }
   0xe   :  { %v33_v13 = vmul.f32 10.0, %v31_v11  ;;  %v1781_v14 = vsub.f32 %v1777_v4, %v32_v12  ;;  %vm37_vm2 = vcmp.ge.f32.partialorder %v31_v11, 1.0  ;;  %vm39_vm3 = vcmp.lt.f32.partialorder %v31_v11, 9.0  ;;  %1511 = vmatprep.mubr.msk.bf16.mxu1 %vm1735_vm1, %v1733_v1  ;;  %1559 = vmatprep.mubr.msk.bf16.mxu0 %vm1735_vm1, %v1733_v1 }
   0xf   :  { %vm41_vm5 = vmand %vm37_vm2, %vm39_vm3  ;;  %vm175_vm2 = vcmask 1041408   ;;  %vm171_vm3 = vcmask 31744  }
  0x10   :  { %v35_v17 = vsub.f32 %v25_v5, %v33_v13  ;;  %vm42_vm6 = vcmp.ge.f32.partialorder %v1781_v14, 1.0  ;;  %vm46_vm7 = vcmp.lt.f32.partialorder %v1781_v14, 9.0 }
  0x11   :  { %vm44_vm8 = vmand %vm40_vm4, %vm42_vm6  ;;  %vm225_vm4 = vcmask 130048   ;;  %vm778_vm6 = vcmask 949248  }
  0x12   :  { %vm43_vm9 = vcmp.ge.f32.partialorder %v35_v17, 1.0  ;;  %vm47_vm10 = vcmp.lt.f32.partialorder %v35_v17, 9.0  ;;  %vm48_vm11 = vmand %vm44_vm8, %vm46_vm7  ;;  %vm284_vm7 = vcmask 1039360   ;;  %vm409_vm8 = vcmask 1031168  }
  0x13   :  { %vm45_vm12 = vmand %vm41_vm5, %vm43_vm9  ;;  %v50_v22 = vsel %vm48_vm11, 1.0, %v1733_v1  ;;  %vm655_vm5 = vcmask 957440   ;;  %vm901_vm9 = vcmask 883712   ;;  %vm1024_vm11 = vcmask 875520  }
  0x14   :  { %vm49_vm13 = vmand %vm45_vm12, %vm47_vm10  ;;  %v58_v26 = vmul.f32 %v54_v18, %v50_v22  ;;  %v60_v30 = vmul.f32 %v56_v23, %v50_v22  ;;  %vm532_vm10 = vcmask 965632   ;;  %vm1147_vm12 = vcmask 867328  }
  0x15   :  { %v51_v25 = vsel %vm49_vm13, 1.0, %v1733_v1  ;;  %vm1258_vm13 = vcmp.lt.f32.partialorder %v1781_v14, 8.0 }
  0x16   :  { %v59_v27 = vmul.f32 %v55_v20, %v51_v25  ;;  %v110_v28 = vcombine.low %v50_v22, %v51_v25  ;;  %v61_v29 = vmul.f32 %v57_v21, %v51_v25 }
  0x18   :  { %v63_v31 = vsel %vm62_vm14, %v59_v27, 0.0  ;;  %v112_v32 = vmul.f32 %v110_v28, %v107_v24  ;;  %v67_v33 = vsel %vm62_vm14, %v61_v29, 0.0 }
  0x19   :  { %v64_v34 = vadd.f32 %v63_v31, %v58_v26  ;;  %v68_v37 = vadd.f32 %v67_v33, %v60_v30 }
  0x1a   :  { %v114_v35 = vcombine.high %v112_v32, %v112_v32  ;;  %v117_v36 = vsel %vm116_vm15, %v112_v32, 0.0 }
  0x1b   :  { %65 = vadd.xlane.f32.xlu0 %v64_v34 }
  0x1c   :  { %v119_v38 = vsel %vm118_vm0, %v114_v35, 0.0 }
  0x1d   :  { %v120_v39 = vadd.f32 %v119_v38, %v117_v36 }
  0x1f   :  { %121 = vadd.xlane.f32.xlu1 %v120_v39  ;;  %69 = vadd.xlane.f32.xlu0 %v68_v37  ;;  %v1700_v37 = vld [vmem:[%s1975_s3] sm:$0xff]  }
  0x20   :  { %v1702_v39 = vld [vmem:[%s1976_s2] sm:$0xff]  }
  0xa8   :  { %v66_v44 = vpop.xlane.xlu0 %65 }
  0xa9   :  { %v72_v45 = vmul.f32 0.015625, %v66_v44 }
  0xab   :  { %v74_v46 = vsub.f32 %v54_v18, %v72_v45  ;;  %v75_v47 = vsub.f32 %v55_v20, %v72_v45 }
  0xac   :  { %v122_v49 = vpop.xlane.xlu1 %121  ;;  %v70_v50 = vpop.xlane.xlu0 %69 }
  0xad   :  { %v78_v51 = vmul.f32 %v74_v46, %v74_v46  ;;  %v79_v52 = vmul.f32 %v75_v47, %v75_v47  ;;  %v123_v53 = vmul.f32 0.015625, %v122_v49  ;;  %v73_v54 = vmul.f32 0.015625, %v70_v50 }
  0xaf   :  { %v131_v55 = vrot.slane %v123_v53, %v130_v48  ;;  %v76_v56 = vsub.f32 %v56_v23, %v73_v54  ;;  %v77_v57 = vsub.f32 %v57_v21, %v73_v54  ;;  %v82_v58 = vmul.f32 %v78_v51, %v50_v22  ;;  %v1703_v51 = vld [vmem:[%s1975_s3 + $0x20] sm:$0xff]  }
  0xb0   :  { %v83_v59 = vmul.f32 %v79_v52, %v51_v25 }
  0xb1   :  { %v133_v60 = vsub.f32 %v107_v24, %v131_v55  ;;  %v80_v61 = vmul.f32 %v76_v56, %v76_v56  ;;  %v81_v62 = vmul.f32 %v77_v57, %v77_v57 }
  0xb2   :  { %v86_v63 = vsel %vm62_vm14, %v83_v59, 0.0  ;;  %v1704_v59 = vld [vmem:[%s1976_s2 + $0x8] sm:$0xff]  }
  0xb3   :  { %v87_v0 = vadd.f32 %v86_v63, %v82_v58  ;;  %v84_v2 = vmul.f32 %v80_v61, %v50_v22  ;;  %v85_v3 = vmul.f32 %v81_v62, %v51_v25  ;;  %v134_v5 = vmul.f32 %v133_v60, %v133_v60 }
  0xb5   :  { %88 = vadd.xlane.f32.xlu1 %v87_v0  ;;  %v90_v6 = vsel %vm62_vm14, %v85_v3, 0.0  ;;  %v135_v7 = vmul.f32 %v134_v5, %v110_v28  ;;  %vm1259_vm14 = vcmp.lt.f32.partialorder %v1777_v4, 80.0 }
  0xb6   :  { %v91_v8 = vadd.f32 %v90_v6, %v84_v2 }
  0xb7   :  { %v137_v9 = vcombine.high %v135_v7, %v135_v7  ;;  %v139_v10 = vsel %vm116_vm15, %v135_v7, 0.0  ;;  %vm1260_vm15 = vmand %vm1258_vm13, %vm1259_vm14 }
  0xb8   :  { %92 = vadd.xlane.f32.xlu0 %v91_v8  ;;  %v1706_v8 = vld [vmem:[%s1975_s3 + $0x8] sm:$0xff]  }
  0xb9   :  { %v140_v11 = vsel %vm118_vm0, %v137_v9, 0.0  ;;  %v1707_v9 = vld [vmem:[%s1975_s3 + $0x28] sm:$0xff]  }
  0xba   :  { %v141_v12 = vadd.f32 %v140_v11, %v139_v10 }
  0xbc   :  { %142 = vadd.xlane.f32.xlu1 %v141_v12 }
 0x142   :  { %v89_v13 = vpop.xlane.xlu1 %88 }
 0x143   :  { %v94_v15 = vmul.f32 0.015625, %v89_v13 }
 0x145   :  { %v96_v16 = vadd.f32 1e-05, %v94_v15  ;;  %v93_v17 = vpop.xlane.xlu0 %92 }
 0x146   :  { %v95_v18 = vmul.f32 0.015625, %v93_v17 }
 0x147   :  { %1719 = vrsqrt.f32 %v96_v16 }
 0x148   :  { %v97_v19 = vadd.f32 1e-05, %v95_v18  ;;  %v1708_v18 = vld [vmem:[%s1976_s2 + $0x10] sm:$0xff]  }
 0x149   :  { %v143_v20 = vpop.xlane.xlu1 %142 }
 0x14a   :  { %1721 = vrsqrt.f32 %v97_v19  ;;  %v144_v21 = vmul.f32 0.015625, %v143_v20  ;;  %v1709_v20 = vld [vmem:[%s1976_s2 + $0x30] sm:$0xff]  }
 0x14c   :  { %v145_v22 = vadd.f32 1e-05, %v144_v21 }
 0x14e   :  { %1723 = vrsqrt.f32 %v145_v22 }
 0x151   :  { %v1720_v23 = vpop.eup %1719 }
 0x152   :  { %v100_v25 = vmul.f32 %v1720_v23, %v74_v46  ;;  %v101_v26 = vmul.f32 %v1720_v23, %v75_v47 }
 0x154   :  { %v1722_v24 = vpop.eup %1721 }
 0x155   :  { %v102_v27 = vmul.f32 %v1722_v24, %v76_v56  ;;  %v103_v28 = vmul.f32 %v1722_v24, %v77_v57 }
 0x157   :  { %v104_v29 = vpack.c.bf16 %v102_v27, %v100_v25  ;;  %v105_v30 = vpack.c.bf16 %v103_v28, %v101_v26  ;;  %v1710_v28 = vld [vmem:[%s1975_s3 + $0x10] sm:$0xff]  }
 0x158   :  { %v1724_v31 = vpop.eup %1723 }
 0x159   :  { %v154_v32 = vrot.slane %v1724_v31, %v130_v48  ;;  %653 = vrot.lane.b32.xlu1 %v105_v30, %s1736_s0  ;;  %651 = vrot.lane.b32.xlu0 %v104_v29, %s1736_s0 }
 0x15b   :  { %v156_v33 = vmul.f32 %v154_v32, %v133_v60  ;;  %v1705_v60 = vld [vmem:[%s1976_s2 + $0x28] sm:$0xff]  }
 0x15d   :  { %v158_v34 = vcombine.high %v156_v33, %v156_v33  ;;  %v160_v35 = vpack.c.bf16 %v156_v33, %v156_v33  ;;  %774 = vrot.lane.b32.xlu0 %v104_v29, %s1737_s1 }
 0x15f   :  { %712 = vrot.lane.b32.xlu1 %v160_v35, %s1736_s0  ;;  %v177_v36 = vsel %vm175_vm2, %v160_v35, 0  ;;  %v161_v38 = vpack.c.bf16 %v158_v34, %v158_v34 }
 0x160   :  { %1510 = vmatpush3.bf16.msra.mxu1 %v177_v36  ;;  %v1712_v36 = vld [vmem:[%s1976_s2 + $0x18] sm:$0xff]  }
 0x161   :  { %835 = vrot.lane.b32.xlu0 %v160_v35, %s1737_s1  ;;  %1515 = vmatprep.subr.bf16.mxu1 %v1733_v1 }
 0x163   :  { %714 = vrot.lane.b32.xlu1 %v161_v38, %s1736_s0  ;;  %1512 = vmatmul.mubr.msk.bf16.vlgmr.msra.gmra.mrb[0].mxu1 %vm171_vm3, %v1700_v37 }
 0x164   :  { %1516 = vmatpush3.bf16.msra.mxu1 %v104_v29  ;;  %1517 = vmatprep.mubr.msk.bf16.mxu1 %vm1735_vm1, %v1733_v1 }
 0x165   :  { %280 = vrot.lane.b32.xlu0 %v104_v29, %s1738_s26  ;;  %1521 = vmatprep.subr.bf16.mxu1 %v1733_v1 }
 0x167   :  { %776 = vrot.lane.b32.xlu1 %v105_v30, %s1737_s1 }
 0x169   :  { %897 = vrot.lane.b32.xlu0 %v104_v29, %s1739_s27 }
 0x16b   :  { %837 = vrot.lane.b32.xlu1 %v161_v38, %s1737_s1 }
 0x16d   :  { %343 = vrot.lane.b32.xlu0 %v160_v35, %s1738_s26 }
 0x16f   :  { %282 = vrot.lane.b32.xlu1 %v105_v30, %s1738_s26  ;;  %1518 = vmatmul.mubr.msk.bf16.vlgmr.msra.gmra.mrb[0].mxu1 %vm225_vm4, %v1702_v39 }
 0x170   :  { %1523 = vmatprep.mubr.msk.bf16.mxu1 %vm1735_vm1, %v1733_v1 }
 0x171   :  { %958 = vrot.lane.b32.xlu0 %v160_v35, %s1739_s27 }
 0x173   :  { %899 = vrot.lane.b32.xlu1 %v105_v30, %s1739_s27 }
 0x175   :  { %405 = vrot.lane.b32.xlu0 %v104_v29, %s1740_s30 }
 0x177   :  { %345 = vrot.lane.b32.xlu1 %v161_v38, %s1738_s26 }
 0x179   :  { %1020 = vrot.lane.b32.xlu0 %v104_v29, %s1741_s6 }
 0x17b   :  { %960 = vrot.lane.b32.xlu1 %v161_v38, %s1739_s27 }
 0x17d   :  { %466 = vrot.lane.b32.xlu0 %v160_v35, %s1740_s30 }
 0x17f   :  { %407 = vrot.lane.b32.xlu1 %v105_v30, %s1740_s30 }
 0x181   :  { %1081 = vrot.lane.b32.xlu0 %v160_v35, %s1741_s6 }
 0x183   :  { %1022 = vrot.lane.b32.xlu1 %v105_v30, %s1741_s6 }
 0x185   :  { %528 = vrot.lane.b32.xlu0 %v104_v29, %s1742_s7 }
 0x187   :  { %468 = vrot.lane.b32.xlu1 %v161_v38, %s1740_s30 }
 0x189   :  { %1143 = vrot.lane.b32.xlu0 %v104_v29, %s1743_s8  ;;  %v1711_v29 = vld [vmem:[%s1975_s3 + $0x30] sm:$0xff]  }
 0x18b   :  { %1083 = vrot.lane.b32.xlu1 %v161_v38, %s1741_s6 }
 0x18d   :  { %589 = vrot.lane.b32.xlu0 %v160_v35, %s1742_s7 }
 0x18f   :  { %530 = vrot.lane.b32.xlu1 %v105_v30, %s1742_s7 }
 0x191   :  { %1204 = vrot.lane.b32.xlu0 %v160_v35, %s1743_s8 }
 0x193   :  { %1145 = vrot.lane.b32.xlu1 %v105_v30, %s1743_s8 }
 0x197   :  { %591 = vrot.lane.b32.xlu1 %v161_v38, %s1742_s7 }
 0x19b   :  { %1206 = vrot.lane.b32.xlu1 %v161_v38, %s1743_s8  ;;  %v1713_v38 = vld [vmem:[%s1976_s2 + $0x38] sm:$0xff]  }
 0x1cb   :  { %v654_v40 = vpop.permute.xlu1 %653  ;;  %v652_v41 = vpop.permute.xlu0 %651 }
 0x1cc   :  { %v656_v42 = vsel %vm655_vm5, %v652_v41, %v654_v40 }
 0x1cd   :  { %1558 = vmatpush3.bf16.msra.mxu0 %v656_v42  ;;  %v1714_v42 = vld [vmem:[%s1975_s3 + $0x18] sm:$0xff]  }
 0x1ce   :  { %1563 = vmatprep.subr.bf16.mxu0 %v1733_v1 }
 0x1cf   :  { %v775_v44 = vpop.permute.xlu0 %774 }
 0x1d0   :  { %1560 = vmatmul.mubr.msk.bf16.vlgmr.msra.gmra.mrb[0].mxu0 %vm225_vm4, %v1701_v43  ;;  %v1715_v43 = vld [vmem:[%s1975_s3 + $0x38] sm:$0xff]  }
 0x1d1   :  { %v713_v45 = vpop.permute.xlu1 %712  ;;  %1565 = vmatprep.mubr.msk.bf16.mxu0 %vm1735_vm1, %v1733_v1 }
 0x1d3   :  { %v836_v46 = vpop.permute.xlu0 %835 }
 0x1d5   :  { %v715_v47 = vpop.permute.xlu1 %714 }
 0x1d6   :  { %v716_v48 = vsel %vm655_vm5, %v713_v45, %v715_v47  ;;  %v1716_v47 = vld [vmem:[%s1976_s2 + $0x40] sm:$0xff]  }
 0x1d7   :  { %v721_v49 = vsel %vm175_vm2, %v716_v48, 0  ;;  %v281_v50 = vpop.permute.xlu0 %280 }
 0x1d8   :  { %1564 = vmatpush3.bf16.msra.mxu0 %v721_v49 }
 0x1d9   :  { %v777_v52 = vpop.permute.xlu1 %776  ;;  %1569 = vmatprep.subr.bf16.mxu0 %v1733_v1 }
 0x1da   :  { %v779_v53 = vsel %vm778_vm6, %v775_v44, %v777_v52 }
 0x1db   :  { %v898_v54 = vpop.permute.xlu0 %897 }
 0x1dc   :  { %1566 = vmatmul.mubr.msk.bf16.vlgmr.msra.gmra.mrb[0].mxu0 %vm171_vm3, %v1703_v51 }
 0x1dd   :  { %1570 = vmatpush3.bf16.msra.mxu0 %v779_v53  ;;  %v838_v55 = vpop.permute.xlu1 %837  ;;  %1571 = vmatprep.mubr.msk.bf16.mxu0 %vm1735_vm1, %v1733_v1 }
 0x1de   :  { %1575 = vmatprep.subr.bf16.mxu0 %v1733_v1  ;;  %v839_v61 = vsel %vm778_vm6, %v836_v46, %v838_v55 }
 0x1df   :  { %v344_v57 = vpop.permute.xlu0 %343  ;;  %v844_v63 = vsel %vm175_vm2, %v839_v61, 0 }
 0x1e1   :  { %v283_v56 = vpop.permute.xlu1 %282 }
 0x1e2   :  { %v285_v58 = vsel %vm284_vm7, %v281_v50, %v283_v56  ;;  %v1717_v50 = vld [vmem:[%s1975_s3 + $0x40] sm:$0xff]   ;;  %v1956_v56 = vsel %vm1260_vm15, 1.0, %v1733_v1 }
 0x1e3   :  { %1522 = vmatpush3.bf16.msra.mxu1 %v285_v58  ;;  %v959_v0 = vpop.permute.xlu0 %958 }
 0x1e4   :  { %1527 = vmatprep.subr.bf16.mxu1 %v1733_v1 }
 0x1e5   :  { %v900_v62 = vpop.permute.xlu1 %899 }
 0x1e6   :  { %1524 = vmatmul.mubr.msk.bf16.vlgmr.msra.gmra.mrb[0].mxu1 %vm225_vm4, %v1704_v59  ;;  %v902_v12 = vsel %vm901_vm9, %v898_v54, %v900_v62 }
 0x1e7   :  { %1529 = vmatprep.mubr.msk.bf16.mxu1 %vm1735_vm1, %v1733_v1  ;;  %v406_v7 = vpop.permute.xlu0 %405 }
 0x1e8   :  { %1572 = vmatmul.mubr.msk.bf16.vlgmr.msra.gmra.mrb[0].mxu0 %vm225_vm4, %v1705_v60 }
 0x1e9   :  { %1576 = vmatpush3.bf16.msra.mxu0 %v844_v63  ;;  %v346_v2 = vpop.permute.xlu1 %345  ;;  %1577 = vmatprep.mubr.msk.bf16.mxu0 %vm1735_vm1, %v1733_v1 }
 0x1ea   :  { %v347_v3 = vsel %vm284_vm7, %v344_v57, %v346_v2  ;;  %1581 = vmatprep.subr.bf16.mxu0 %v1733_v1 }
 0x1eb   :  { %v352_v5 = vsel %vm175_vm2, %v347_v3, 0  ;;  %v1021_v13 = vpop.permute.xlu0 %1020 }
 0x1ec   :  { %1528 = vmatpush3.bf16.msra.mxu1 %v352_v5 }
 0x1ed   :  { %v961_v6 = vpop.permute.xlu1 %960  ;;  %1533 = vmatprep.subr.bf16.mxu1 %v1733_v1 }
 0x1ee   :  { %v962_v21 = vsel %vm901_vm9, %v959_v0, %v961_v6 }
 0x1ef   :  { %v467_v17 = vpop.permute.xlu0 %466  ;;  %v967_v24 = vsel %vm175_vm2, %v962_v21, 0 }
 0x1f1   :  { %v408_v10 = vpop.permute.xlu1 %407 }
 0x1f2   :  { %v410_v11 = vsel %vm409_vm8, %v406_v7, %v408_v10  ;;  %1530 = vmatmul.mubr.msk.bf16.vlgmr.msra.gmra.mrb[0].mxu1 %vm171_vm3, %v1706_v8 }
 0x1f3   :  { %1534 = vmatpush3.bf16.msra.mxu1 %v410_v11  ;;  %1535 = vmatprep.mubr.msk.bf16.mxu1 %vm1735_vm1, %v1733_v1  ;;  %v1082_v25 = vpop.permute.xlu0 %1081 }
 0x1f4   :  { %1578 = vmatmul.mubr.msk.bf16.vlgmr.msra.gmra.mrb[0].mxu0 %vm171_vm3, %v1707_v9  ;;  %1539 = vmatprep.subr.bf16.mxu1 %v1733_v1 }
 0x1f5   :  { %1582 = vmatpush3.bf16.msra.mxu0 %v902_v12  ;;  %v1023_v15 = vpop.permute.xlu1 %1022  ;;  %1583 = vmatprep.mubr.msk.bf16.mxu0 %vm1735_vm1, %v1733_v1 }
 0x1f6   :  { %1587 = vmatprep.subr.bf16.mxu0 %v1733_v1  ;;  %v1025_v32 = vsel %vm1024_vm11, %v1021_v13, %v1023_v15 }
 0x1f7   :  { %v529_v27 = vpop.permute.xlu0 %528 }
 0x1f9   :  { %v469_v16 = vpop.permute.xlu1 %468 }
 0x1fa   :  { %v470_v19 = vsel %vm409_vm8, %v467_v17, %v469_v16 }
 0x1fb   :  { %v475_v22 = vsel %vm175_vm2, %v470_v19, 0  ;;  %v1144_v33 = vpop.permute.xlu0 %1143 }
 0x1fd   :  { %v1084_v23 = vpop.permute.xlu1 %1083 }
 0x1fe   :  { %1536 = vmatmul.mubr.msk.bf16.vlgmr.msra.gmra.mrb[0].mxu1 %vm225_vm4, %v1708_v18  ;;  %v1085_v39 = vsel %vm1024_vm11, %v1082_v25, %v1084_v23  ;;  %v1718_v25 = vld [vmem:[%s1977_s4] sm:$0xff]  }
 0x1ff   :  { %1540 = vmatpush3.bf16.msra.mxu1 %v475_v22  ;;  %1541 = vmatprep.mubr.msk.bf16.mxu1 %vm1735_vm1, %v1733_v1  ;;  %v590_v35 = vpop.permute.xlu0 %589  ;;  %v1090_v41 = vsel %vm175_vm2, %v1085_v39, 0 }
 0x200   :  { %1584 = vmatmul.mubr.msk.bf16.vlgmr.msra.gmra.mrb[0].mxu0 %vm225_vm4, %v1709_v20  ;;  %1545 = vmatprep.subr.bf16.mxu1 %v1733_v1 }
 0x201   :  { %1588 = vmatpush3.bf16.msra.mxu0 %v967_v24  ;;  %1589 = vmatprep.mubr.msk.bf16.mxu0 %vm1735_vm1, %v1733_v1  ;;  %v531_v26 = vpop.permute.xlu1 %530 }
 0x202   :  { %1593 = vmatprep.subr.bf16.mxu0 %v1733_v1  ;;  %v533_v30 = vsel %vm532_vm10, %v529_v27, %v531_v26 }
 0x203   :  { %v1205_v46 = vpop.permute.xlu0 %1204 }
 0x205   :  { %v1146_v31 = vpop.permute.xlu1 %1145 }
 0x206   :  { %v1148_v44 = vsel %vm1147_vm12, %v1144_v33, %v1146_v31 }
 0x209   :  { %v592_v34 = vpop.permute.xlu1 %591 }
 0x20a   :  { %1542 = vmatmul.mubr.msk.bf16.vlgmr.msra.gmra.mrb[0].mxu1 %vm171_vm3, %v1710_v28  ;;  %v593_v37 = vsel %vm532_vm10, %v590_v35, %v592_v34 }
 0x20b   :  { %1546 = vmatpush3.bf16.msra.mxu1 %v533_v30  ;;  %1547 = vmatprep.mubr.msk.bf16.mxu1 %vm1735_vm1, %v1733_v1  ;;  %v598_v40 = vsel %vm175_vm2, %v593_v37, 0 }
 0x20c   :  { %1590 = vmatmul.mubr.msk.bf16.vlgmr.msra.gmra.mrb[0].mxu0 %vm171_vm3, %v1711_v29  ;;  %1551 = vmatprep.subr.bf16.mxu1 %v1733_v1 }
 0x20d   :  { %1594 = vmatpush3.bf16.msra.mxu0 %v1025_v32  ;;  %1595 = vmatprep.mubr.msk.bf16.mxu0 %vm1735_vm1, %v1733_v1  ;;  %v1207_v45 = vpop.permute.xlu1 %1206 }
 0x20e   :  { %1599 = vmatprep.subr.bf16.mxu0 %v1733_v1  ;;  %v1208_v48 = vsel %vm1147_vm12, %v1205_v46, %v1207_v45 }
 0x20f   :  { %v1213_v49 = vsel %vm175_vm2, %v1208_v48, 0 }
 0x216   :  { %1548 = vmatmul.mubr.msk.bf16.vlgmr.msra.gmra.mrb[0].mxu1 %vm225_vm4, %v1712_v36 }
 0x217   :  { %1552 = vmatpush3.bf16.msra.mxu1 %v598_v40  ;;  %1553 = vmatprep.mubr.msk.bf16.mxu1 %vm1735_vm1, %v1733_v1 }
 0x218   :  { %1596 = vmatmul.mubr.msk.bf16.vlgmr.msra.gmra.mrb[0].mxu0 %vm225_vm4, %v1713_v38  ;;  %1617 = vmatprep.subr.bf16.mxu1 %v1733_v1 }
 0x219   :  { %1600 = vmatpush3.bf16.msra.mxu0 %v1090_v41  ;;  %1601 = vmatprep.mubr.msk.bf16.mxu0 %vm1735_vm1, %v1733_v1 }
 0x21a   :  { %1605 = vmatprep.subr.bf16.mxu0 %v1733_v1 }
 0x222   :  { %1554 = vmatmul.mubr.msk.bf16.vlgmr.msra.gmra.mrb[0].mxu1 %vm171_vm3, %v1714_v42 }
 0x223   :  { %1619 = vmatprep.mubr.msk.bf16.mxu1 %vm1735_vm1, %v1733_v1 }
 0x224   :  { %1602 = vmatmul.mubr.msk.bf16.vlgmr.msra.gmra.mrb[0].mxu0 %vm171_vm3, %v1715_v43 }
 0x225   :  { %1606 = vmatpush3.bf16.msra.mxu0 %v1148_v44  ;;  %1607 = vmatprep.mubr.msk.bf16.mxu0 %vm1735_vm1, %v1733_v1 }
 0x226   :  { %1611 = vmatprep.subr.bf16.mxu0 %v1733_v1 }
 0x230   :  { %1608 = vmatmul.mubr.msk.bf16.vlgmr.msra.gmra.mrb[0].mxu0 %vm225_vm4, %v1716_v47 }
 0x231   :  { %1612 = vmatpush3.bf16.msra.mxu0 %v1213_v49  ;;  %1613 = vmatprep.mubr.msk.bf16.mxu0 %vm1735_vm1, %v1733_v1 }
 0x23c   :  { %1614 = vmatmul.mubr.msk.bf16.vlgmr.msra.gmra.mrb[0].mxu0 %vm171_vm3, %v1717_v50 }
 0x2f5   :  { %v634_v51 = vpop.f32.mrb[0].mxu1 }
 0x2f6   :  { %v1555_v52 = vpop.f32.mrb[1].mxu1 }
 0x2f7   :  { %v637_v53 = vpop.f32.mrb[2].mxu1 }
 0x2f8   :  { %v1556_v54 = vpop.f32.mrb[3].mxu1 }
 0x30f   :  { %v1249_v55 = vpop.f32.mrb[0].mxu0 }
 0x310   :  { %v1623_v57 = vadd.f32 %v1249_v55, %v634_v51  ;;  %v1615_v58 = vpop.f32.mrb[1].mxu0 }
 0x311   :  { %v1252_v59 = vpop.f32.mrb[2].mxu0 }
 0x312   :  { %v1624_v60 = vadd.f32 %v1252_v59, %v637_v53  ;;  %v1616_v61 = vpop.f32.mrb[3].mxu0  ;;  %v1262_v62 = vmul.f32 %v1623_v57, %v1956_v56 }
 0x314   :  { %1264 = vadd.xlane.f32.xlu0 %v1262_v62  ;;  %v1263_v63 = vmul.f32 %v1624_v60, %v1956_v56 }
 0x316   :  { %1266 = vadd.xlane.f32.xlu1 %v1263_v63 }
 0x3a1   :  { %v1265_v0 = vpop.xlane.xlu0 %1264 }
 0x3a2   :  { %v1268_v14 = vmul.f32 0.015625, %v1265_v0 }
 0x3a3   :  { %v1267_v2 = vpop.xlane.xlu1 %1266 }
 0x3a4   :  { %v1270_v4 = vsub.f32 %v1623_v57, %v1268_v14  ;;  %v1269_v3 = vmul.f32 0.015625, %v1267_v2 }
 0x3a6   :  { %v1271_v5 = vsub.f32 %v1624_v60, %v1269_v3  ;;  %v1272_v6 = vmul.f32 %v1270_v4, %v1270_v4 }
 0x3a8   :  { %v1274_v1 = vmul.f32 %v1272_v6, %v1956_v56  ;;  %v1273_v7 = vmul.f32 %v1271_v5, %v1271_v5 }
 0x3aa   :  { %1276 = vadd.xlane.f32.xlu0 %v1274_v1  ;;  %v1275_v8 = vmul.f32 %v1273_v7, %v1956_v56 }
 0x3ae   :  { %1278 = vadd.xlane.f32.xlu0 %v1275_v8 }
 0x437   :  { %v1277_v9 = vpop.xlane.xlu0 %1276 }
 0x438   :  { %v1280_v10 = vmul.f32 0.015625, %v1277_v9 }
 0x43a   :  { %v1282_v11 = vadd.f32 1e-05, %v1280_v10 }
 0x43b   :  { %v1279_v12 = vpop.xlane.xlu0 %1278 }
 0x43c   :  { %1725 = vrsqrt.f32 %v1282_v11  ;;  %v1281_v13 = vmul.f32 0.015625, %v1279_v12 }
 0x43e   :  { %v1283_v15 = vadd.f32 1e-05, %v1281_v13 }
 0x440   :  { %1727 = vrsqrt.f32 %v1283_v15 }
 0x446   :  { %v1726_v16 = vpop.eup %1725 }
 0x447   :  { %v1286_v17 = vmul.f32 %v1726_v16, %v1270_v4 }
 0x449   :  { %v1290_v20 = vmul.f32 0.2, %v1286_v17  ;;  %vm1288_vm0 = vcmp.ge.f32.partialorder %v1286_v17, 0.0 }
 0x44a   :  { %v1728_v18 = vpop.eup %1727 }
 0x44b   :  { %v1287_v19 = vmul.f32 %v1728_v18, %v1271_v5  ;;  %v1292_v22 = vsel %vm1288_vm0, %v1286_v17, %v1290_v20 }
 0x44d   :  { %vm1289_vm1 = vcmp.ge.f32.partialorder %v1287_v19, 0.0  ;;  %v1291_v21 = vmul.f32 0.2, %v1287_v19 }
 0x44f   :  { %v1293_v23 = vsel %vm1289_vm1, %v1287_v19, %v1291_v21 }
 0x450   :  { %v1296_v24 = vpack.c.bf16 %v1293_v23, %v1292_v22 }
 0x452   :  { %1618 = vmatpush3.bf16.msra.mxu1 %v1296_v24 }
 0x455   :  { %1620 = vmatmul.mubr.msk.bf16.vlgmr.msra.gmra.mrb[4].mxu1 %vm225_vm4, %v1718_v25 }
 0x528   :  { %v1339_v26 = vpop.f32.mrb[4].mxu1 }
 0x529   :  { %v1621_v27 = vpop.f32.mrb[5].mxu1  ;;  %v1346_v28 = vmul.f32 %v1339_v26, %v1956_v56 }
 0x52a   :  { %v1342_v29 = vpop.f32.mrb[6].mxu1 }
 0x52b   :  { %1348 = vadd.xlane.f32.xlu0 %v1346_v28  ;;  %v1347_v30 = vmul.f32 %v1342_v29, %v1956_v56  ;;  %v1622_v31 = vpop.f32.mrb[7].mxu1 }
 0x52d   :  { %1350 = vadd.xlane.f32.xlu1 %v1347_v30 }
 0x5b8   :  { %v1349_v32 = vpop.xlane.xlu0 %1348 }
 0x5b9   :  { %v1352_v33 = vmul.f32 0.015625, %v1349_v32 }
 0x5ba   :  { %v1351_v34 = vpop.xlane.xlu1 %1350 }
 0x5bb   :  { %v1354_v35 = vsub.f32 %v1339_v26, %v1352_v33  ;;  %v1353_v36 = vmul.f32 0.015625, %v1351_v34 }
 0x5bd   :  { %v1355_v37 = vsub.f32 %v1342_v29, %v1353_v36  ;;  %v1356_v38 = vmul.f32 %v1354_v35, %v1354_v35 }
 0x5bf   :  { %v1358_v39 = vmul.f32 %v1356_v38, %v1956_v56  ;;  %v1357_v40 = vmul.f32 %v1355_v37, %v1355_v37 }
 0x5c1   :  { %1360 = vadd.xlane.f32.xlu0 %v1358_v39  ;;  %v1359_v41 = vmul.f32 %v1357_v40, %v1956_v56 }
 0x5c3   :  { %1362 = vadd.xlane.f32.xlu1 %v1359_v41 }
 0x64e   :  { %v1361_v42 = vpop.xlane.xlu0 %1360 }
 0x64f   :  { %v1364_v43 = vmul.f32 0.015625, %v1361_v42 }
 0x650   :  { %v1363_v44 = vpop.xlane.xlu1 %1362 }
 0x651   :  { %v1366_v45 = vadd.f32 1e-05, %v1364_v43  ;;  %v1365_v46 = vmul.f32 0.015625, %v1363_v44 }
 0x653   :  { %1729 = vrsqrt.f32 %v1366_v45  ;;  %v1367_v47 = vadd.f32 1e-05, %v1365_v46 }
 0x655   :  { %1731 = vrsqrt.f32 %v1367_v47 }
 0x65d   :  { %v1730_v48 = vpop.eup %1729 }
 0x65e   :  { %v1370_v49 = vmul.f32 %v1730_v48, %v1354_v35 }
 0x65f   :  { %v1732_v50 = vpop.eup %1731 }
 0x660   :  { %v1374_v51 = vmul.f32 0.2, %v1370_v49  ;;  %v1371_v52 = vmul.f32 %v1732_v50, %v1355_v37  ;;  %vm1372_vm2 = vcmp.ge.f32.partialorder %v1370_v49, 0.0 }
 0x662   :  { %vm1373_vm3 = vcmp.ge.f32.partialorder %v1371_v52, 0.0  ;;  %v1375_v53 = vmul.f32 0.2, %v1371_v52  ;;  %v1376_v54 = vsel %vm1372_vm2, %v1370_v49, %v1374_v51 }
 0x664   :  { %v1377_v55 = vsel %vm1373_vm3, %v1371_v52, %v1375_v53 }
 0x665   :  { %v1469_v56 = vpack.c.bf16 %v1377_v55, %v1376_v54 }
 0x667   :  { %1470 = vst [vmem:[%s1978_s5] sm:$0xff] %v1469_v56  }

// kernel: _lambda_.13
= control target key start
LH: loop header
LB: loop body
LE: loop exit
PB: predicated region body
PF: predicated region fallthrough
CT: control target
= control target key end

     0   :  { %vm32_vm0 = vcmask 1043456   ;;  %v117_v1 = vmov 0   ;;  %vm28_vm1 = vcmask 64512   ;;  %s150_s1 = inlined_call_operand.vmem [shape: bf16[8,256], index: 1, kind: input, shape index: {}]   ;;  %s151_s2 = inlined_call_operand.vmem [shape: f32[3,1], index: 2, kind: input, shape index: {}]   ;;  %s152_s0 = inlined_call_operand.vmem [shape: bf16[3,8], index: 0, kind: input, shape index: {}]   ;;  %s153_s3 = inlined_call_operand.vmem [shape: f32[3,256], index: 3, kind: output, shape index: {}]  }
   0x1   :  { %v16_v0 = vld [vmem:[%s150_s1] sm:$0xff]  ;;  %71 = vmatprep.mubr.bf16.mxu0 %v117_v1  ;;  %106 = vset.pattern.permute.xlu0 %v117_v1 }
   0x2   :  { %v17_v2 = vld [vmem:[%s151_s2] sm:$0x7]  ;;  %v102_v3 = vcombine.high %v16_v0, %v16_v0  ;;  %v101_v4 = vcombine.low %v16_v0, %v16_v0 }
   0x3   :  { %20 = vperm.xlu0 %106, %v17_v2   ;;  %v15_v6 = vld [vmem:[%s152_s0] sm:$0x3] }
   0x4   :  { %103 = vmatprep.subr.msk.bf16.mxu0 %vm32_vm0, %v102_v3  ;;  %v34_v5 = vsel %vm32_vm0, %v101_v4, 0 }
   0x5   :  { %40 = vmatpush1.bf16.msra.mxu0 %v34_v5 }
   0x8   :  { %104 = vmatmul.mubr.msk.bf16.vlgmr.msra.gmra.mrb[0].mxu0 %vm28_vm1, %v15_v6 }
  0x82   :  { %v21_v7 = vpop.permute.xlu0 %20 }
  0xdb   :  { %v73_v8 = vpop.f32.mrb[0].mxu0 }
  0xdc   :  { %v74_v9 = vadd.f32 %v73_v8, %v21_v7  ;;  %v75_v10 = vpop.f32.mrb[1].mxu0 }
  0xdd   :  { %v76_v11 = vadd.f32 %v75_v10, %v21_v7  ;;  %v77_v12 = vpop.f32.mrb[2].mxu0 }
  0xde   :  { %v80_v13 = vsub.f32 0.0, %v74_v9  ;;  %v78_v14 = vpop.f32.mrb[3].mxu0 }
  0xdf   :  { %v81_v15 = vsub.f32 0.0, %v76_v11 }
  0xe0   :  { %v82_v16 = vmul.f32 1.442695, %v80_v13 }
  0xe1   :  { %v84_v17 = vmul.f32 1.442695, %v81_v15 }
  0xe2   :  { %109 = vpow2.f32 %v82_v16 }
  0xe3   :  { %111 = vpow2.f32 %v84_v17 }
  0xec   :  { %v110_v18 = vpop.eup %109 }
  0xed   :  { %v112_v19 = vpop.eup %111  ;;  %v86_v20 = vadd.f32 1.0, %v110_v18 }
  0xee   :  { %v87_v21 = vadd.f32 1.0, %v112_v19 }
  0xef   :  { %113 = vrcp.f32 %v86_v20 }
  0xf0   :  { %115 = vrcp.f32 %v87_v21 }
  0xf9   :  { %v114_v22 = vpop.eup %113 }
  0xfa   :  { %v116_v23 = vpop.eup %115 }
  0xfb   :  { %v94_v24 = vcombine.low %v114_v22, %v116_v23 }
  0xfd   :  { %96 = vst [vmem:[%s153_s3] sm:$0x77] %v94_v24 }

// kernel: _lambda_.12
= control target key start
LH: loop header
LB: loop body
LE: loop exit
PB: predicated region body
PF: predicated region fallthrough
CT: control target
= control target key end

     0   :  { %v21_v0 = vlaneseq  ;;  %v2730_v1 = vmov 0.0   ;;  %s2735_s29 = smov 126   ;;  %s2736_s7 = smov 110   ;;  %s3377_s0 = inlined_call_operand.vmem [shape: bf16[16,422], index: 0, kind: input, shape index: {}]   ;;  %s3378_s1 = inlined_call_operand.vmem [shape: bf16[4,422], index: 1, kind: input, shape index: {}]   ;;  %s3379_s3 = inlined_call_operand.vmem [shape: bf16[9,8,4], index: 3, kind: input, shape index: {}]   ;;  %s3380_s2 = inlined_call_operand.vmem [shape: bf16[9,8,16], index: 2, kind: input, shape index: {}]   ;;  %s3381_s4 = inlined_call_operand.vmem [shape: bf16[8,8], index: 4, kind: input, shape index: {}]   ;;  %s3382_s5 = inlined_call_operand.vmem [shape: bf16[8,384], index: 5, kind: output, shape index: {}]  }
   0x1   :  { %2458 = vmatprep.subr.bf16.mxu1 %v2730_v1  ;;  %v2806_v32 = vld [vmem:[%s3377_s0] sm:$0xff]  ;;  %v2811_v33 = vld [vmem:[%s3377_s0 + $0x10] sm:$0xff]  ;;  %v2827_v36 = vld [vmem:[%s3377_s0 + $0x8] sm:$0xff]  ;;  %s2737_s8 = smov 109   ;;  %s2738_s9 = smov 108  }
   0x2   :  { %v22_v2 = vand.u32 127, %v21_v0  ;;  %v2832_v37 = vld [vmem:[%s3377_s0 + $0x18] sm:$0xff]  ;;  %v86_v39 = vunpack.c.l.bf16 %v2806_v32  ;;  %v90_v40 = vunpack.c.l.bf16 %v2811_v33  ;;  %v87_v42 = vunpack.c.h.bf16 %v2806_v32  ;;  %v2853_v44 = vld [vmem:[%s3378_s1] sm:$0xff]  ;;  %s2734_s1 = smov 127   ;;  %s2739_s10 = smov 92  }
   0x3   :  { %v91_v43 = vunpack.c.h.bf16 %v2811_v33  ;;  %v88_v45 = vunpack.c.l.bf16 %v2827_v36  ;;  %v92_v46 = vunpack.c.l.bf16 %v2832_v37  ;;  %v89_v48 = vunpack.c.h.bf16 %v2827_v36  ;;  %s2740_s11 = smov 91   ;;  %s2741_s12 = smov 90  }
   0x4   :  { %v23_v3 = vadd.s32 128, %v22_v2  ;;  %v24_v4 = vadd.s32 256, %v22_v2  ;;  %v25_v5 = vadd.s32 384, %v22_v2  ;;  %v2774_v6 = vcvt.s32.f32 %v22_v2 }
   0x5   :  { %v93_v49 = vunpack.c.h.bf16 %v2832_v37  ;;  %v173_v53 = vunpack.c.l.bf16 %v2853_v44  ;;  %v174_v61 = vunpack.c.h.bf16 %v2853_v44  ;;  %v208_v35 = vshrl.u32 %v21_v0, 7 }
   0x6   :  { %v2776_v7 = vcvt.s32.f32 %v23_v3  ;;  %v2778_v8 = vcvt.s32.f32 %v24_v4  ;;  %v29_v9 = vcvt.s32.f32 %v25_v5  ;;  %v30_v10 = vadd.f32 0.5, %v2774_v6 }
   0x8   :  { %v31_v11 = vadd.f32 0.5, %v2776_v7  ;;  %v32_v12 = vadd.f32 0.5, %v2778_v8  ;;  %v33_v13 = vadd.f32 0.5, %v29_v9  ;;  %v34_v14 = vmul.f32 0.055555556, %v30_v10 }
   0xa   :  { %v35_v15 = vmul.f32 0.055555556, %v31_v11  ;;  %v36_v16 = vmul.f32 0.055555556, %v32_v12  ;;  %v37_v17 = vmul.f32 0.055555556, %v33_v13  ;;  %v38_v18 = vfloor.f32 %v34_v14 }
   0xc   :  { %v39_v19 = vfloor.f32 %v35_v15  ;;  %v40_v20 = vfloor.f32 %v36_v16  ;;  %v41_v21 = vfloor.f32 %v37_v17  ;;  %v42_v22 = vmul.f32 18.0, %v38_v18 }
   0xd   :  { %vm50_vm0 = vcmp.ge.f32.partialorder %v38_v18, 1.0  ;;  %vm54_vm1 = vcmp.lt.f32.partialorder %v38_v18, 17.0 }
   0xe   :  { %v43_v23 = vmul.f32 18.0, %v39_v19  ;;  %v44_v24 = vmul.f32 18.0, %v40_v20  ;;  %v45_v25 = vmul.f32 18.0, %v41_v21  ;;  %v2784_v26 = vsub.f32 %v2774_v6, %v42_v22  ;;  %vm2786_vm6 = vmand %vm50_vm0, %vm54_vm1 }
   0xf   :  { %vm51_vm2 = vcmp.ge.f32.partialorder %v39_v19, 1.0  ;;  %vm52_vm3 = vcmp.ge.f32.partialorder %v40_v20, 1.0  ;;  %vm53_vm4 = vcmp.ge.f32.partialorder %v41_v21, 1.0  ;;  %vm55_vm5 = vcmp.lt.f32.partialorder %v39_v19, 17.0 }
  0x10   :  { %v2791_v28 = vsub.f32 %v2776_v7, %v43_v23  ;;  %v2794_v29 = vsub.f32 %v2778_v8, %v44_v24  ;;  %v49_v30 = vsub.f32 %v29_v9, %v45_v25  ;;  %vm56_vm7 = vcmp.lt.f32.partialorder %v40_v20, 17.0  ;;  %vm59_vm8 = vmand %vm51_vm2, %vm55_vm5 }
  0x11   :  { %vm57_vm9 = vcmp.lt.f32.partialorder %v41_v21, 17.0  ;;  %vm60_vm10 = vmand %vm52_vm3, %vm56_vm7  ;;  %vm62_vm11 = vcmp.ge.f32.partialorder %v2784_v26, 1.0  ;;  %vm70_vm2 = vcmp.lt.f32.partialorder %v2784_v26, 17.0  ;;  %v2731_v25 = vmov 839922192  }
  0x12   :  { %vm2797_vm12 = vmand %vm53_vm4, %vm57_vm9  ;;  %vm63_vm13 = vcmp.ge.f32.partialorder %v2791_v28, 1.0  ;;  %vm64_vm14 = vcmp.ge.f32.partialorder %v2794_v29, 1.0  ;;  %vm65_vm15 = vcmp.ge.f32.partialorder %v49_v30, 1.0  ;;  %vm71_vm4 = vcmp.lt.f32.partialorder %v2791_v28, 17.0 }
  0x13   :  { %vm2815_vm0 = vmand %vm2786_vm6, %vm62_vm11  ;;  %vm72_vm6 = vcmp.lt.f32.partialorder %v2794_v29, 17.0  ;;  %vm73_vm7 = vcmp.lt.f32.partialorder %v49_v30, 17.0  ;;  %vm104_vm9 = vcmask 310272   ;;  %vm191_vm11 = vcmask 1043456  }
  0x14   :  { %vm2819_vm1 = vmand %vm59_vm8, %vm63_vm13  ;;  %v205_v27 = vunpack.c.l.s4 %v2731_v25 }
  0x15   :  { %vm2834_vm3 = vmand %vm60_vm10, %vm64_vm14  ;;  %vm197_vm14 = vcmask 306176  }
  0x16   :  { %vm2843_vm5 = vmand %vm2797_vm12, %vm65_vm15  ;;  %v206_v34 = vunpack.c.0.s8 %v205_v27  ;;  %vm2732_vm15 = vmmov 0  }
  0x17   :  { %vm74_vm8 = vmand %vm2815_vm0, %vm70_vm2  ;;  %2460 = vmatprep.mubr.msk.bf16.mxu1 %vm2732_vm15, %v2730_v1  ;;  %vm263_vm0 = vcmask 1041408   ;;  %vm354_vm2 = vcmask 130048  }
  0x18   :  { %vm75_vm10 = vmand %vm2819_vm1, %vm71_vm4  ;;  %v2862_v47 = vsel %vm74_vm8, 1.0, %v2730_v1  ;;  %vm259_vm1 = vcmask 31744   ;;  %vm670_vm4 = vcmask 1031168   ;;  %vm1522_vm8 = vcmask 752640  }
  0x19   :  { %vm76_vm12 = vmand %vm2834_vm3, %vm72_vm6  ;;  %v2869_v50 = vsel %vm75_vm10, 1.0, %v2730_v1  ;;  %v94_v51 = vmul.f32 %v86_v39, %v2862_v47  ;;  %v98_v52 = vmul.f32 %v90_v40, %v2862_v47  ;;  %vm453_vm3 = vcmask 1039360  }
  0x1a   :  { %vm77_vm13 = vmand %vm2843_vm5, %vm73_vm7  ;;  %v2882_v54 = vsel %vm76_vm12, 1.0, %v2730_v1  ;;  %v95_v55 = vmul.f32 %v87_v42, %v2869_v50  ;;  %v99_v56 = vmul.f32 %v91_v43, %v2869_v50  ;;  %v2890_v57 = vcombine.low %v2862_v47, %v2869_v50 }
  0x1b   :  { %v2893_v58 = vsel %vm77_vm13, 1.0, %v2730_v1  ;;  %v96_v59 = vmul.f32 %v88_v45, %v2882_v54  ;;  %v100_v60 = vmul.f32 %v92_v46, %v2882_v54  ;;  %vm883_vm5 = vcmask 900096  }
  0x1c   :  { %v97_v62 = vmul.f32 %v89_v48, %v2893_v58  ;;  %v102_v63 = vadd.f32 %v95_v55, %v94_v51  ;;  %v101_v2 = vmul.f32 %v93_v49, %v2893_v58  ;;  %v109_v3 = vadd.f32 %v99_v56, %v98_v52 }
  0x1d   :  { %v2906_v4 = vcombine.low %v2882_v54, %v2893_v58  ;;  %v183_v5 = vmul.f32 %v2890_v57, %v173_v53  ;;  %v2929_v56 = vsub.s32 %v206_v34, %v208_v35  ;;  %vm1096_vm6 = vcmask 891904  }
  0x1e   :  { %v103_v9 = vadd.f32 %v102_v63, %v96_v59  ;;  %v105_v10 = vsel %vm104_vm9, %v97_v62, 0.0  ;;  %v110_v11 = vadd.f32 %v109_v3, %v100_v60  ;;  %v111_v12 = vsel %vm104_vm9, %v101_v2, 0.0 }
  0x1f   :  { %v184_v13 = vmul.f32 %v2906_v4, %v174_v61  ;;  %v187_v14 = vcombine.high %v183_v5, %v183_v5  ;;  %v192_v15 = vsel %vm191_vm11, %v183_v5, 0.0  ;;  %vm1309_vm7 = vcmask 883712  }
  0x20   :  { %v106_v16 = vadd.f32 %v105_v10, %v103_v9  ;;  %v112_v20 = vadd.f32 %v111_v12, %v110_v11  ;;  %vm1948_vm10 = vcmask 736256   ;;  %vm2151_vm12 = vcmp.lt.f32.partialorder %v2784_v26, 16.0 }
  0x21   :  { %v188_v17 = vcombine.high %v184_v13, %v184_v13  ;;  %v193_v18 = vsel %vm191_vm11, %v187_v14, 0.0  ;;  %v195_v19 = vsel %vm191_vm11, %v184_v13, 0.0  ;;  %vm2154_vm13 = vcmp.lt.f32.partialorder %v2774_v6, 288.0 }
  0x22   :  { %107 = vadd.xlane.f32.xlu0 %v106_v16  ;;  %v194_v21 = vadd.f32 %v193_v18, %v192_v15 }
  0x23   :  { %v198_v22 = vsel %vm197_vm14, %v188_v17, 0.0 }
  0x24   :  { %v196_v23 = vadd.f32 %v195_v19, %v194_v21 }
  0x26   :  { %113 = vadd.xlane.f32.xlu0 %v112_v20  ;;  %v199_v24 = vadd.f32 %v198_v22, %v196_v23 }
  0x28   :  { %200 = vadd.xlane.f32.xlu1 %v199_v24 }
  0xaf   :  { %v108_v30 = vpop.xlane.xlu0 %107 }
  0xb0   :  { %v116_v31 = vmul.f32 0.00390625, %v108_v30 }
  0xb2   :  { %v2921_v36 = vsub.f32 %v86_v39, %v116_v31  ;;  %v2923_v38 = vsub.f32 %v87_v42, %v116_v31  ;;  %v2925_v41 = vsub.f32 %v88_v45, %v116_v31  ;;  %v2927_v51 = vsub.f32 %v89_v48, %v116_v31 }
  0xb3   :  { %v114_v52 = vpop.xlane.xlu0 %113 }
  0xb4   :  { %v117_v55 = vmul.f32 0.00390625, %v114_v52  ;;  %v126_v59 = vmul.f32 %v2921_v36, %v2921_v36  ;;  %v127_v0 = vmul.f32 %v2923_v38, %v2923_v38  ;;  %v128_v32 = vmul.f32 %v2925_v41, %v2925_v41 }
  0xb5   :  { %v201_v60 = vpop.xlane.xlu1 %200  ;;  %v129_v39 = vmul.f32 %v2927_v51, %v2927_v51 }
  0xb6   :  { %v2941_v42 = vsub.f32 %v90_v40, %v117_v55  ;;  %v2945_v45 = vsub.f32 %v91_v43, %v117_v55  ;;  %v124_v48 = vsub.f32 %v92_v46, %v117_v55  ;;  %v202_v62 = vmul.f32 0.00390625, %v201_v60 }
  0xb7   :  { %v134_v63 = vmul.f32 %v126_v59, %v2862_v47  ;;  %v135_v2 = vmul.f32 %v127_v0, %v2869_v50  ;;  %v137_v3 = vmul.f32 %v129_v39, %v2893_v58  ;;  %v2955_v40 = vsub.f32 %v93_v49, %v117_v55 }
  0xb8   :  { %v210_v5 = vrot.slane %v202_v62, %v2929_v56  ;;  %v130_v33 = vmul.f32 %v2941_v42, %v2941_v42  ;;  %v131_v43 = vmul.f32 %v2945_v45, %v2945_v45  ;;  %v136_v46 = vmul.f32 %v128_v32, %v2882_v54 }
  0xb9   :  { %v142_v9 = vadd.f32 %v135_v2, %v134_v63  ;;  %v132_v10 = vmul.f32 %v124_v48, %v124_v48  ;;  %v133_v37 = vmul.f32 %v2955_v40, %v2955_v40  ;;  %v144_v44 = vsel %vm104_vm9, %v137_v3, 0.0 }
  0xba   :  { %v2964_v11 = vsub.f32 %v173_v53, %v210_v5  ;;  %v2966_v12 = vsub.f32 %v174_v61, %v210_v5  ;;  %v138_v49 = vmul.f32 %v130_v33, %v2862_v47  ;;  %v139_v14 = vmul.f32 %v131_v43, %v2869_v50 }
  0xbb   :  { %v143_v13 = vadd.f32 %v142_v9, %v136_v46  ;;  %v141_v53 = vmul.f32 %v133_v37, %v2893_v58  ;;  %v140_v17 = vmul.f32 %v132_v10, %v2882_v54 }
  0xbc   :  { %v214_v15 = vmul.f32 %v2964_v11, %v2964_v11  ;;  %v215_v16 = vmul.f32 %v2966_v12, %v2966_v12  ;;  %v148_v18 = vadd.f32 %v139_v14, %v138_v49 }
  0xbd   :  { %v145_v61 = vadd.f32 %v144_v44, %v143_v13  ;;  %v150_v20 = vsel %vm104_vm9, %v141_v53, 0.0  ;;  %vm1735_vm9 = vcmask 744448  }
  0xbe   :  { %v216_v19 = vmul.f32 %v214_v15, %v2890_v57  ;;  %v217_v47 = vmul.f32 %v215_v16, %v2906_v4  ;;  %v149_v50 = vadd.f32 %v148_v18, %v140_v17  ;;  %v2733_v4 = vmov 0   ;;  %v257_v16 = vld [vmem:[%s3380_s2] sm:$0xf] }
  0xbf   :  { %146 = vadd.xlane.f32.xlu1 %v145_v61  ;;  %305 = vmatprep.mubr.bf16.mxu0 %v2733_v4 }
  0xc0   :  { %v220_v21 = vcombine.high %v216_v19, %v216_v19  ;;  %v221_v22 = vcombine.high %v217_v47, %v217_v47  ;;  %v224_v23 = vsel %vm191_vm11, %v216_v19, 0.0  ;;  %v151_v24 = vadd.f32 %v150_v20, %v149_v50  ;;  %v2357_v19 = vld [vmem:[%s3380_s2 + $0x4] sm:$0xf] }
  0xc1   :  { %v227_v58 = vsel %vm191_vm11, %v217_v47, 0.0 }
  0xc2   :  { %v225_v25 = vsel %vm191_vm11, %v220_v21, 0.0  ;;  %152 = vadd.xlane.f32.xlu0 %v151_v24  ;;  %v229_v27 = vsel %vm197_vm14, %v221_v22, 0.0  ;;  %vm2152_vm14 = vcmp.lt.f32.partialorder %v2791_v28, 16.0 }
  0xc3   :  { %v226_v54 = vadd.f32 %v225_v25, %v224_v23 }
  0xc5   :  { %v228_v57 = vadd.f32 %v227_v58, %v226_v54 }
  0xc7   :  { %v230_v30 = vadd.f32 %v229_v27, %v228_v57  ;;  %v2360_v57 = vld [vmem:[%s3379_s3 + $0x4] sm:$0xf] }
  0xc9   :  { %231 = vadd.xlane.f32.xlu1 %v230_v30 }
 0x14c   :  { %v147_v31 = vpop.xlane.xlu1 %146 }
 0x14d   :  { %v154_v34 = vmul.f32 0.00390625, %v147_v31 }
 0x14f   :  { %v156_v35 = vadd.f32 1e-05, %v154_v34  ;;  %v153_v52 = vpop.xlane.xlu0 %152 }
 0x150   :  { %v155_v55 = vmul.f32 0.00390625, %v153_v52 }
 0x151   :  { %2720 = vrsqrt.f32 %v156_v35 }
 0x152   :  { %v157_v59 = vadd.f32 1e-05, %v155_v55 }
 0x154   :  { %2722 = vrsqrt.f32 %v157_v59 }
 0x156   :  { %v232_v0 = vpop.xlane.xlu1 %231 }
 0x157   :  { %v233_v60 = vmul.f32 0.00390625, %v232_v0 }
 0x159   :  { %v234_v32 = vadd.f32 1e-05, %v233_v60 }
 0x15b   :  { %2724 = vrsqrt.f32 %v234_v32  ;;  %v2721_v39 = vpop.eup %2720 }
 0x15c   :  { %v162_v63 = vmul.f32 %v2721_v39, %v2925_v41  ;;  %v161_v3 = vmul.f32 %v2721_v39, %v2923_v38  ;;  %v160_v41 = vmul.f32 %v2721_v39, %v2921_v36  ;;  %v163_v37 = vmul.f32 %v2721_v39, %v2927_v51 }
 0x15e   :  { %v2723_v62 = vpop.eup %2722 }
 0x15f   :  { %v166_v2 = vmul.f32 %v2723_v62, %v124_v48  ;;  %v165_v5 = vmul.f32 %v2723_v62, %v2945_v45  ;;  %v164_v46 = vmul.f32 %v2723_v62, %v2941_v42  ;;  %v167_v45 = vmul.f32 %v2723_v62, %v2955_v40 }
 0x161   :  { %v2992_v33 = vpack.c.bf16 %v166_v2, %v162_v63  ;;  %v2994_v43 = vpack.c.bf16 %v165_v5, %v161_v3  ;;  %v3003_v9 = vpack.c.bf16 %v164_v46, %v160_v41  ;;  %v2364_v63 = vld [vmem:[%s3380_s2 + $0x8] sm:$0xf] }
 0x163   :  { %449 = vrot.lane.b32.xlu1 %v2992_v33, %s2734_s1  ;;  %447 = vrot.lane.b32.xlu0 %v2994_v43, %s2734_s1 }
 0x165   :  { %v2725_v48 = vpop.eup %2724 }
 0x166   :  { %v243_v38 = vrot.slane %v2725_v48, %v2929_v56  ;;  %v3015_v56 = vpack.c.bf16 %v167_v45, %v163_v37  ;;  %v2367_v45 = vld [vmem:[%s3379_s3 + $0x8] sm:$0xf] }
 0x167   :  { %445 = vrot.lane.b32.xlu1 %v3003_v9, %s2734_s1 }
 0x168   :  { %v245_v10 = vmul.f32 %v243_v38, %v2964_v11  ;;  %v246_v42 = vmul.f32 %v243_v38, %v2966_v12  ;;  %v258_v11 = vld [vmem:[%s3379_s3] sm:$0xf] }
 0x16a   :  { %v249_v49 = vcombine.high %v245_v10, %v245_v10  ;;  %v3011_v13 = vpack.c.bf16 %v245_v10, %v245_v10  ;;  %v3013_v36 = vpack.c.bf16 %v246_v42, %v246_v42  ;;  %v250_v12 = vcombine.high %v246_v42, %v246_v42 }
 0x16b   :  { %451 = vrot.lane.b32.xlu1 %v3015_v56, %s2734_s1 }
 0x16c   :  { %v3017_v14 = vpack.c.bf16 %v249_v49, %v249_v49  ;;  %553 = vrot.lane.b32.xlu0 %v3011_v13, %s2734_s1  ;;  %v271_v40 = vsel %vm263_vm0, %v3013_v36, 0  ;;  %v265_v51 = vsel %vm263_vm0, %v3011_v13, 0  ;;  %v3041_v15 = vpack.c.bf16 %v250_v12, %v250_v12 }
 0x16d   :  { %2459 = vmatpush3.bf16.msra.mxu1 %v271_v40  ;;  %v2371_v40 = vld [vmem:[%s3380_s2 + $0xc] sm:$0xf] }
 0x16e   :  { %2352 = vmatprep.subr.msk.bf16.mxu0 %vm263_vm0, %v3017_v14  ;;  %2464 = vmatprep.subr.bf16.mxu1 %v2730_v1 }
 0x16f   :  { %274 = vmatpush1.bf16.msra.mxu0 %v265_v51  ;;  %555 = vrot.lane.b32.xlu1 %v3017_v14, %s2734_s1 }
 0x170   :  { %557 = vrot.lane.b32.xlu0 %v3013_v36, %s2734_s1  ;;  %358 = vmatprep.subr.bf16.mxu0 %v2994_v43 }
 0x171   :  { %2461 = vmatmul.mubr.msk.bf16.vlgmr.msra.gmra.mrb[0].mxu1 %vm259_vm1, %v258_v11 }
 0x172   :  { %2465 = vmatpush3.bf16.msra.mxu1 %v2992_v33  ;;  %2353 = vmatmul.mubr.msk.bf16.vlgmr.msra.gmra.mrb[0].mxu0 %vm259_vm1, %v258_v11 }
 0x173   :  { %359 = vmatpush1.bf16.msra.mxu0 %v3003_v9  ;;  %390 = vmatprep.mubr.bf16.mxu0 %v2733_v4 }
 0x174   :  { %664 = vrot.lane.b32.xlu0 %v2994_v43, %s2735_s29  ;;  %2466 = vmatprep.mubr.msk.bf16.mxu1 %vm2732_vm15, %v2730_v1 }
 0x175   :  { %559 = vrot.lane.b32.xlu1 %v3041_v15, %s2734_s1  ;;  %2470 = vmatprep.subr.bf16.mxu1 %v2730_v1 }
 0x178   :  { %662 = vrot.lane.b32.xlu0 %v3003_v9, %s2735_s29 }
 0x179   :  { %666 = vrot.lane.b32.xlu1 %v2992_v33, %s2735_s29 }
 0x17c   :  { %766 = vrot.lane.b32.xlu0 %v3011_v13, %s2735_s29 }
 0x17d   :  { %668 = vrot.lane.b32.xlu1 %v3015_v56, %s2735_s29  ;;  %2467 = vmatmul.mubr.msk.bf16.vlgmr.msra.gmra.mrb[0].mxu1 %vm354_vm2, %v257_v16 }
 0x17e   :  { %2355 = vmatmul.mubr.msk.bf16.vlgmr.msra.gmra.mrb[0].mxu0 %vm354_vm2, %v257_v16  ;;  %2472 = vmatprep.mubr.msk.bf16.mxu1 %vm2732_vm15, %v2730_v1 }
 0x17f   :  { %495 = vmatprep.mubr.bf16.mxu0 %v2733_v4 }
 0x180   :  { %770 = vrot.lane.b32.xlu0 %v3013_v36, %s2735_s29 }
 0x181   :  { %768 = vrot.lane.b32.xlu1 %v3017_v14, %s2735_s29 }
 0x184   :  { %877 = vrot.lane.b32.xlu0 %v2994_v43, %s2736_s7 }
 0x185   :  { %772 = vrot.lane.b32.xlu1 %v3041_v15, %s2735_s29 }
 0x188   :  { %875 = vrot.lane.b32.xlu0 %v3003_v9, %s2736_s7 }
 0x189   :  { %879 = vrot.lane.b32.xlu1 %v2992_v33, %s2736_s7 }
 0x18c   :  { %979 = vrot.lane.b32.xlu0 %v3011_v13, %s2736_s7 }
 0x18d   :  { %881 = vrot.lane.b32.xlu1 %v3015_v56, %s2736_s7 }
 0x190   :  { %983 = vrot.lane.b32.xlu0 %v3013_v36, %s2736_s7 }
 0x191   :  { %981 = vrot.lane.b32.xlu1 %v3017_v14, %s2736_s7 }
 0x194   :  { %1090 = vrot.lane.b32.xlu0 %v2994_v43, %s2737_s8 }
 0x195   :  { %985 = vrot.lane.b32.xlu1 %v3041_v15, %s2736_s7 }
 0x198   :  { %1088 = vrot.lane.b32.xlu0 %v3003_v9, %s2737_s8 }
 0x199   :  { %1092 = vrot.lane.b32.xlu1 %v2992_v33, %s2737_s8 }
 0x19c   :  { %1192 = vrot.lane.b32.xlu0 %v3011_v13, %s2737_s8 }
 0x19d   :  { %1094 = vrot.lane.b32.xlu1 %v3015_v56, %s2737_s8 }
 0x1a0   :  { %1196 = vrot.lane.b32.xlu0 %v3013_v36, %s2737_s8 }
 0x1a1   :  { %1194 = vrot.lane.b32.xlu1 %v3017_v14, %s2737_s8 }
 0x1a4   :  { %1303 = vrot.lane.b32.xlu0 %v2994_v43, %s2738_s9 }
 0x1a5   :  { %1198 = vrot.lane.b32.xlu1 %v3041_v15, %s2737_s8 }
 0x1a8   :  { %1301 = vrot.lane.b32.xlu0 %v3003_v9, %s2738_s9 }
 0x1a9   :  { %1305 = vrot.lane.b32.xlu1 %v2992_v33, %s2738_s9 }
 0x1ac   :  { %1405 = vrot.lane.b32.xlu0 %v3011_v13, %s2738_s9 }
 0x1ad   :  { %1307 = vrot.lane.b32.xlu1 %v3015_v56, %s2738_s9 }
 0x1b0   :  { %1409 = vrot.lane.b32.xlu0 %v3013_v36, %s2738_s9 }
 0x1b1   :  { %1407 = vrot.lane.b32.xlu1 %v3017_v14, %s2738_s9 }
 0x1b4   :  { %1516 = vrot.lane.b32.xlu0 %v2994_v43, %s2739_s10 }
 0x1b5   :  { %1411 = vrot.lane.b32.xlu1 %v3041_v15, %s2738_s9 }
 0x1b8   :  { %1514 = vrot.lane.b32.xlu0 %v3003_v9, %s2739_s10 }
 0x1b9   :  { %1518 = vrot.lane.b32.xlu1 %v2992_v33, %s2739_s10 }
 0x1bc   :  { %1618 = vrot.lane.b32.xlu0 %v3011_v13, %s2739_s10 }
 0x1bd   :  { %1520 = vrot.lane.b32.xlu1 %v3015_v56, %s2739_s10 }
 0x1c0   :  { %1622 = vrot.lane.b32.xlu0 %v3013_v36, %s2739_s10 }
 0x1c1   :  { %1620 = vrot.lane.b32.xlu1 %v3017_v14, %s2739_s10 }
 0x1c4   :  { %1729 = vrot.lane.b32.xlu0 %v2994_v43, %s2740_s11 }
 0x1c5   :  { %1624 = vrot.lane.b32.xlu1 %v3041_v15, %s2739_s10 }
 0x1c8   :  { %1727 = vrot.lane.b32.xlu0 %v3003_v9, %s2740_s11 }
 0x1c9   :  { %1731 = vrot.lane.b32.xlu1 %v2992_v33, %s2740_s11 }
 0x1cc   :  { %1831 = vrot.lane.b32.xlu0 %v3011_v13, %s2740_s11 }
 0x1cd   :  { %1733 = vrot.lane.b32.xlu1 %v3015_v56, %s2740_s11 }
 0x1d0   :  { %1835 = vrot.lane.b32.xlu0 %v3013_v36, %s2740_s11 }
 0x1d1   :  { %1833 = vrot.lane.b32.xlu1 %v3017_v14, %s2740_s11 }
 0x1d4   :  { %1942 = vrot.lane.b32.xlu0 %v2994_v43, %s2741_s12 }
 0x1d5   :  { %1837 = vrot.lane.b32.xlu1 %v3041_v15, %s2740_s11  ;;  %v450_v44 = vpop.permute.xlu1 %449  ;;  %v448_v53 = vpop.permute.xlu0 %447 }
 0x1d6   :  { %v455_v61 = vsel %vm453_vm3, %v448_v53, %v450_v44 }
 0x1d7   :  { %463 = vmatprep.subr.bf16.mxu0 %v455_v61 }
 0x1d8   :  { %1940 = vrot.lane.b32.xlu0 %v3003_v9, %s2741_s12 }
 0x1d9   :  { %1944 = vrot.lane.b32.xlu1 %v2992_v33, %s2741_s12  ;;  %v446_v17 = vpop.permute.xlu1 %445 }
 0x1da   :  { %v454_v18 = vsel %vm453_vm3, %v446_v17, %v448_v53  ;;  %v2374_v17 = vld [vmem:[%s3379_s3 + $0xc] sm:$0xf] }
 0x1db   :  { %464 = vmatpush1.bf16.msra.mxu0 %v454_v18 }
 0x1dc   :  { %2044 = vrot.lane.b32.xlu0 %v3011_v13, %s2741_s12 }
 0x1dd   :  { %1946 = vrot.lane.b32.xlu1 %v3015_v56, %s2741_s12  ;;  %v452_v50 = vpop.permute.xlu1 %451 }
 0x1de   :  { %v554_v47 = vpop.permute.xlu0 %553  ;;  %v456_v20 = vsel %vm453_vm3, %v450_v44, %v452_v50  ;;  %2358 = vmatmul.mubr.msk.bf16.vlgmr.msra.gmra.mrb[0].mxu0 %vm354_vm2, %v2357_v19 }
 0x1df   :  { %2471 = vmatpush3.bf16.msra.mxu1 %v456_v20  ;;  %608 = vmatprep.mubr.bf16.mxu0 %v2733_v4 }
 0x1e0   :  { %2048 = vrot.lane.b32.xlu0 %v3013_v36, %s2741_s12  ;;  %2476 = vmatprep.subr.bf16.mxu1 %v2730_v1 }
 0x1e1   :  { %2046 = vrot.lane.b32.xlu1 %v3017_v14, %s2741_s12  ;;  %v556_v22 = vpop.permute.xlu1 %555 }
 0x1e2   :  { %v558_v21 = vpop.permute.xlu0 %557  ;;  %2473 = vmatmul.mubr.msk.bf16.vlgmr.msra.gmra.mrb[0].mxu1 %vm354_vm2, %v2357_v19  ;;  %v561_v23 = vsel %vm453_vm3, %v554_v47, %v556_v22 }
 0x1e3   :  { %v562_v24 = vsel %vm453_vm3, %v556_v22, %v558_v21  ;;  %2478 = vmatprep.mubr.msk.bf16.mxu1 %vm2732_vm15, %v2730_v1  ;;  %v568_v25 = vsel %vm263_vm0, %v561_v23, 0 }
 0x1e4   :  { %2361 = vmatprep.subr.msk.bf16.mxu0 %vm263_vm0, %v562_v24  ;;  %v2378_v24 = vld [vmem:[%s3380_s2 + $0x10] sm:$0xf] }
 0x1e5   :  { %2050 = vrot.lane.b32.xlu1 %v3041_v15, %s2741_s12  ;;  %577 = vmatpush1.bf16.msra.mxu0 %v568_v25 }
 0x1e6   :  { %v665_v58 = vpop.permute.xlu0 %664 }
 0x1e7   :  { %v560_v54 = vpop.permute.xlu1 %559 }
 0x1e8   :  { %v563_v27 = vsel %vm453_vm3, %v558_v21, %v560_v54 }
 0x1e9   :  { %v574_v30 = vsel %vm263_vm0, %v563_v27, 0 }
 0x1ea   :  { %2477 = vmatpush3.bf16.msra.mxu1 %v574_v30  ;;  %v663_v31 = vpop.permute.xlu0 %662  ;;  %2362 = vmatmul.mubr.msk.bf16.vlgmr.msra.gmra.mrb[0].mxu0 %vm259_vm1, %v2360_v57 }
 0x1eb   :  { %v671_v34 = vsel %vm670_vm4, %v663_v31, %v665_v58  ;;  %v667_v35 = vpop.permute.xlu1 %666  ;;  %2482 = vmatprep.subr.bf16.mxu1 %v2730_v1  ;;  %712 = vmatprep.mubr.bf16.mxu0 %v2733_v4 }
 0x1ec   :  { %v672_v52 = vsel %vm670_vm4, %v665_v58, %v667_v35 }
 0x1ed   :  { %680 = vmatprep.subr.bf16.mxu0 %v672_v52 }
 0x1ee   :  { %681 = vmatpush1.bf16.msra.mxu0 %v671_v34  ;;  %v767_v55 = vpop.permute.xlu0 %766  ;;  %2479 = vmatmul.mubr.msk.bf16.vlgmr.msra.gmra.mrb[0].mxu1 %vm259_vm1, %v2360_v57 }
 0x1ef   :  { %v669_v59 = vpop.permute.xlu1 %668  ;;  %2484 = vmatprep.mubr.msk.bf16.mxu1 %vm2732_vm15, %v2730_v1 }
 0x1f0   :  { %v673_v0 = vsel %vm670_vm4, %v667_v35, %v669_v59  ;;  %v2381_v35 = vld [vmem:[%s3379_s3 + $0x10] sm:$0xf] }
 0x1f1   :  { %2483 = vmatpush3.bf16.msra.mxu1 %v673_v0 }
 0x1f2   :  { %v771_v60 = vpop.permute.xlu0 %770  ;;  %2488 = vmatprep.subr.bf16.mxu1 %v2730_v1 }
 0x1f3   :  { %v769_v32 = vpop.permute.xlu1 %768 }
 0x1f4   :  { %v774_v39 = vsel %vm670_vm4, %v767_v55, %v769_v32  ;;  %v775_v62 = vsel %vm670_vm4, %v769_v32, %v771_v60 }
 0x1f5   :  { %2368 = vmatprep.subr.msk.bf16.mxu0 %vm263_vm0, %v775_v62  ;;  %v781_v3 = vsel %vm263_vm0, %v774_v39, 0 }
 0x1f6   :  { %v878_v2 = vpop.permute.xlu0 %877  ;;  %2365 = vmatmul.mubr.msk.bf16.vlgmr.msra.gmra.mrb[0].mxu0 %vm354_vm2, %v2364_v63 }
 0x1f7   :  { %v773_v5 = vpop.permute.xlu1 %772  ;;  %790 = vmatpush1.bf16.msra.mxu0 %v781_v3  ;;  %821 = vmatprep.mubr.bf16.mxu0 %v2733_v4 }
 0x1f8   :  { %v776_v33 = vsel %vm670_vm4, %v771_v60, %v773_v5  ;;  %vm2153_vm4 = vcmp.lt.f32.partialorder %v2794_v29, 16.0 }
 0x1f9   :  { %v787_v46 = vsel %vm263_vm0, %v776_v33, 0 }
 0x1fa   :  { %v876_v43 = vpop.permute.xlu0 %875  ;;  %2485 = vmatmul.mubr.msk.bf16.vlgmr.msra.gmra.mrb[0].mxu1 %vm354_vm2, %v2364_v63  ;;  %v2385_v63 = vld [vmem:[%s3380_s2 + $0x14] sm:$0xf] }
 0x1fb   :  { %v880_v41 = vpop.permute.xlu1 %879  ;;  %2489 = vmatpush3.bf16.msra.mxu1 %v787_v46  ;;  %2490 = vmatprep.mubr.msk.bf16.mxu1 %vm2732_vm15, %v2730_v1  ;;  %v884_v42 = vsel %vm883_vm5, %v876_v43, %v878_v2 }
 0x1fc   :  { %v885_v48 = vsel %vm883_vm5, %v878_v2, %v880_v41  ;;  %2494 = vmatprep.subr.bf16.mxu1 %v2730_v1 }
 0x1fd   :  { %893 = vmatprep.subr.bf16.mxu0 %v885_v48 }
 0x1fe   :  { %v980_v38 = vpop.permute.xlu0 %979 }
 0x1ff   :  { %v882_v9 = vpop.permute.xlu1 %881 }
 0x200   :  { %v886_v13 = vsel %vm883_vm5, %v880_v41, %v882_v9 }
 0x202   :  { %v984_v10 = vpop.permute.xlu0 %983  ;;  %2369 = vmatmul.mubr.msk.bf16.vlgmr.msra.gmra.mrb[0].mxu0 %vm259_vm1, %v2367_v45 }
 0x203   :  { %v982_v37 = vpop.permute.xlu1 %981  ;;  %894 = vmatpush1.bf16.msra.mxu0 %v884_v42  ;;  %925 = vmatprep.mubr.bf16.mxu0 %v2733_v4 }
 0x204   :  { %v988_v49 = vsel %vm883_vm5, %v982_v37, %v984_v10  ;;  %v987_v14 = vsel %vm883_vm5, %v980_v38, %v982_v37  ;;  %v2388_v38 = vld [vmem:[%s3379_s3 + $0x14] sm:$0xf] }
 0x205   :  { %2375 = vmatprep.subr.msk.bf16.mxu0 %vm263_vm0, %v988_v49  ;;  %v994_v12 = vsel %vm263_vm0, %v987_v14, 0 }
 0x206   :  { %v1091_v36 = vpop.permute.xlu0 %1090  ;;  %2491 = vmatmul.mubr.msk.bf16.vlgmr.msra.gmra.mrb[0].mxu1 %vm259_vm1, %v2367_v45 }
 0x207   :  { %v986_v56 = vpop.permute.xlu1 %985  ;;  %2495 = vmatpush3.bf16.msra.mxu1 %v886_v13  ;;  %2496 = vmatprep.mubr.msk.bf16.mxu1 %vm2732_vm15, %v2730_v1 }
 0x208   :  { %2500 = vmatprep.subr.bf16.mxu1 %v2730_v1  ;;  %v989_v15 = vsel %vm883_vm5, %v984_v10, %v986_v56  ;;  %v2392_v56 = vld [vmem:[%s3380_s2 + $0x18] sm:$0xf]  ;;  %vm2156_vm5 = vcmp.lt.f32.partialorder %v2778_v8, 288.0 }
 0x209   :  { %v1000_v44 = vsel %vm263_vm0, %v989_v15, 0 }
 0x20a   :  { %v1089_v51 = vpop.permute.xlu0 %1088 }
 0x20b   :  { %v1093_v11 = vpop.permute.xlu1 %1092  ;;  %v1097_v47 = vsel %vm1096_vm6, %v1089_v51, %v1091_v36 }
 0x20c   :  { %v1098_v16 = vsel %vm1096_vm6, %v1091_v36, %v1093_v11 }
 0x20e   :  { %2372 = vmatmul.mubr.msk.bf16.vlgmr.msra.gmra.mrb[0].mxu0 %vm354_vm2, %v2371_v40  ;;  %v1193_v53 = vpop.permute.xlu0 %1192 }
 0x20f   :  { %1003 = vmatpush1.bf16.msra.mxu0 %v994_v12  ;;  %1034 = vmatprep.mubr.bf16.mxu0 %v2733_v4  ;;  %v1095_v61 = vpop.permute.xlu1 %1094 }
 0x210   :  { %1106 = vmatprep.subr.bf16.mxu0 %v1098_v16  ;;  %v1099_v20 = vsel %vm1096_vm6, %v1093_v11, %v1095_v61 }
 0x212   :  { %2497 = vmatmul.mubr.msk.bf16.vlgmr.msra.gmra.mrb[0].mxu1 %vm354_vm2, %v2371_v40  ;;  %v1197_v18 = vpop.permute.xlu0 %1196 }
 0x213   :  { %2501 = vmatpush3.bf16.msra.mxu1 %v1000_v44  ;;  %2502 = vmatprep.mubr.msk.bf16.mxu1 %vm2732_vm15, %v2730_v1  ;;  %v1195_v19 = vpop.permute.xlu1 %1194 }
 0x214   :  { %2506 = vmatprep.subr.bf16.mxu1 %v2730_v1  ;;  %v1201_v50 = vsel %vm1096_vm6, %v1195_v19, %v1197_v18  ;;  %v1200_v23 = vsel %vm1096_vm6, %v1193_v53, %v1195_v19  ;;  %v2395_v53 = vld [vmem:[%s3379_s3 + $0x18] sm:$0xf] }
 0x215   :  { %v1207_v54 = vsel %vm263_vm0, %v1200_v23, 0 }
 0x216   :  { %v1304_v21 = vpop.permute.xlu0 %1303 }
 0x217   :  { %v1199_v22 = vpop.permute.xlu1 %1198 }
 0x218   :  { %v1202_v27 = vsel %vm1096_vm6, %v1197_v18, %v1199_v22  ;;  %v2399_v22 = vld [vmem:[%s3380_s2 + $0x1c] sm:$0xf] }
 0x219   :  { %v1213_v30 = vsel %vm263_vm0, %v1202_v27, 0 }
 0x21a   :  { %2376 = vmatmul.mubr.msk.bf16.vlgmr.msra.gmra.mrb[0].mxu0 %vm259_vm1, %v2374_v17  ;;  %v1302_v25 = vpop.permute.xlu0 %1301 }
 0x21b   :  { %1107 = vmatpush1.bf16.msra.mxu0 %v1097_v47  ;;  %1138 = vmatprep.mubr.bf16.mxu0 %v2733_v4  ;;  %v1306_v58 = vpop.permute.xlu1 %1305  ;;  %v1310_v59 = vsel %vm1309_vm7, %v1302_v25, %v1304_v21 }
 0x21c   :  { %2382 = vmatprep.subr.msk.bf16.mxu0 %vm263_vm0, %v1201_v50  ;;  %v1311_v57 = vsel %vm1309_vm7, %v1304_v21, %v1306_v58 }
 0x21e   :  { %2503 = vmatmul.mubr.msk.bf16.vlgmr.msra.gmra.mrb[0].mxu1 %vm259_vm1, %v2374_v17  ;;  %v1406_v31 = vpop.permute.xlu0 %1405 }
 0x21f   :  { %2507 = vmatpush3.bf16.msra.mxu1 %v1099_v20  ;;  %2508 = vmatprep.mubr.msk.bf16.mxu1 %vm2732_vm15, %v2730_v1  ;;  %v1308_v34 = vpop.permute.xlu1 %1307 }
 0x220   :  { %2512 = vmatprep.subr.bf16.mxu1 %v2730_v1  ;;  %v1312_v60 = vsel %vm1309_vm7, %v1306_v58, %v1308_v34 }
 0x222   :  { %v1410_v52 = vpop.permute.xlu0 %1409 }
 0x223   :  { %v1408_v55 = vpop.permute.xlu1 %1407 }
 0x224   :  { %v1414_v0 = vsel %vm1309_vm7, %v1408_v55, %v1410_v52  ;;  %v1413_v62 = vsel %vm1309_vm7, %v1406_v31, %v1408_v55  ;;  %v2402_v31 = vld [vmem:[%s3379_s3 + $0x1c] sm:$0xf] }
 0x225   :  { %v1420_v5 = vsel %vm263_vm0, %v1413_v62, 0 }
 0x226   :  { %2379 = vmatmul.mubr.msk.bf16.vlgmr.msra.gmra.mrb[0].mxu0 %vm354_vm2, %v2378_v24  ;;  %v1517_v32 = vpop.permute.xlu0 %1516 }
 0x227   :  { %1216 = vmatpush1.bf16.msra.mxu0 %v1207_v54  ;;  %1247 = vmatprep.mubr.bf16.mxu0 %v2733_v4  ;;  %v1412_v39 = vpop.permute.xlu1 %1411 }
 0x228   :  { %1319 = vmatprep.subr.bf16.mxu0 %v1311_v57  ;;  %v1415_v33 = vsel %vm1309_vm7, %v1410_v52, %v1412_v39 }
 0x229   :  { %v1426_v46 = vsel %vm263_vm0, %v1415_v33, 0 }
 0x22a   :  { %2509 = vmatmul.mubr.msk.bf16.vlgmr.msra.gmra.mrb[0].mxu1 %vm354_vm2, %v2378_v24  ;;  %v1515_v2 = vpop.permute.xlu0 %1514 }
 0x22b   :  { %2513 = vmatpush3.bf16.msra.mxu1 %v1213_v30  ;;  %2514 = vmatprep.mubr.msk.bf16.mxu1 %vm2732_vm15, %v2730_v1  ;;  %v1519_v3 = vpop.permute.xlu1 %1518  ;;  %v1523_v10 = vsel %vm1522_vm8, %v1515_v2, %v1517_v32  ;;  %v2409_v2 = vld [vmem:[%s3379_s3 + $0x20] sm:$0xf] }
 0x22c   :  { %2518 = vmatprep.subr.bf16.mxu1 %v2730_v1  ;;  %v1524_v43 = vsel %vm1522_vm8, %v1517_v32, %v1519_v3 }
 0x22e   :  { %v1619_v41 = vpop.permute.xlu0 %1618 }
 0x22f   :  { %v1521_v48 = vpop.permute.xlu1 %1520 }
 0x230   :  { %v1525_v37 = vsel %vm1522_vm8, %v1519_v3, %v1521_v48 }
 0x232   :  { %2383 = vmatmul.mubr.msk.bf16.vlgmr.msra.gmra.mrb[0].mxu0 %vm259_vm1, %v2381_v35  ;;  %v1623_v9 = vpop.permute.xlu0 %1622 }
 0x233   :  { %1320 = vmatpush1.bf16.msra.mxu0 %v1310_v59  ;;  %1351 = vmatprep.mubr.bf16.mxu0 %v2733_v4  ;;  %v1621_v45 = vpop.permute.xlu1 %1620 }
 0x234   :  { %2389 = vmatprep.subr.msk.bf16.mxu0 %vm263_vm0, %v1414_v0  ;;  %v1627_v42 = vsel %vm1522_vm8, %v1621_v45, %v1623_v9  ;;  %v1626_v36 = vsel %vm1522_vm8, %v1619_v41, %v1621_v45 }
 0x235   :  { %v1633_v51 = vsel %vm263_vm0, %v1626_v36, 0 }
 0x236   :  { %2515 = vmatmul.mubr.msk.bf16.vlgmr.msra.gmra.mrb[0].mxu1 %vm259_vm1, %v2381_v35  ;;  %v1730_v49 = vpop.permute.xlu0 %1729 }
 0x237   :  { %2519 = vmatpush3.bf16.msra.mxu1 %v1312_v60  ;;  %2520 = vmatprep.mubr.msk.bf16.mxu1 %vm2732_vm15, %v2730_v1  ;;  %v1625_v13 = vpop.permute.xlu1 %1624  ;;  %v2406_v60 = vld [vmem:[%s3380_s2 + $0x20] sm:$0xf] }
 0x238   :  { %2524 = vmatprep.subr.bf16.mxu1 %v2730_v1  ;;  %v1628_v11 = vsel %vm1522_vm8, %v1623_v9, %v1625_v13  ;;  %vm2203_vm8 = vcmask 64512  }
 0x239   :  { %v1639_v15 = vsel %vm263_vm0, %v1628_v11, 0 }
 0x23a   :  { %v1728_v14 = vpop.permute.xlu0 %1727 }
 0x23b   :  { %v1732_v40 = vpop.permute.xlu1 %1731  ;;  %v1736_v18 = vsel %vm1735_vm9, %v1728_v14, %v1730_v49 }
 0x23c   :  { %v1737_v12 = vsel %vm1735_vm9, %v1730_v49, %v1732_v40 }
 0x23e   :  { %2386 = vmatmul.mubr.msk.bf16.vlgmr.msra.gmra.mrb[0].mxu0 %vm354_vm2, %v2385_v63  ;;  %v1832_v16 = vpop.permute.xlu0 %1831 }
 0x23f   :  { %1429 = vmatpush1.bf16.msra.mxu0 %v1420_v5  ;;  %1460 = vmatprep.mubr.bf16.mxu0 %v2733_v4  ;;  %v1734_v44 = vpop.permute.xlu1 %1733 }
 0x240   :  { %1532 = vmatprep.subr.bf16.mxu0 %v1524_v43  ;;  %v1738_v47 = vsel %vm1735_vm9, %v1732_v40, %v1734_v44 }
 0x242   :  { %2521 = vmatmul.mubr.msk.bf16.vlgmr.msra.gmra.mrb[0].mxu1 %vm354_vm2, %v2385_v63  ;;  %v1836_v61 = vpop.permute.xlu0 %1835 }
 0x243   :  { %2525 = vmatpush3.bf16.msra.mxu1 %v1426_v46  ;;  %2526 = vmatprep.mubr.msk.bf16.mxu1 %vm2732_vm15, %v2730_v1  ;;  %v1834_v17 = vpop.permute.xlu1 %1833 }
 0x244   :  { %2530 = vmatprep.subr.bf16.mxu1 %v2730_v1  ;;  %v1840_v19 = vsel %vm1735_vm9, %v1834_v17, %v1836_v61  ;;  %v1839_v21 = vsel %vm1735_vm9, %v1832_v16, %v1834_v17 }
 0x245   :  { %v1846_v25 = vsel %vm263_vm0, %v1839_v21, 0 }
 0x246   :  { %v1943_v50 = vpop.permute.xlu0 %1942 }
 0x247   :  { %v1838_v20 = vpop.permute.xlu1 %1837 }
 0x248   :  { %v1841_v58 = vsel %vm1735_vm9, %v1836_v61, %v1838_v20 }
 0x249   :  { %v1852_v27 = vsel %vm263_vm0, %v1841_v58, 0 }
 0x24a   :  { %2390 = vmatmul.mubr.msk.bf16.vlgmr.msra.gmra.mrb[0].mxu0 %vm259_vm1, %v2388_v38  ;;  %v1941_v23 = vpop.permute.xlu0 %1940 }
 0x24b   :  { %1533 = vmatpush1.bf16.msra.mxu0 %v1523_v10  ;;  %1564 = vmatprep.mubr.bf16.mxu0 %v2733_v4  ;;  %v1945_v24 = vpop.permute.xlu1 %1944  ;;  %v1949_v52 = vsel %vm1948_vm10, %v1941_v23, %v1943_v50 }
 0x24c   :  { %2396 = vmatprep.subr.msk.bf16.mxu0 %vm263_vm0, %v1627_v42  ;;  %v1950_v54 = vsel %vm1948_vm10, %v1943_v50, %v1945_v24 }
 0x24e   :  { %2527 = vmatmul.mubr.msk.bf16.vlgmr.msra.gmra.mrb[0].mxu1 %vm259_vm1, %v2388_v38  ;;  %v2045_v57 = vpop.permute.xlu0 %2044 }
 0x24f   :  { %2531 = vmatpush3.bf16.msra.mxu1 %v1525_v37  ;;  %2532 = vmatprep.mubr.msk.bf16.mxu1 %vm2732_vm15, %v2730_v1  ;;  %v1947_v30 = vpop.permute.xlu1 %1946 }
 0x250   :  { %2536 = vmatprep.subr.bf16.mxu1 %v2730_v1  ;;  %v1951_v59 = vsel %vm1948_vm10, %v1945_v24, %v1947_v30 }
 0x252   :  { %v2049_v34 = vpop.permute.xlu0 %2048 }
 0x253   :  { %v2047_v35 = vpop.permute.xlu1 %2046 }
 0x254   :  { %v2053_v55 = vsel %vm1948_vm10, %v2047_v35, %v2049_v34  ;;  %v2052_v0 = vsel %vm1948_vm10, %v2045_v57, %v2047_v35 }
 0x255   :  { %v2059_v39 = vsel %vm263_vm0, %v2052_v0, 0 }
 0x256   :  { %2393 = vmatmul.mubr.msk.bf16.vlgmr.msra.gmra.mrb[0].mxu0 %vm354_vm2, %v2392_v56 }
 0x257   :  { %1642 = vmatpush1.bf16.msra.mxu0 %v1633_v51  ;;  %1673 = vmatprep.mubr.bf16.mxu0 %v2733_v4  ;;  %v2051_v32 = vpop.permute.xlu1 %2050 }
 0x258   :  { %1745 = vmatprep.subr.bf16.mxu0 %v1737_v12  ;;  %v2054_v62 = vsel %vm1948_vm10, %v2049_v34, %v2051_v32 }
 0x259   :  { %v2065_v63 = vsel %vm263_vm0, %v2054_v62, 0 }
 0x25a   :  { %2533 = vmatmul.mubr.msk.bf16.vlgmr.msra.gmra.mrb[0].mxu1 %vm354_vm2, %v2392_v56 }
 0x25b   :  { %2537 = vmatpush3.bf16.msra.mxu1 %v1639_v15  ;;  %2538 = vmatprep.mubr.msk.bf16.mxu1 %vm2732_vm15, %v2730_v1 }
 0x25c   :  { %2542 = vmatprep.subr.bf16.mxu1 %v2730_v1 }
 0x262   :  { %2397 = vmatmul.mubr.msk.bf16.vlgmr.msra.gmra.mrb[0].mxu0 %vm259_vm1, %v2395_v53 }
 0x263   :  { %1746 = vmatpush1.bf16.msra.mxu0 %v1736_v18  ;;  %1777 = vmatprep.mubr.bf16.mxu0 %v2733_v4 }
 0x264   :  { %2403 = vmatprep.subr.msk.bf16.mxu0 %vm263_vm0, %v1840_v19 }
 0x266   :  { %2539 = vmatmul.mubr.msk.bf16.vlgmr.msra.gmra.mrb[0].mxu1 %vm259_vm1, %v2395_v53 }
 0x267   :  { %2543 = vmatpush3.bf16.msra.mxu1 %v1738_v47  ;;  %2544 = vmatprep.mubr.msk.bf16.mxu1 %vm2732_vm15, %v2730_v1 }
 0x268   :  { %2548 = vmatprep.subr.bf16.mxu1 %v2730_v1 }
 0x26e   :  { %2400 = vmatmul.mubr.msk.bf16.vlgmr.msra.gmra.mrb[0].mxu0 %vm354_vm2, %v2399_v22 }
 0x26f   :  { %1855 = vmatpush1.bf16.msra.mxu0 %v1846_v25  ;;  %1886 = vmatprep.mubr.bf16.mxu0 %v2733_v4 }
 0x270   :  { %1958 = vmatprep.subr.bf16.mxu0 %v1950_v54  ;;  %v2199_v54 = vld [vmem:[%s3381_s4] sm:$0xf] }
 0x272   :  { %2545 = vmatmul.mubr.msk.bf16.vlgmr.msra.gmra.mrb[0].mxu1 %vm354_vm2, %v2399_v22 }
 0x273   :  { %2549 = vmatpush3.bf16.msra.mxu1 %v1852_v27  ;;  %2550 = vmatprep.mubr.msk.bf16.mxu1 %vm2732_vm15, %v2730_v1 }
 0x274   :  { %2554 = vmatprep.subr.bf16.mxu1 %v2730_v1 }
 0x27a   :  { %2404 = vmatmul.mubr.msk.bf16.vlgmr.msra.gmra.mrb[0].mxu0 %vm259_vm1, %v2402_v31 }
 0x27b   :  { %1959 = vmatpush1.bf16.msra.mxu0 %v1949_v52  ;;  %1990 = vmatprep.mubr.bf16.mxu0 %v2733_v4 }
 0x27c   :  { %2410 = vmatprep.subr.msk.bf16.mxu0 %vm263_vm0, %v2053_v55  ;;  %vm2155_vm0 = vcmp.lt.f32.partialorder %v2776_v7, 288.0 }
 0x27d   :  { %vm2158_vm3 = vmand %vm2152_vm14, %vm2155_vm0 }
 0x27e   :  { %2551 = vmatmul.mubr.msk.bf16.vlgmr.msra.gmra.mrb[0].mxu1 %vm259_vm1, %v2402_v31  ;;  %v3348_v3 = vsel %vm2158_vm3, 1.0, %v2730_v1 }
 0x27f   :  { %2555 = vmatpush3.bf16.msra.mxu1 %v1951_v59  ;;  %2556 = vmatprep.mubr.msk.bf16.mxu1 %vm2732_vm15, %v2730_v1 }
 0x280   :  { %2560 = vmatprep.subr.bf16.mxu1 %v2730_v1 }
 0x286   :  { %2407 = vmatmul.mubr.msk.bf16.vlgmr.msra.gmra.mrb[0].mxu0 %vm354_vm2, %v2406_v60 }
 0x287   :  { %2068 = vmatpush1.bf16.msra.mxu0 %v2059_v39  ;;  %2099 = vmatprep.mubr.bf16.mxu0 %v2733_v4 }
 0x28a   :  { %2557 = vmatmul.mubr.msk.bf16.vlgmr.msra.gmra.mrb[0].mxu1 %vm354_vm2, %v2406_v60  ;;  %vm2157_vm2 = vmand %vm2151_vm12, %vm2154_vm13 }
 0x28b   :  { %2561 = vmatpush3.bf16.msra.mxu1 %v2065_v63  ;;  %2562 = vmatprep.mubr.msk.bf16.mxu1 %vm2732_vm15, %v2730_v1 }
 0x28c   :  { %2566 = vmatprep.subr.bf16.mxu1 %v2730_v1 }
 0x292   :  { %2411 = vmatmul.mubr.msk.bf16.vlgmr.msra.gmra.mrb[0].mxu0 %vm259_vm1, %v2409_v2 }
 0x293   :  { %2248 = vmatprep.mubr.bf16.mxu0 %v2733_v4  ;;  %v3345_v4 = vsel %vm2157_vm2, 1.0, %v2730_v1 }
 0x296   :  { %2563 = vmatmul.mubr.msk.bf16.vlgmr.msra.gmra.mrb[0].mxu1 %vm259_vm1, %v2409_v2 }
 0x297   :  { %2568 = vmatprep.mubr.msk.bf16.mxu1 %vm2732_vm15, %v2730_v1  ;;  %vm2159_vm15 = vmand %vm2153_vm4, %vm2156_vm5 }
 0x298   :  { %v3353_v33 = vsel %vm2159_vm15, 1.0, %v2730_v1 }
 0x365   :  { %v2101_v26 = vpop.f32.mrb[0].mxu0 }
 0x366   :  { %v2163_v6 = vmul.f32 %v3345_v4, %v2101_v26  ;;  %v2103_v5 = vpop.f32.mrb[1].mxu0 }
 0x367   :  { %v2164_v28 = vmul.f32 %v3348_v3, %v2103_v5  ;;  %v2105_v7 = vpop.f32.mrb[2].mxu0 }
 0x368   :  { %v2106_v29 = vpop.f32.mrb[3].mxu0 }
 0x369   :  { %v2142_v43 = vpop.f32.mrb[0].mxu1  ;;  %v2166_v8 = vadd.f32 %v2164_v28, %v2163_v6 }
 0x36a   :  { %v2165_v46 = vmul.f32 %v3353_v33, %v2142_v43  ;;  %v2564_v41 = vpop.f32.mrb[1].mxu1 }
 0x36b   :  { %v2145_v48 = vpop.f32.mrb[2].mxu1 }
 0x36c   :  { %v2565_v38 = vpop.f32.mrb[3].mxu1  ;;  %v2167_v9 = vadd.f32 %v2166_v8, %v2165_v46 }
 0x36e   :  { %2168 = vadd.xlane.f32.xlu0 %v2167_v9 }
 0x3fb   :  { %v2169_v45 = vpop.xlane.xlu0 %2168 }
 0x3fc   :  { %v2170_v10 = vmul.f32 0.00390625, %v2169_v45 }
 0x3fe   :  { %v2171_v42 = vsub.f32 %v2101_v26, %v2170_v10  ;;  %v2172_v37 = vsub.f32 %v2103_v5, %v2170_v10  ;;  %v2173_v49 = vsub.f32 %v2142_v43, %v2170_v10 }
 0x400   :  { %v2174_v13 = vmul.f32 %v2171_v42, %v2171_v42  ;;  %v2175_v36 = vmul.f32 %v2172_v37, %v2172_v37  ;;  %v2176_v56 = vmul.f32 %v2173_v49, %v2173_v49 }
 0x402   :  { %v2177_v1 = vmul.f32 %v2174_v13, %v3345_v4  ;;  %v2178_v14 = vmul.f32 %v2175_v36, %v3348_v3  ;;  %v2179_v40 = vmul.f32 %v2176_v56, %v3353_v33 }
 0x404   :  { %v2180_v51 = vadd.f32 %v2178_v14, %v2177_v1 }
 0x406   :  { %v2181_v11 = vadd.f32 %v2180_v51, %v2179_v40 }
 0x408   :  { %2182 = vadd.xlane.f32.xlu1 %v2181_v11 }
 0x495   :  { %v2183_v12 = vpop.xlane.xlu1 %2182 }
 0x496   :  { %v2184_v15 = vmul.f32 0.00390625, %v2183_v12 }
 0x498   :  { %v2185_v16 = vadd.f32 1e-05, %v2184_v15 }
 0x49a   :  { %2726 = vrsqrt.f32 %v2185_v16 }
 0x4a4   :  { %v2727_v44 = vpop.eup %2726 }
 0x4a5   :  { %v2188_v53 = vmul.f32 %v2727_v44, %v2172_v37  ;;  %v2187_v61 = vmul.f32 %v2727_v44, %v2171_v42  ;;  %v2189_v17 = vmul.f32 %v2727_v44, %v2173_v49 }
 0x4a7   :  { %vm2191_vm1 = vcmp.ge.f32.partialorder %v2188_v53, 0.0  ;;  %v2194_v18 = vmul.f32 0.2, %v2188_v53  ;;  %vm2190_vm6 = vcmp.ge.f32.partialorder %v2187_v61, 0.0  ;;  %v2193_v19 = vmul.f32 0.2, %v2187_v61 }
 0x4a8   :  { %vm2192_vm7 = vcmp.ge.f32.partialorder %v2189_v17, 0.0  ;;  %v2195_v47 = vmul.f32 0.2, %v2189_v17 }
 0x4a9   :  { %v2197_v50 = vsel %vm2191_vm1, %v2188_v53, %v2194_v18  ;;  %v2196_v20 = vsel %vm2190_vm6, %v2187_v61, %v2193_v19 }
 0x4aa   :  { %v2201_v21 = vpack.c.bf16 %v2197_v50, %v2197_v50  ;;  %v2200_v22 = vpack.c.bf16 %v2196_v20, %v2196_v20  ;;  %v2198_v23 = vsel %vm2192_vm7, %v2189_v17, %v2195_v47 }
 0x4ab   :  { %v2202_v24 = vpack.c.bf16 %v2198_v23, %v2198_v23 }
 0x4ac   :  { %2413 = vmatprep.subr.msk.bf16.mxu0 %vm191_vm11, %v2201_v21  ;;  %v2208_v25 = vsel %vm191_vm11, %v2200_v22, 0 }
 0x4ad   :  { %2217 = vmatpush1.bf16.msra.mxu0 %v2208_v25  ;;  %v2214_v58 = vsel %vm191_vm11, %v2202_v24, 0 }
 0x4ae   :  { %2567 = vmatpush3.bf16.msra.mxu1 %v2214_v58 }
 0x4b0   :  { %2414 = vmatmul.mubr.msk.bf16.vlgmr.msra.gmra.mrb[4].mxu0 %vm2203_vm8, %v2199_v54 }
 0x4b1   :  { %2569 = vmatmul.mubr.msk.bf16.vlgmr.msra.gmra.mrb[4].mxu1 %vm2203_vm8, %v2199_v54 }
 0x583   :  { %v2250_v27 = vpop.f32.mrb[4].mxu0 }
 0x584   :  { %v2297_v57 = vmul.f32 %v2250_v27, %v3345_v4  ;;  %v2252_v30 = vpop.f32.mrb[5].mxu0  ;;  %v2291_v31 = vpop.f32.mrb[4].mxu1 }
 0x585   :  { %v2298_v34 = vmul.f32 %v2252_v30, %v3348_v3  ;;  %v2299_v35 = vmul.f32 %v2291_v31, %v3353_v33  ;;  %v2254_v52 = vpop.f32.mrb[6].mxu0  ;;  %v2570_v55 = vpop.f32.mrb[5].mxu1 }
 0x586   :  { %v2255_v59 = vpop.f32.mrb[7].mxu0  ;;  %v2294_v0 = vpop.f32.mrb[6].mxu1 }
 0x587   :  { %v2300_v60 = vadd.f32 %v2298_v34, %v2297_v57  ;;  %v2571_v32 = vpop.f32.mrb[7].mxu1 }
 0x589   :  { %v2301_v39 = vadd.f32 %v2300_v60, %v2299_v35 }
 0x58b   :  { %2302 = vadd.xlane.f32.xlu0 %v2301_v39 }
 0x618   :  { %v2303_v62 = vpop.xlane.xlu0 %2302 }
 0x619   :  { %v2304_v63 = vmul.f32 0.00390625, %v2303_v62 }
 0x61b   :  { %v2305_v2 = vsub.f32 %v2250_v27, %v2304_v63  ;;  %v2306_v26 = vsub.f32 %v2252_v30, %v2304_v63  ;;  %v2307_v6 = vsub.f32 %v2291_v31, %v2304_v63 }
 0x61d   :  { %v2308_v5 = vmul.f32 %v2305_v2, %v2305_v2  ;;  %v2309_v28 = vmul.f32 %v2306_v26, %v2306_v26  ;;  %v2310_v7 = vmul.f32 %v2307_v6, %v2307_v6 }
 0x61f   :  { %v2311_v29 = vmul.f32 %v2308_v5, %v3345_v4  ;;  %v2312_v43 = vmul.f32 %v2309_v28, %v3348_v3  ;;  %v2313_v8 = vmul.f32 %v2310_v7, %v3353_v33 }
 0x621   :  { %v2314_v46 = vadd.f32 %v2312_v43, %v2311_v29 }
 0x623   :  { %v2315_v41 = vadd.f32 %v2314_v46, %v2313_v8 }
 0x625   :  { %2316 = vadd.xlane.f32.xlu0 %v2315_v41 }
 0x6b2   :  { %v2317_v48 = vpop.xlane.xlu0 %2316 }
 0x6b3   :  { %v2318_v38 = vmul.f32 0.00390625, %v2317_v48 }
 0x6b5   :  { %v2319_v9 = vadd.f32 1e-05, %v2318_v38 }
 0x6b7   :  { %2728 = vrsqrt.f32 %v2319_v9 }
 0x6c1   :  { %v2729_v45 = vpop.eup %2728 }
 0x6c2   :  { %v2321_v10 = vmul.f32 %v2729_v45, %v2305_v2  ;;  %v2322_v42 = vmul.f32 %v2729_v45, %v2306_v26  ;;  %v2323_v37 = vmul.f32 %v2729_v45, %v2307_v6 }
 0x6c4   :  { %vm2324_vm11 = vcmp.ge.f32.partialorder %v2321_v10, 0.0  ;;  %vm2325_vm9 = vcmp.ge.f32.partialorder %v2322_v42, 0.0  ;;  %vm2326_vm10 = vcmp.ge.f32.partialorder %v2323_v37, 0.0  ;;  %v2327_v49 = vmul.f32 0.2, %v2321_v10 }
 0x6c5   :  { %v2328_v4 = vmul.f32 0.2, %v2322_v42  ;;  %v2329_v13 = vmul.f32 0.2, %v2323_v37 }
 0x6c6   :  { %v2330_v3 = vsel %vm2324_vm11, %v2321_v10, %v2327_v49 }
 0x6c7   :  { %v2331_v36 = vsel %vm2325_vm9, %v2322_v42, %v2328_v4  ;;  %v2332_v33 = vsel %vm2326_vm10, %v2323_v37, %v2329_v13 }
 0x6c8   :  { %v2418_v56 = vpack.c.bf16 %v2331_v36, %v2330_v3  ;;  %v2419_v1 = vpack.c.bf16 %v2332_v33, %v2332_v33 }
 0x6ca   :  { %2346 = vst [vmem:[%s3382_s5] sm:$0xff] %v2418_v56  ;;  %2347 = vst [vmem:[%s3382_s5 + $0x8] sm:$0xf] %v2419_v1 }

</bundles_post_ra>
